<compile_context>
chip_gen: v7x
topology: tpu7x:2x2x1
jax: 0.10.0
libtpu: 0.0.40
codegen_flags: <defaults>
</compile_context>

<pallas_src>
import jax
import jax.numpy as jnp
from jax.experimental import pallas as pl
from jax.experimental.pallas import tpu as pltpu


LATENT_DIM = 16
STYLE_DIM = 64
NUM_DOMAINS = 4
HIDDEN = 512


def _mapping_kernel(
    lbl_ref,                      # scalar-prefetch: (B,) int32 in SMEM (used by index_maps)
    z_ref,                        # (1, 1, LATENT_DIM) f32
    sw1_ref, sb1_ref, sw2_ref, sb2_ref, sw3_ref, sb3_ref, sw4_ref, sb4_ref,
    uw1_ref, ub1_ref, uw2_ref, ub2_ref, uw3_ref, ub3_ref, uw4_ref, ub4_ref,
    out_ref,                      # (1, 1, STYLE_DIM) f32
):
    del lbl_ref  # selection already done by the BlockSpec index_maps

    def dense(x_f32, w_bf16, b_f32, relu=True):
        # bf16 x bf16 on the MXU, f32 accumulation; bias/ReLU in f32.
        y = jnp.dot(x_f32.astype(jnp.bfloat16), w_bf16,
                    preferred_element_type=jnp.float32) + b_f32
        return jnp.maximum(y, 0.0) if relu else y

    x = z_ref[0]                                   # (1, LATENT_DIM) f32

    # ---- shared trunk: 4 x (Linear + ReLU) ----
    h = dense(x, sw1_ref[...], sb1_ref[...])
    h = dense(h, sw2_ref[...], sb2_ref[...])
    h = dense(h, sw3_ref[...], sb3_ref[...])
    h = dense(h, sw4_ref[...], sb4_ref[...])

    # ---- selected unshared branch (weights already domain-indexed by DMA) ----
    t = dense(h, uw1_ref[0], ub1_ref[0])
    t = dense(t, uw2_ref[0], ub2_ref[0])
    t = dense(t, uw3_ref[0], ub3_ref[0])
    s = dense(t, uw4_ref[0], ub4_ref[0], relu=False)   # (1, STYLE_DIM)

    out_ref[0] = s.astype(out_ref.dtype)


def init_params(key):
    """Deterministic synthetic parameters matching MappingNetwork.__init__ shapes.

    Weights are returned in bf16 (memory-bound kernel); biases stay f32.
    """
    n_keys = 2 * (4 + NUM_DOMAINS * 4)             # 8 shared + 32 unshared = 40
    ks = jax.random.split(key, n_keys)
    it = iter(range(n_keys))

    def lin(fan_in, fan_out):
        kw, kb = ks[next(it)], ks[next(it)]
        scale = 1.0 / jnp.sqrt(jnp.float32(fan_in))
        w = jax.random.uniform(kw, (fan_in, fan_out), jnp.float32, -scale, scale)
        b = jax.random.uniform(kb, (1, fan_out), jnp.float32, -scale, scale)
        return w.astype(jnp.bfloat16), b

    # shared: Linear(latent,512) + 3x Linear(512,512), each followed by ReLU
    sw1, sb1 = lin(LATENT_DIM, HIDDEN)
    sw2, sb2 = lin(HIDDEN, HIDDEN)
    sw3, sb3 = lin(HIDDEN, HIDDEN)
    sw4, sb4 = lin(HIDDEN, HIDDEN)

    # unshared: NUM_DOMAINS branches of 3x(Linear(512,512)+ReLU) + Linear(512,style)
    uw1, ub1, uw2, ub2, uw3, ub3, uw4, ub4 = ([] for _ in range(8))
    for _ in range(NUM_DOMAINS):
        w, b = lin(HIDDEN, HIDDEN); uw1.append(w); ub1.append(b)
        w, b = lin(HIDDEN, HIDDEN); uw2.append(w); ub2.append(b)
        w, b = lin(HIDDEN, HIDDEN); uw3.append(w); ub3.append(b)
        w, b = lin(HIDDEN, STYLE_DIM); uw4.append(w); ub4.append(b)

    stack = lambda xs: jnp.stack(xs, axis=0)
    return dict(
        sw1=sw1, sb1=sb1, sw2=sw2, sb2=sb2, sw3=sw3, sb3=sb3, sw4=sw4, sb4=sb4,
        uw1=stack(uw1), ub1=stack(ub1), uw2=stack(uw2), ub2=stack(ub2),
        uw3=stack(uw3), ub3=stack(ub3), uw4=stack(uw4), ub4=stack(ub4),
    )


@jax.jit
def mapping_network(z, domain_labels, params):
    """z: (B, latent_dim) f32, domain_labels: (B,) int -> (B, style_dim) f32."""
    B = z.shape[0]
    z3 = z.reshape(B, 1, LATENT_DIM)               # each sample is its own (1,16) tile
    labels = domain_labels.astype(jnp.int32)

    # Shared params: constant index_map -> VMEM-resident across the batch grid.
    shared = lambda shape: pl.BlockSpec(shape, lambda i, lbl: (0, 0))
    # Unshared params: domain selected per-sample via the scalar-prefetched labels.
    per_dom = lambda shape: pl.BlockSpec(shape, lambda i, lbl: (lbl[i], 0, 0))

    grid_spec = pltpu.PrefetchScalarGridSpec(
        num_scalar_prefetch=1,
        grid=(B,),
        in_specs=[
            pl.BlockSpec((1, 1, LATENT_DIM), lambda i, lbl: (i, 0, 0)),
            shared((LATENT_DIM, HIDDEN)), shared((1, HIDDEN)),
            shared((HIDDEN, HIDDEN)),     shared((1, HIDDEN)),
            shared((HIDDEN, HIDDEN)),     shared((1, HIDDEN)),
            shared((HIDDEN, HIDDEN)),     shared((1, HIDDEN)),
            per_dom((1, HIDDEN, HIDDEN)),    per_dom((1, 1, HIDDEN)),
            per_dom((1, HIDDEN, HIDDEN)),    per_dom((1, 1, HIDDEN)),
            per_dom((1, HIDDEN, HIDDEN)),    per_dom((1, 1, HIDDEN)),
            per_dom((1, HIDDEN, STYLE_DIM)), per_dom((1, 1, STYLE_DIM)),
        ],
        out_specs=pl.BlockSpec((1, 1, STYLE_DIM), lambda i, lbl: (i, 0, 0)),
    )

    out = pl.pallas_call(
        _mapping_kernel,
        out_shape=jax.ShapeDtypeStruct((B, 1, STYLE_DIM), jnp.float32),
        grid_spec=grid_spec,
        compiler_params=pltpu.CompilerParams(
            dimension_semantics=("parallel",),
            vmem_limit_bytes=32 * 1024 * 1024,     # fits v7x's 64 MiB VMEM
        ),
    )(
        labels, z3,
        params["sw1"], params["sb1"], params["sw2"], params["sb2"],
        params["sw3"], params["sb3"], params["sw4"], params["sb4"],
        params["uw1"], params["ub1"], params["uw2"], params["ub2"],
        params["uw3"], params["ub3"], params["uw4"], params["ub4"],
    )
    return out.reshape(B, STYLE_DIM)


def mapping_network_ref(z, domain_labels, params):
    """Pure-JAX reference mirroring the PyTorch forward (same bf16-weight numerics)."""
    def dense(x, w, b, relu=True):
        y = jnp.dot(x.astype(jnp.bfloat16), w,
                    preferred_element_type=jnp.float32) + b
        return jnp.maximum(y, 0.0) if relu else y

    h = dense(z, params["sw1"], params["sb1"])
    h = dense(h, params["sw2"], params["sb2"])
    h = dense(h, params["sw3"], params["sb3"])
    h = dense(h, params["sw4"], params["sb4"])
    outs = []
    for d in range(NUM_DOMAINS):
        t = dense(h, params["uw1"][d], params["ub1"][d])
        t = dense(t, params["uw2"][d], params["ub2"][d])
        t = dense(t, params["uw3"][d], params["ub3"][d])
        outs.append(dense(t, params["uw4"][d], params["ub4"][d], relu=False))
    stacked = jnp.stack(outs, axis=1)                        # (B, D, style)
    return stacked[jnp.arange(z.shape[0]), domain_labels]    # (B, style)


if __name__ == "__main__":
    key = jax.random.PRNGKey(0)
    k_params, k_z, k_dom = jax.random.split(key, 3)

    B = 2
    params = init_params(k_params)
    z = jax.random.normal(k_z, (B, LATENT_DIM), jnp.float32)
    domain_labels = jax.random.randint(k_dom, (B,), 0, NUM_DOMAINS, jnp.int32)

    out = jax.block_until_ready(mapping_network(z, domain_labels, params))
    ref = mapping_network_ref(z, domain_labels, params)

    assert out.shape == (B, STYLE_DIM)
    assert jnp.allclose(out, ref, atol=2e-3, rtol=2e-3), float(
        jnp.max(jnp.abs(out - ref)))

    print("KERNEL_OK")
</pallas_src>

<mosaic_0001>
module attributes {stable_mosaic.version = 11 : i64} {
  func.func @_mapping_kernel(%arg0: i32, %arg1: memref<2xi32, #tpu.memory_space<smem>>, %arg2: memref<1x1x16xf32, #tpu.memory_space<vmem>>, %arg3: memref<16x512xbf16, #tpu.memory_space<vmem>>, %arg4: memref<1x512xf32, #tpu.memory_space<vmem>>, %arg5: memref<512x512xbf16, #tpu.memory_space<vmem>>, %arg6: memref<1x512xf32, #tpu.memory_space<vmem>>, %arg7: memref<512x512xbf16, #tpu.memory_space<vmem>>, %arg8: memref<1x512xf32, #tpu.memory_space<vmem>>, %arg9: memref<512x512xbf16, #tpu.memory_space<vmem>>, %arg10: memref<1x512xf32, #tpu.memory_space<vmem>>, %arg11: memref<1x512x512xbf16, #tpu.memory_space<vmem>>, %arg12: memref<1x1x512xf32, #tpu.memory_space<vmem>>, %arg13: memref<1x512x512xbf16, #tpu.memory_space<vmem>>, %arg14: memref<1x1x512xf32, #tpu.memory_space<vmem>>, %arg15: memref<1x512x512xbf16, #tpu.memory_space<vmem>>, %arg16: memref<1x1x512xf32, #tpu.memory_space<vmem>>, %arg17: memref<1x512x64xbf16, #tpu.memory_space<vmem>>, %arg18: memref<1x1x64xf32, #tpu.memory_space<vmem>>, %arg19: memref<1x1x64xf32, #tpu.memory_space<vmem>>) attributes {dimension_semantics = [#tpu.dimension_semantics<parallel>], iteration_bounds = array<i64: 2>, scalar_prefetch = 1 : i64, scratch_operands = 0 : i64, tpu.core_type = #tpu.core_type<tc>, window_params = [{transform_indices = @transform_0, window_bounds = array<i64: 1, 1, 16>}, {pipeline_mode = #tpu.pipeline_mode<synchronous>, transform_indices = @transform_1, window_bounds = array<i64: 16, 512>}, {pipeline_mode = #tpu.pipeline_mode<synchronous>, transform_indices = @transform_2, window_bounds = array<i64: 1, 512>}, {pipeline_mode = #tpu.pipeline_mode<synchronous>, transform_indices = @transform_3, window_bounds = array<i64: 512, 512>}, {pipeline_mode = #tpu.pipeline_mode<synchronous>, transform_indices = @transform_4, window_bounds = array<i64: 1, 512>}, {pipeline_mode = #tpu.pipeline_mode<synchronous>, transform_indices = @transform_5, window_bounds = array<i64: 512, 512>}, {pipeline_mode = #tpu.pipeline_mode<synchronous>, transform_indices = @transform_6, window_bounds = array<i64: 1, 512>}, {pipeline_mode = #tpu.pipeline_mode<synchronous>, transform_indices = @transform_7, window_bounds = array<i64: 512, 512>}, {pipeline_mode = #tpu.pipeline_mode<synchronous>, transform_indices = @transform_8, window_bounds = array<i64: 1, 512>}, {transform_indices = @transform_9, window_bounds = array<i64: 1, 512, 512>}, {transform_indices = @transform_10, window_bounds = array<i64: 1, 1, 512>}, {transform_indices = @transform_11, window_bounds = array<i64: 1, 512, 512>}, {transform_indices = @transform_12, window_bounds = array<i64: 1, 1, 512>}, {transform_indices = @transform_13, window_bounds = array<i64: 1, 512, 512>}, {transform_indices = @transform_14, window_bounds = array<i64: 1, 1, 512>}, {transform_indices = @transform_15, window_bounds = array<i64: 1, 512, 64>}, {transform_indices = @transform_16, window_bounds = array<i64: 1, 1, 64>}, {transform_indices = @transform_17, window_bounds = array<i64: 1, 1, 64>}]} {
    %c0 = arith.constant 0 : index
    %c0_0 = arith.constant 0 : index
    %c0_1 = arith.constant 0 : index
    %0 = vector.load %arg2[%c0, %c0_0, %c0_1] : memref<1x1x16xf32, #tpu.memory_space<vmem>>, vector<1x1x16xf32>
    %1 = vector.shape_cast %0 : vector<1x1x16xf32> to vector<1x16xf32>
    %c0_2 = arith.constant 0 : index
    %c0_3 = arith.constant 0 : index
    %2 = vector.load %arg3[%c0_2, %c0_3] : memref<16x512xbf16, #tpu.memory_space<vmem>>, vector<16x512xbf16>
    %c0_4 = arith.constant 0 : index
    %c0_5 = arith.constant 0 : index
    %3 = vector.load %arg4[%c0_4, %c0_5] : memref<1x512xf32, #tpu.memory_space<vmem>>, vector<1x512xf32>
    %4 = arith.truncf %1 : vector<1x16xf32> to vector<1x16xbf16>
    %cst = arith.constant dense<0.000000e+00> : vector<1x512xf32>
    %5 = tpu.matmul %4, %2, %cst {dimension_numbers = #tpu.dot_dimension_numbers<[1], [0], [0], [1], [0, 0, 1, 1], [], []>} : vector<1x16xbf16>, vector<16x512xbf16>, vector<1x512xf32> -> vector<1x512xf32>
    %6 = arith.addf %5, %3 : vector<1x512xf32>
    %cst_6 = arith.constant 0.000000e+00 : f32
    %7 = vector.broadcast %cst_6 : f32 to vector<1x512xf32>
    %8 = arith.maximumf %6, %7 : vector<1x512xf32>
    %c0_7 = arith.constant 0 : index
    %c0_8 = arith.constant 0 : index
    %9 = vector.load %arg5[%c0_7, %c0_8] : memref<512x512xbf16, #tpu.memory_space<vmem>>, vector<512x512xbf16>
    %c0_9 = arith.constant 0 : index
    %c0_10 = arith.constant 0 : index
    %10 = vector.load %arg6[%c0_9, %c0_10] : memref<1x512xf32, #tpu.memory_space<vmem>>, vector<1x512xf32>
    %11 = arith.truncf %8 : vector<1x512xf32> to vector<1x512xbf16>
    %cst_11 = arith.constant dense<0.000000e+00> : vector<1x512xf32>
    %12 = tpu.matmul %11, %9, %cst_11 {dimension_numbers = #tpu.dot_dimension_numbers<[1], [0], [0], [1], [0, 0, 1, 1], [], []>} : vector<1x512xbf16>, vector<512x512xbf16>, vector<1x512xf32> -> vector<1x512xf32>
    %13 = arith.addf %12, %10 : vector<1x512xf32>
    %cst_12 = arith.constant 0.000000e+00 : f32
    %14 = vector.broadcast %cst_12 : f32 to vector<1x512xf32>
    %15 = arith.maximumf %13, %14 : vector<1x512xf32>
    %c0_13 = arith.constant 0 : index
    %c0_14 = arith.constant 0 : index
    %16 = vector.load %arg7[%c0_13, %c0_14] : memref<512x512xbf16, #tpu.memory_space<vmem>>, vector<512x512xbf16>
    %c0_15 = arith.constant 0 : index
    %c0_16 = arith.constant 0 : index
    %17 = vector.load %arg8[%c0_15, %c0_16] : memref<1x512xf32, #tpu.memory_space<vmem>>, vector<1x512xf32>
    %18 = arith.truncf %15 : vector<1x512xf32> to vector<1x512xbf16>
    %cst_17 = arith.constant dense<0.000000e+00> : vector<1x512xf32>
    %19 = tpu.matmul %18, %16, %cst_17 {dimension_numbers = #tpu.dot_dimension_numbers<[1], [0], [0], [1], [0, 0, 1, 1], [], []>} : vector<1x512xbf16>, vector<512x512xbf16>, vector<1x512xf32> -> vector<1x512xf32>
    %20 = arith.addf %19, %17 : vector<1x512xf32>
    %cst_18 = arith.constant 0.000000e+00 : f32
    %21 = vector.broadcast %cst_18 : f32 to vector<1x512xf32>
    %22 = arith.maximumf %20, %21 : vector<1x512xf32>
    %c0_19 = arith.constant 0 : index
    %c0_20 = arith.constant 0 : index
    %23 = vector.load %arg9[%c0_19, %c0_20] : memref<512x512xbf16, #tpu.memory_space<vmem>>, vector<512x512xbf16>
    %c0_21 = arith.constant 0 : index
    %c0_22 = arith.constant 0 : index
    %24 = vector.load %arg10[%c0_21, %c0_22] : memref<1x512xf32, #tpu.memory_space<vmem>>, vector<1x512xf32>
    %25 = arith.truncf %22 : vector<1x512xf32> to vector<1x512xbf16>
    %cst_23 = arith.constant dense<0.000000e+00> : vector<1x512xf32>
    %26 = tpu.matmul %25, %23, %cst_23 {dimension_numbers = #tpu.dot_dimension_numbers<[1], [0], [0], [1], [0, 0, 1, 1], [], []>} : vector<1x512xbf16>, vector<512x512xbf16>, vector<1x512xf32> -> vector<1x512xf32>
    %27 = arith.addf %26, %24 : vector<1x512xf32>
    %cst_24 = arith.constant 0.000000e+00 : f32
    %28 = vector.broadcast %cst_24 : f32 to vector<1x512xf32>
    %29 = arith.maximumf %27, %28 : vector<1x512xf32>
    %c0_25 = arith.constant 0 : index
    %c0_26 = arith.constant 0 : index
    %c0_27 = arith.constant 0 : index
    %30 = vector.load %arg11[%c0_25, %c0_26, %c0_27] : memref<1x512x512xbf16, #tpu.memory_space<vmem>>, vector<1x512x512xbf16>
    %31 = vector.shape_cast %30 : vector<1x512x512xbf16> to vector<512x512xbf16>
    %c0_28 = arith.constant 0 : index
    %c0_29 = arith.constant 0 : index
    %c0_30 = arith.constant 0 : index
    %32 = vector.load %arg12[%c0_28, %c0_29, %c0_30] : memref<1x1x512xf32, #tpu.memory_space<vmem>>, vector<1x1x512xf32>
    %33 = vector.shape_cast %32 : vector<1x1x512xf32> to vector<1x512xf32>
    %34 = arith.truncf %29 : vector<1x512xf32> to vector<1x512xbf16>
    %cst_31 = arith.constant dense<0.000000e+00> : vector<1x512xf32>
    %35 = tpu.matmul %34, %31, %cst_31 {dimension_numbers = #tpu.dot_dimension_numbers<[1], [0], [0], [1], [0, 0, 1, 1], [], []>} : vector<1x512xbf16>, vector<512x512xbf16>, vector<1x512xf32> -> vector<1x512xf32>
    %36 = arith.addf %35, %33 : vector<1x512xf32>
    %cst_32 = arith.constant 0.000000e+00 : f32
    %37 = vector.broadcast %cst_32 : f32 to vector<1x512xf32>
    %38 = arith.maximumf %36, %37 : vector<1x512xf32>
    %c0_33 = arith.constant 0 : index
    %c0_34 = arith.constant 0 : index
    %c0_35 = arith.constant 0 : index
    %39 = vector.load %arg13[%c0_33, %c0_34, %c0_35] : memref<1x512x512xbf16, #tpu.memory_space<vmem>>, vector<1x512x512xbf16>
    %40 = vector.shape_cast %39 : vector<1x512x512xbf16> to vector<512x512xbf16>
    %c0_36 = arith.constant 0 : index
    %c0_37 = arith.constant 0 : index
    %c0_38 = arith.constant 0 : index
    %41 = vector.load %arg14[%c0_36, %c0_37, %c0_38] : memref<1x1x512xf32, #tpu.memory_space<vmem>>, vector<1x1x512xf32>
    %42 = vector.shape_cast %41 : vector<1x1x512xf32> to vector<1x512xf32>
    %43 = arith.truncf %38 : vector<1x512xf32> to vector<1x512xbf16>
    %cst_39 = arith.constant dense<0.000000e+00> : vector<1x512xf32>
    %44 = tpu.matmul %43, %40, %cst_39 {dimension_numbers = #tpu.dot_dimension_numbers<[1], [0], [0], [1], [0, 0, 1, 1], [], []>} : vector<1x512xbf16>, vector<512x512xbf16>, vector<1x512xf32> -> vector<1x512xf32>
    %45 = arith.addf %44, %42 : vector<1x512xf32>
    %cst_40 = arith.constant 0.000000e+00 : f32
    %46 = vector.broadcast %cst_40 : f32 to vector<1x512xf32>
    %47 = arith.maximumf %45, %46 : vector<1x512xf32>
    %c0_41 = arith.constant 0 : index
    %c0_42 = arith.constant 0 : index
    %c0_43 = arith.constant 0 : index
    %48 = vector.load %arg15[%c0_41, %c0_42, %c0_43] : memref<1x512x512xbf16, #tpu.memory_space<vmem>>, vector<1x512x512xbf16>
    %49 = vector.shape_cast %48 : vector<1x512x512xbf16> to vector<512x512xbf16>
    %c0_44 = arith.constant 0 : index
    %c0_45 = arith.constant 0 : index
    %c0_46 = arith.constant 0 : index
    %50 = vector.load %arg16[%c0_44, %c0_45, %c0_46] : memref<1x1x512xf32, #tpu.memory_space<vmem>>, vector<1x1x512xf32>
    %51 = vector.shape_cast %50 : vector<1x1x512xf32> to vector<1x512xf32>
    %52 = arith.truncf %47 : vector<1x512xf32> to vector<1x512xbf16>
    %cst_47 = arith.constant dense<0.000000e+00> : vector<1x512xf32>
    %53 = tpu.matmul %52, %49, %cst_47 {dimension_numbers = #tpu.dot_dimension_numbers<[1], [0], [0], [1], [0, 0, 1, 1], [], []>} : vector<1x512xbf16>, vector<512x512xbf16>, vector<1x512xf32> -> vector<1x512xf32>
    %54 = arith.addf %53, %51 : vector<1x512xf32>
    %cst_48 = arith.constant 0.000000e+00 : f32
    %55 = vector.broadcast %cst_48 : f32 to vector<1x512xf32>
    %56 = arith.maximumf %54, %55 : vector<1x512xf32>
    %c0_49 = arith.constant 0 : index
    %c0_50 = arith.constant 0 : index
    %c0_51 = arith.constant 0 : index
    %57 = vector.load %arg17[%c0_49, %c0_50, %c0_51] : memref<1x512x64xbf16, #tpu.memory_space<vmem>>, vector<1x512x64xbf16>
    %58 = vector.shape_cast %57 : vector<1x512x64xbf16> to vector<512x64xbf16>
    %c0_52 = arith.constant 0 : index
    %c0_53 = arith.constant 0 : index
    %c0_54 = arith.constant 0 : index
    %59 = vector.load %arg18[%c0_52, %c0_53, %c0_54] : memref<1x1x64xf32, #tpu.memory_space<vmem>>, vector<1x1x64xf32>
    %60 = vector.shape_cast %59 : vector<1x1x64xf32> to vector<1x64xf32>
    %61 = arith.truncf %56 : vector<1x512xf32> to vector<1x512xbf16>
    %cst_55 = arith.constant dense<0.000000e+00> : vector<1x64xf32>
    %62 = tpu.matmul %61, %58, %cst_55 {dimension_numbers = #tpu.dot_dimension_numbers<[1], [0], [0], [1], [0, 0, 1, 1], [], []>} : vector<1x512xbf16>, vector<512x64xbf16>, vector<1x64xf32> -> vector<1x64xf32>
    %63 = arith.addf %62, %60 : vector<1x64xf32>
    %c0_56 = arith.constant 0 : index
    %c0_57 = arith.constant 0 : index
    %c0_58 = arith.constant 0 : index
    %64 = vector.load %arg19[%c0_56, %c0_57, %c0_58] : memref<1x1x64xf32, #tpu.memory_space<vmem>>, vector<1x1x64xf32>
    %65 = vector.shape_cast %64 : vector<1x1x64xf32> to vector<1x64xf32>
    %66 = vector.shape_cast %63 : vector<1x64xf32> to vector<1x1x64xf32>
    tpu.vector_store %arg19[%c0_56, %c0_57, %c0_58], %66 {strides = array<i32>} : memref<1x1x64xf32, #tpu.memory_space<vmem>>, vector<1x1x64xf32>,
    return
  }
  func.func @transform_0(%arg0: i32, %arg1: memref<2xi32, #tpu.memory_space<smem>>) -> (i32, i32, i32) {
    %c0_i32 = arith.constant 0 : i32
    %c0_i32_0 = arith.constant 0 : i32
    %c0_i32_1 = arith.constant 0 : i32
    return %arg0, %c0_i32, %c0_i32_0 : i32, i32, i32
  }
  func.func @transform_1(%arg0: i32, %arg1: memref<2xi32, #tpu.memory_space<smem>>) -> (i32, i32) {
    %c0_i32 = arith.constant 0 : i32
    %c0_i32_0 = arith.constant 0 : i32
    %c0_i32_1 = arith.constant 0 : i32
    return %c0_i32, %c0_i32_0 : i32, i32
  }
  func.func @transform_2(%arg0: i32, %arg1: memref<2xi32, #tpu.memory_space<smem>>) -> (i32, i32) {
    %c0_i32 = arith.constant 0 : i32
    %c0_i32_0 = arith.constant 0 : i32
    %c0_i32_1 = arith.constant 0 : i32
    return %c0_i32, %c0_i32_0 : i32, i32
  }
  func.func @transform_3(%arg0: i32, %arg1: memref<2xi32, #tpu.memory_space<smem>>) -> (i32, i32) {
    %c0_i32 = arith.constant 0 : i32
    %c0_i32_0 = arith.constant 0 : i32
    %c0_i32_1 = arith.constant 0 : i32
    return %c0_i32, %c0_i32_0 : i32, i32
  }
  func.func @transform_4(%arg0: i32, %arg1: memref<2xi32, #tpu.memory_space<smem>>) -> (i32, i32) {
    %c0_i32 = arith.constant 0 : i32
    %c0_i32_0 = arith.constant 0 : i32
    %c0_i32_1 = arith.constant 0 : i32
    return %c0_i32, %c0_i32_0 : i32, i32
  }
  func.func @transform_5(%arg0: i32, %arg1: memref<2xi32, #tpu.memory_space<smem>>) -> (i32, i32) {
    %c0_i32 = arith.constant 0 : i32
    %c0_i32_0 = arith.constant 0 : i32
    %c0_i32_1 = arith.constant 0 : i32
    return %c0_i32, %c0_i32_0 : i32, i32
  }
  func.func @transform_6(%arg0: i32, %arg1: memref<2xi32, #tpu.memory_space<smem>>) -> (i32, i32) {
    %c0_i32 = arith.constant 0 : i32
    %c0_i32_0 = arith.constant 0 : i32
    %c0_i32_1 = arith.constant 0 : i32
    return %c0_i32, %c0_i32_0 : i32, i32
  }
  func.func @transform_7(%arg0: i32, %arg1: memref<2xi32, #tpu.memory_space<smem>>) -> (i32, i32) {
    %c0_i32 = arith.constant 0 : i32
    %c0_i32_0 = arith.constant 0 : i32
    %c0_i32_1 = arith.constant 0 : i32
    return %c0_i32, %c0_i32_0 : i32, i32
  }
  func.func @transform_8(%arg0: i32, %arg1: memref<2xi32, #tpu.memory_space<smem>>) -> (i32, i32) {
    %c0_i32 = arith.constant 0 : i32
    %c0_i32_0 = arith.constant 0 : i32
    %c0_i32_1 = arith.constant 0 : i32
    return %c0_i32, %c0_i32_0 : i32, i32
  }
  func.func @transform_9(%arg0: i32, %arg1: memref<2xi32, #tpu.memory_space<smem>>) -> (i32, i32, i32) {
    %0 = arith.index_cast %arg0 : i32 to index
    %1 = memref.load %arg1[%0] : memref<2xi32, #tpu.memory_space<smem>>
    %c0_i32 = arith.constant 0 : i32
    %c0_i32_0 = arith.constant 0 : i32
    %c0_i32_1 = arith.constant 0 : i32
    return %1, %c0_i32, %c0_i32_0 : i32, i32, i32
  }
  func.func @transform_10(%arg0: i32, %arg1: memref<2xi32, #tpu.memory_space<smem>>) -> (i32, i32, i32) {
    %0 = arith.index_cast %arg0 : i32 to index
    %1 = memref.load %arg1[%0] : memref<2xi32, #tpu.memory_space<smem>>
    %c0_i32 = arith.constant 0 : i32
    %c0_i32_0 = arith.constant 0 : i32
    %c0_i32_1 = arith.constant 0 : i32
    return %1, %c0_i32, %c0_i32_0 : i32, i32, i32
  }
  func.func @transform_11(%arg0: i32, %arg1: memref<2xi32, #tpu.memory_space<smem>>) -> (i32, i32, i32) {
    %0 = arith.index_cast %arg0 : i32 to index
    %1 = memref.load %arg1[%0] : memref<2xi32, #tpu.memory_space<smem>>
    %c0_i32 = arith.constant 0 : i32
    %c0_i32_0 = arith.constant 0 : i32
    %c0_i32_1 = arith.constant 0 : i32
    return %1, %c0_i32, %c0_i32_0 : i32, i32, i32
  }
  func.func @transform_12(%arg0: i32, %arg1: memref<2xi32, #tpu.memory_space<smem>>) -> (i32, i32, i32) {
    %0 = arith.index_cast %arg0 : i32 to index
    %1 = memref.load %arg1[%0] : memref<2xi32, #tpu.memory_space<smem>>
    %c0_i32 = arith.constant 0 : i32
    %c0_i32_0 = arith.constant 0 : i32
    %c0_i32_1 = arith.constant 0 : i32
    return %1, %c0_i32, %c0_i32_0 : i32, i32, i32
  }
  func.func @transform_13(%arg0: i32, %arg1: memref<2xi32, #tpu.memory_space<smem>>) -> (i32, i32, i32) {
    %0 = arith.index_cast %arg0 : i32 to index
    %1 = memref.load %arg1[%0] : memref<2xi32, #tpu.memory_space<smem>>
    %c0_i32 = arith.constant 0 : i32
    %c0_i32_0 = arith.constant 0 : i32
    %c0_i32_1 = arith.constant 0 : i32
    return %1, %c0_i32, %c0_i32_0 : i32, i32, i32
  }
  func.func @transform_14(%arg0: i32, %arg1: memref<2xi32, #tpu.memory_space<smem>>) -> (i32, i32, i32) {
    %0 = arith.index_cast %arg0 : i32 to index
    %1 = memref.load %arg1[%0] : memref<2xi32, #tpu.memory_space<smem>>
    %c0_i32 = arith.constant 0 : i32
    %c0_i32_0 = arith.constant 0 : i32
    %c0_i32_1 = arith.constant 0 : i32
    return %1, %c0_i32, %c0_i32_0 : i32, i32, i32
  }
  func.func @transform_15(%arg0: i32, %arg1: memref<2xi32, #tpu.memory_space<smem>>) -> (i32, i32, i32) {
    %0 = arith.index_cast %arg0 : i32 to index
    %1 = memref.load %arg1[%0] : memref<2xi32, #tpu.memory_space<smem>>
    %c0_i32 = arith.constant 0 : i32
    %c0_i32_0 = arith.constant 0 : i32
    %c0_i32_1 = arith.constant 0 : i32
    return %1, %c0_i32, %c0_i32_0 : i32, i32, i32
  }
  func.func @transform_16(%arg0: i32, %arg1: memref<2xi32, #tpu.memory_space<smem>>) -> (i32, i32, i32) {
    %0 = arith.index_cast %arg0 : i32 to index
    %1 = memref.load %arg1[%0] : memref<2xi32, #tpu.memory_space<smem>>
    %c0_i32 = arith.constant 0 : i32
    %c0_i32_0 = arith.constant 0 : i32
    %c0_i32_1 = arith.constant 0 : i32
    return %1, %c0_i32, %c0_i32_0 : i32, i32, i32
  }
  func.func @transform_17(%arg0: i32, %arg1: memref<2xi32, #tpu.memory_space<smem>>) -> (i32, i32, i32) {
    %c0_i32 = arith.constant 0 : i32
    %c0_i32_0 = arith.constant 0 : i32
    %c0_i32_1 = arith.constant 0 : i32
    return %arg0, %c0_i32, %c0_i32_0 : i32, i32, i32
  }
}

</mosaic_0001>

<bundles_post_ra>
// kernel: mapping_network.1
= control target key start
LH: loop header
LB: loop body
LE: loop exit
PB: predicated region body
PF: predicated region fallthrough
CT: control target
= control target key end

     0   :  { %s12659_s0 = inlined_call_operand.hbm [shape: s32[2], index: 0, kind: input, shape index: {}]   ;;  %s12660_s1 = inlined_call_operand.hbm [shape: f32[2,1,16], index: 1, kind: input, shape index: {}]   ;;  %s12661_s2 = inlined_call_operand.hbm [shape: bf16[16,512], index: 2, kind: input, shape index: {}]   ;;  %s12662_s3 = inlined_call_operand.hbm [shape: f32[1,512], index: 3, kind: input, shape index: {}]   ;;  %s12663_s4 = inlined_call_operand.hbm [shape: bf16[512,512], index: 4, kind: input, shape index: {}]   ;;  %s12664_s5 = inlined_call_operand.hbm [shape: f32[1,512], index: 5, kind: input, shape index: {}]   ;;  %s12665_s6 = inlined_call_operand.hbm [shape: bf16[512,512], index: 6, kind: input, shape index: {}]   ;;  %s12666_s7 = inlined_call_operand.hbm [shape: f32[1,512], index: 7, kind: input, shape index: {}]   ;;  %s12667_s8 = inlined_call_operand.hbm [shape: bf16[512,512], index: 8, kind: input, shape index: {}]   ;;  %s12668_s9 = inlined_call_operand.hbm [shape: f32[1,512], index: 9, kind: input, shape index: {}]   ;;  %s12669_s10 = inlined_call_operand.hbm [shape: bf16[4,512,512], index: 10, kind: input, shape index: {}]   ;;  %s12670_s11 = inlined_call_operand.hbm [shape: f32[4,1,512], index: 11, kind: input, shape index: {}]   ;;  %s12671_s12 = inlined_call_operand.hbm [shape: bf16[4,512,512], index: 12, kind: input, shape index: {}]   ;;  %s12672_s13 = inlined_call_operand.hbm [shape: f32[4,1,512], index: 13, kind: input, shape index: {}]   ;;  %s12673_s14 = inlined_call_operand.hbm [shape: bf16[4,512,512], index: 14, kind: input, shape index: {}]   ;;  %s12674_s15 = inlined_call_operand.hbm [shape: f32[4,1,512], index: 15, kind: input, shape index: {}]   ;;  %s12675_s16 = inlined_call_operand.vmem [shape: bf16[4,512,64], index: 16, kind: input, shape index: {}]   ;;  %s12676_s17 = inlined_call_operand.hbm [shape: f32[4,1,64], index: 17, kind: input, shape index: {}]   ;;  %s12677_s18 = inlined_call_operand.hbm [shape: f32[2,1,64], index: 18, kind: output, shape index: {}]  }
   0x1   :  { %12748 = sst [smem:[#allocation87_spill]] %s12659_s0 }
   0x2   :  { %12749 = sst [smem:[#allocation88_spill]] %s12660_s1  ;;  %s12767_s29 = sld [smem:[#allocation87_spill]] }
   0x3   :  { %12750 = sst [smem:[#allocation89_spill]] %s12661_s2 }
   0x4   :  { %12751 = sst [smem:[#allocation90_spill]] %s12662_s3 }
   0x5   :  { %12752 = sst [smem:[#allocation91_spill]] %s12663_s4 }
   0x6   :  { %12753 = sst [smem:[#allocation92_spill]] %s12664_s5 }
   0x7   :  { %12754 = sst [smem:[#allocation93_spill]] %s12665_s6 }
   0x8   :  { %12755 = sst [smem:[#allocation94_spill]] %s12666_s7 }
   0x9   :  { %12756 = sst [smem:[#allocation95_spill]] %s12667_s8 }
   0xa   :  { %12757 = sst [smem:[#allocation96_spill]] %s12668_s9 }
   0xb   :  { %12758 = sst [smem:[#allocation97_spill]] %s12669_s10 }
   0xc   :  { %12759 = sst [smem:[#allocation98_spill]] %s12670_s11  ;;  %s10086_s11 = scalar_lea.hbm %s12767_s29, 16 }
   0xd   :  { %12760 = sst [smem:[#allocation99_spill]] %s12671_s12  ;;  %p10087_p0 = scmp.ne.s32.totalorder %s12767_s29, %s10086_s11 }
   0xe   :  { %12761 = sst [smem:[#allocation100_spill]] %s12672_s13  ;;  %p10090_p1 = scmp.lt.u32.totalorder %s10086_s11, %s12767_s29 }
   0xf   :  { %12762 = sst [smem:[#allocation101_spill]] %s12673_s14 }
  0x10   :  { %12763 = sst [smem:[#allocation102_spill]] %s12674_s15  ;;  %p10092_p2 = pnand %p10090_p1, %p10087_p0 }
  0x11   :  { %12764 = sst [smem:[#allocation103_spill]] %s12675_s16 }
  0x12   :  { %12765 = sst [smem:[#allocation104_spill]] %s12676_s17 }
  0x13   :  { %12766 = sst [smem:[#allocation105_spill]] %s12677_s18 }
  0x14   :  { %10095 = shalt.err (!%p10092_p2)  }
  0x15   :  { %s10842_s20 = smov [#allocation3]  }
  0x16   :  { %24 = dma.hbm_to_smem %s12767_s29, 16, %s10842_s20, [#allocation2] }
  0x17   :  { %10688 = dma.done.wait [#allocation2], 16 }
  0x18   :  { %10689 = vsyncadd [#allocation2], 4294967280 }
  0x19   :  { %26 = sfence }
  0x1a   :  { %27 = vsyncpa [#allocation5], 0 }
  0x1b   :  { %29 = vsyncpa [#allocation5 + $0x1], 0 }
  0x1c   :  { %30 = vsyncpa [#allocation8], 0 }
  0x1d   :  { %31 = vsyncpa [#allocation11], 0 }
  0x1e   :  { %32 = vsyncpa [#allocation14], 0 }
  0x1f   :  { %33 = vsyncpa [#allocation17], 0 }
  0x20   :  { %34 = vsyncpa [#allocation20], 0 }
  0x21   :  { %36 = vsyncpa [#allocation20 + $0x1], 0 }
  0x22   :  { %37 = vsyncpa [#allocation23], 0 }
  0x23   :  { %39 = vsyncpa [#allocation23 + $0x1], 0 }
  0x24   :  { %40 = vsyncpa [#allocation26], 0 }
  0x25   :  { %42 = vsyncpa [#allocation26 + $0x1], 0 }
  0x26   :  { %43 = vsyncpa [#allocation29], 0 }
  0x27   :  { %45 = vsyncpa [#allocation29 + $0x1], 0 }
  0x28   :  { %46 = vsyncpa [#allocation6], 0 }
  0x29   :  { %48 = vsyncpa [#allocation6 + $0x1], 0  ;;  %s10970_s11 = smov 0   ;;  %s10972_s2 = smov 0  }
  0x2a   :  { %s10974_s23 = smov 0   ;;  %s10976_s24 = smov 0  }
  0x2b   :  { %s10978_s25 = smov 0   ;;  %s10980_s26 = smov 0  }
  0x2c   :  { %s10982_s27 = smov 0   ;;  %s10984_s28 = smov 0  }
  0x2d   :  { %s10986_s29 = smov 0   ;;  %s10988_s30 = smov 0  }
  0x2e   :  { %s10990_s0 = smov 0   ;;  %s10992_s19 = smov 0  }
  0x2f   :  { %s10994_s1 = smov 0   ;;  %s10996_s20 = smov 0  }
  0x30   :  { %s10998_s21 = smov 0   ;;  %s11000_s22 = smov 0  }
  0x31   :  { %s11002_s18 = smov 0   ;;  %s11004_s16 = smov 0  }
  0x32   :  { %s11006_s17 = smov 0   ;;  %s11008_s15 = smov 0  }
  0x33   :  { %s11010_s13 = smov 0   ;;  %s11012_s9 = smov 0  }
  0x34   :  { %12768 = sst [smem:[#allocation59_spill]] %s11012_s9  ;;  %s11014_s7 = smov 0  }
  0x35   :  { %s11016_s14 = smov 0   ;;  %s11018_s5 = smov 0  }
  0x36 LB: > { %12770 = sst [smem:[#allocation60_spill]] %s10744_s11  ;;  %s12776_s9 = sld [smem:[#allocation59_spill]]  ;;  %s10840_s5 = sphi %s11018_s5, %s12976_s5   ;;  %s10836_s14 = sphi %s11016_s14, %s12975_s14   ;;  %s10832_s7 = sphi %s11014_s7, %s12974_s7   ;;  %s10824_s13 = sphi %s11010_s13, %s12959_s13   ;;  %s10820_s15 = sphi %s11008_s15, %s12972_s15   ;;  %s10816_s17 = sphi %s11006_s17, %s12971_s17   ;;  %s10812_s16 = sphi %s11004_s16, %s12970_s16   ;;  %s10808_s18 = sphi %s11002_s18, %s12969_s18   ;;  %s10804_s22 = sphi %s11000_s22, %s12954_s22   ;;  %s10800_s21 = sphi %s10998_s21, %s12953_s21   ;;  %s10796_s20 = sphi %s10996_s20, %s12968_s20   ;;  %s10792_s1 = sphi %s10994_s1, %s12967_s1   ;;  %s10788_s19 = sphi %s10992_s19, %s12951_s19   ;;  %s10784_s0 = sphi %s10990_s0, %s12950_s0   ;;  %s10780_s30 = sphi %s10988_s30, %s12949_s30   ;;  %s10776_s29 = sphi %s10986_s29, %s12948_s29   ;;  %s10772_s28 = sphi %s10984_s28, %s12963_s28   ;;  %s10768_s27 = sphi %s10982_s27, %s12961_s27   ;;  %s10764_s26 = sphi %s10980_s26, %s12946_s26   ;;  %s10760_s25 = sphi %s10978_s25, %s12945_s25   ;;  %s10756_s24 = sphi %s10976_s24, %s12944_s24   ;;  %s10752_s23 = sphi %s10974_s23, %s12957_s23   ;;  %s10748_s2 = sphi %s10972_s2, %s12943_s2   ;;  %s10744_s11 = sphi %s10970_s11, %s12942_s11  }
  0x37   : > { %12771 = sst [smem:[#allocation61_spill]] %s10748_s2  ;;  %s10843_s11 = smov [#allocation7]  }
  0x38   : > { %12772 = sst [smem:[#allocation62_spill]] %s10752_s23  ;;  %s515_s23 = sshll.u32 %s10843_s11, 4  ;;  %s11101_s23 = int_to_ptr.vmem [resolvable:$true] %s515_s23 }
  0x39   : > { %12773 = sst [smem:[#allocation63_spill]] %s10756_s24  ;;  %s11096_s2 = sadd.s32 4294967295, %s10840_s5  }
  0x3a   : > { %12774 = sst [smem:[#allocation64_spill]] %s10760_s25  ;;  %p7555_p3 = scmp.ge.s32.totalorder %s10840_s5, 1 }
  0x3b   : > { %12775 = sst [smem:[#allocation65_spill]] %s10764_s26  ;;  %p12706_p4 = scmp.eq.s32.totalorder %s11096_s2, 0 }
  0x3c   : > { %12777 = sst [smem:[#allocation59_spill]] %s10768_s27  ;;  %p503_p5 = scmp.lt.s32.totalorder %s10840_s5, 3 }
  0x3d   : > { %12778 = sst [smem:[#allocation66_spill]] %s10776_s29  ;;  %s10844_s26 = smov [#allocation10]  }
  0x3e   : > { %12779 = sst [smem:[#allocation67_spill]] %s10780_s30  ;;  %p11103_p6 = pnand %p7555_p3, %p503_p5 }
  0x3f   : > { %12780 = sst [smem:[#allocation68_spill]] %s10784_s0  ;;  %s539_s25 = sshll.u32 %s10844_s26, 4  ;;  %s11116_s25 = int_to_ptr.vmem [resolvable:$true] %s539_s25 }
  0x40   : > { %12781 = sst [smem:[#allocation69_spill]] %s10788_s19  ;;  %p8598_p8 = pneg %p11103_p6 }
  0x41   : > { %12782 = sst [smem:[#allocation70_spill]] %s10800_s21  ;;  %s10845_s30 = smov [#allocation13]  }
  0x42   : > { %12783 = sst [smem:[#allocation71_spill]] %s10804_s22  ;;  %p11112_p9 = pnand %p8598_p8, %p12706_p4 }
  0x43   : > { %12784 = sst [smem:[#allocation72_spill]] %s10808_s18  ;;  %s563_s19 = sshll.u32 %s10845_s30, 4  ;;  %s11118_s19 = int_to_ptr.vmem [resolvable:$true] %s563_s19 }
  0x44   : > { %12785 = sst [smem:[#allocation73_spill]] %s10812_s16  ;;  %s12793_s16 = sld [smem:[#allocation89_spill]] }
  0x45   : > { %12786 = sst [smem:[#allocation74_spill]] %s10824_s13  ;;  %p11128_p11 = pneg %p11112_p9 }
  0x46   : > { %12787 = sst [smem:[#allocation75_spill]] %s12776_s9 }
  0x47   : > { %12788 = sst [smem:[#allocation76_spill]] %s10832_s7 }
  0x48   : > { %12789 = sst [smem:[#allocation77_spill]] %s10836_s14 }
  0x49   : > { %s12790_s24 = scalar_select %p11103_p6, 1, 0 }
  0x4a   : > { %s12792_s11 = scalar_select %p11112_p9, 1, 0 }
  0x4b   : > { %12791 = sst [smem:[#allocation78_spill]] %s12790_s24  ;;  %s12794_s3 = smov %s12793_s16 }
  0x4c   : > { %s10096_s18 = scalar_lea.hbm %s12793_s16, 512 }
  0x4d   : > { %p10097_p10 = scmp.ne.s32.totalorder %s12794_s3, %s10096_s18  ;;  %p10103_p0 = scmp.lt.u32.totalorder %s10096_s18, %s12794_s3 }
  0x4e   : > { %s12795_s26 = scalar_select %p11128_p11, 1, 0 }
  0x4f   : > { %p10099_p12 = pnand %p11128_p11, %p10097_p10 }
  0x51   : > { %p10100_p13 = pneg %p10099_p12 }
  0x53   : > { %p10105_p1 = pnand %p10103_p0, %p10100_p13 }
  0x55   : > { %10108 = shalt.err (!%p10105_p1)
}
  0x56   : > { %s10109_s9 = scalar_lea.vmem %s11101_s23, 512  ;;  %p10117_p8 = scmp.lt.s32.totalorder %s11101_s23, %s11101_s23 }
  0x57   : > { %p10110_p2 = scmp.ne.s32.totalorder %s11101_s23, %s10109_s9  ;;  %p10118_p7 = scmp.lt.s32.totalorder %s10109_s9, %s10109_s9 }
  0x59   : > { %p10112_p3 = pnand %p10110_p2, %p11128_p11  ;;  %p10119_p10 = por %p10118_p7, %p10117_p8 }
  0x5b   : > { %p10113_p5 = pneg %p10112_p3 }
  0x5d   : > { %p10120_p12 = pnand %p10119_p10, %p10113_p5 }
  0x5f   : > { %10123 = shalt.err (!%p10120_p12)
}
  0x60   : > { %s12708_s16 = smov 256   ;;  %s12710_s7 = smov 16  }
  0x61   : > { %8601 = dma.hbm_to_vmem [thread:$0]  (!%p11112_p9), %s12794_s3, 512, %s11101_s23, [#allocation8], %s12708_s16, %s12708_s16, %s12710_s7  }
  0x62   : > { %s12796_s4 = sld [smem:[#allocation91_spill]] }
  0x68   : > { %s10124_s30 = scalar_lea.hbm %s12796_s4, 16384 }
  0x69   : > { %p10125_p7 = scmp.ne.s32.totalorder %s12796_s4, %s10124_s30  ;;  %p10131_p1 = scmp.lt.u32.totalorder %s10124_s30, %s12796_s4 }
  0x6b   : > { %p10127_p13 = pnand %p10125_p7, %p11128_p11 }
  0x6d   : > { %p10128_p0 = pneg %p10127_p13 }
  0x6f   : > { %p10133_p2 = pnand %p10131_p1, %p10128_p0 }
  0x71   : > { %10136 = shalt.err (!%p10133_p2)
}
  0x72   : > { %s10137_s23 = scalar_lea.vmem %s11116_s25, 16384  ;;  %p10145_p10 = scmp.lt.s32.totalorder %s11116_s25, %s11116_s25 }
  0x73   : > { %p10138_p3 = scmp.ne.s32.totalorder %s11116_s25, %s10137_s23  ;;  %p10146_p12 = scmp.lt.s32.totalorder %s10137_s23, %s10137_s23 }
  0x75   : > { %p10140_p5 = pnand %p10138_p3, %p11128_p11  ;;  %p10147_p7 = por %p10146_p12, %p10145_p10 }
  0x77   : > { %p10141_p8 = pneg %p10140_p5 }
  0x79   : > { %p10148_p13 = pnand %p10147_p7, %p10141_p8 }
  0x7b   : > { %10151 = shalt.err (!%p10148_p13)
}
  0x7c   : > { %8607 = dma.hbm_to_vmem [thread:$0]  (!%p11112_p9), %s12796_s4, 16384, %s11116_s25, [#allocation11], %s12708_s16, %s12708_s16, %s12710_s7  }
  0x7d   : > { %s12797_s6 = sld [smem:[#allocation93_spill]] }
  0x83   : > { %s10152_s24 = scalar_lea.hbm %s12797_s6, 16384 }
  0x84   : > { %p10153_p0 = scmp.ne.s32.totalorder %s12797_s6, %s10152_s24  ;;  %p10159_p3 = scmp.lt.u32.totalorder %s10152_s24, %s12797_s6 }
  0x86   : > { %p10155_p1 = pnand %p10153_p0, %p11128_p11 }
  0x88   : > { %p10156_p2 = pneg %p10155_p1 }
  0x8a   : > { %p10161_p5 = pnand %p10159_p3, %p10156_p2 }
  0x8c   : > { %10164 = shalt.err (!%p10161_p5)
}
  0x8d   : > { %s10165_s25 = scalar_lea.vmem %s11118_s19, 16384  ;;  %p10173_p7 = scmp.lt.s32.totalorder %s11118_s19, %s11118_s19 }
  0x8e   : > { %p10166_p8 = scmp.ne.s32.totalorder %s11118_s19, %s10165_s25  ;;  %p10174_p13 = scmp.lt.s32.totalorder %s10165_s25, %s10165_s25 }
  0x90   : > { %p10168_p10 = pnand %p10166_p8, %p11128_p11  ;;  %p10175_p0 = por %p10174_p13, %p10173_p7 }
  0x92   : > { %p10169_p12 = pneg %p10168_p10 }
  0x94   : > { %p10176_p1 = pnand %p10175_p0, %p10169_p12 }
  0x96   : > { %10179 = shalt.err (!%p10176_p1)
}
  0x97   : > { %8613 = dma.hbm_to_vmem [thread:$0]  (!%p11112_p9), %s12797_s6, 16384, %s11118_s19, [#allocation14], %s12708_s16, %s12708_s16, %s12710_s7  }
  0x98   : > { %s10848_s14 = smov [#allocation16]   ;;  %s12798_s8 = sld [smem:[#allocation95_spill]] }
  0x99   : > { %s587_s27 = sshll.u32 %s10848_s14, 4  ;;  %s588_s27 = int_to_ptr.vmem [resolvable:$true] %s587_s27 }
  0x9e   : > { %s10180_s0 = scalar_lea.hbm %s12798_s8, 16384 }
  0x9f   : > { %p10181_p2 = scmp.ne.s32.totalorder %s12798_s8, %s10180_s0  ;;  %p10187_p8 = scmp.lt.u32.totalorder %s10180_s0, %s12798_s8 }
  0xa1   : > { %p10183_p3 = pnand %p10181_p2, %p11128_p11 }
  0xa3   : > { %p10184_p5 = pneg %p10183_p3 }
  0xa5   : > { %p10189_p10 = pnand %p10187_p8, %p10184_p5 }
  0xa7   : > { %10192 = shalt.err (!%p10189_p10)
}
  0xa8   : > { %s10193_s19 = scalar_lea.vmem %s588_s27, 16384  ;;  %p10201_p0 = scmp.lt.s32.totalorder %s588_s27, %s588_s27 }
  0xa9   : > { %p10194_p12 = scmp.ne.s32.totalorder %s588_s27, %s10193_s19  ;;  %p10202_p1 = scmp.lt.s32.totalorder %s10193_s19, %s10193_s19 }
  0xab   : > { %p10196_p7 = pnand %p10194_p12, %p11128_p11  ;;  %p10203_p4 = por %p10202_p1, %p10201_p0 }
  0xad   : > { %p10197_p13 = pneg %p10196_p7 }
  0xaf   : > { %p10204_p6 = pnand %p10203_p4, %p10197_p13 }
  0xb1   : > { %10207 = shalt.err (!%p10204_p6)
}
  0xb2   : > { %8619 = dma.hbm_to_vmem [thread:$0]  (!%p11112_p9), %s12798_s8, 16384, %s588_s27, [#allocation17], %s12708_s16, %s12708_s16, %s12710_s7  }
  0xb3   : > { %s11226_s14 = sadd.s32 1, %s10840_s5   ;;  %p12713_p4 = scmp.eq.s32.totalorder %s10840_s5, 0 }
  0xb4   : > { %s252_s18 = sld [smem:[#allocation3 + %s10840_s5]]  ;;  %s257_s0 = sadd.s32 1, %s10824_s13 }
  0xb5   : > { %s253_s24 = sld [smem:[#allocation3 + %s11226_s14]]  ;;  %p264_p6 = scmp.ne.s32.totalorder %s10824_s13, %s10820_s15 }
  0xb6   : > { %p270_p2 = scmp.ne.s32.totalorder %s10820_s15, %s10816_s17  ;;  %p12714_p3 = scmp.lt.s32.totalorder %s10840_s5, 2 }
  0xb7   : > { %p266_p5 = por %p264_p6, %p12713_p4  ;;  %s11240_s22 = sand.u32 1, %s10840_s5  }
  0xb8   : > { %p12799_p8 = scmp.eq.s32.totalorder %s11096_s2, 0  ;;  %s631_s30 = sand.u32 1, %s10824_s13  }
  0xb9   : > { %p11251_p12 = pnand %p12714_p3, %p266_p5  ;;  %s7566_s25 = sshll.u32 %s631_s30, 10 }
  0xba   : > { %p11244_p10 = por %p270_p2, %p12799_p8  ;;  %s633_s7 = scalar_lea.vmem [#allocation19], %s7566_s25 }
  0xbb   : > { %s254_s17 = ssub.s32 %s252_s18, %s253_s24  ;;  %s641_s3 = sshll.u32 %s633_s7, 4  ;;  %s11263_s3 = int_to_ptr.vmem [resolvable:$true] %s641_s3 }
  0xbc   : > { %s12800_s27 = scalar_select %p11244_p10, 1, 0 }
  0xbd   : > { %p255_p7 = scmp.eq.s32.totalorder %s254_s17, 0  ;;  %s11266_s18 = sld [smem:[#allocation3 + %s10840_s5]] }
  0xbe   : > { %s8551_s19 = scalar_select %p266_p5, [#allocation3], [#allocation31] }
  0xbf   : > { %s11256_s23 = scalar_select %p255_p7, %s10824_s13, %s257_s0  }
  0xc0   : > { %s8552_s16 = scalar_select %p266_p5, %s10840_s5, 0 }
  0xc1   : > { %12802 = sst [smem:[#allocation79_spill]] %s11256_s23  ;;  %s12978_s19 = smov (!%p12714_p3, %s8551_s19), [#allocation38] }
  0xc2   : > { %s12980_s16 = smov (!%p12714_p3, %s8552_s16), 0  ;;  %s11269_s24 = sld [smem:[#allocation3 + %s11226_s14]] }
  0xc3   : > { %s634_s4 = sld [smem:[%s12978_s19 + %s12980_s16]]  ;;  %p320_p13 = scmp.ne.s32.totalorder %s10800_s21, %s10796_s20 }
  0xc4   : > { %s12803_s10 = sld [smem:[#allocation97_spill]]  ;;  %s12720_s7 = scalar_lea.sflag [#allocation20], %s11240_s22 }
  0xc5   : > { %p11283_p1 = por %p320_p13, %p12713_p4  ;;  %p10210_p2 = pneg %p11251_p12 }
  0xc9   : > { %s8411_s0 = sshll.u32 %s634_s4, 14 }
  0xca   : > { %s11279_s6 = scalar_lea.hbm %s12803_s10, %s8411_s0  ;;  %s10213_s0 = scalar_lea.hbm %s12803_s10, 65536 }
  0xcb   : > { %s10208_s25 = scalar_lea.hbm %s11279_s6, 16384  ;;  %p10214_p7 = scmp.lt.u32.totalorder %s11279_s6, %s12803_s10 }
  0xcc   : > { %p10209_p6 = scmp.ne.s32.totalorder %s11279_s6, %s10208_s25  ;;  %p10215_p13 = scmp.lt.u32.totalorder %s10213_s0, %s10208_s25 }
  0xcd   : > { %p10217_p3 = scmp.lt.u32.totalorder %s10208_s25, %s11279_s6 }
  0xce   : > { %p10211_p5 = pnand %p10210_p2, %p10209_p6  ;;  %p10216_p4 = por %p10215_p13, %p10214_p7 }
  0xd0   : > { %p10212_p8 = pneg %p10211_p5  ;;  %p10218_p0 = por %p10217_p3, %p10216_p4 }
  0xd2   : > { %p10219_p10 = pnand %p10218_p0, %p10212_p8 }
  0xd4   : > { %10222 = shalt.err (!%p10219_p10)
}
  0xd5   : > { %s10223_s30 = scalar_lea.vmem %s11263_s3, 16384  ;;  %s10849_s4 = smov [#allocation19]  }
  0xd6   : > { %p10224_p6 = scmp.ne.s32.totalorder %s11263_s3, %s10223_s30  ;;  %s10228_s19 = sshll.u32 %s10849_s4, 4  ;;  %s10229_s19 = int_to_ptr.vmem [resolvable:$false] %s10228_s19 }
  0xd7   : > { %s10230_s17 = scalar_lea.vmem %s10229_s19, 32768  ;;  %p10231_p11 = scmp.lt.s32.totalorder %s11263_s3, %s10229_s19 }
  0xd8   : > { %p10226_p5 = pnand %p10224_p6, %p10210_p2  ;;  %p10232_p7 = scmp.lt.s32.totalorder %s10230_s17, %s10223_s30 }
  0xda   : > { %p10227_p9 = pneg %p10226_p5  ;;  %p10233_p13 = por %p10232_p7, %p10231_p11 }
  0xdc   : > { %p10234_p4 = pnand %p10233_p13, %p10227_p9 }
  0xde   : > { %10237 = shalt.err (!%p10234_p4)
}
  0xdf   : > { %s12805_s25 = smov 16   ;;  %s12806_s0 = smov 256  }
  0xe0   : > { %8631 = dma.hbm_to_vmem [thread:$0]  (!%p11251_p12), %s11279_s6, 16384, %s11263_s3, %s12720_s7, %s12806_s0, %s12806_s0, %s12805_s25  }
  0xe1   : > { %p12807_p9 = scmp.eq.s32.totalorder %s11096_s2, 0  ;;  %p12808_p11 = scmp.ne.s32.totalorder %s10796_s20, %s10792_s1 }
  0xe2   : > { %s310_s30 = ssub.s32 %s11266_s18, %s11269_s24  ;;  %s673_s23 = sand.u32 1, %s10800_s21  }
  0xe3   : > { %p11323_p3 = por %p12808_p11, %p12807_p9  ;;  %p311_p10 = scmp.eq.s32.totalorder %s310_s30, 0 }
  0xe4   : > { %s7572_s4 = sshll.u32 %s673_s23, 10  ;;  %p12811_p0 = scmp.lt.s32.totalorder %s10840_s5, 2 }
  0xe5   : > { %s12809_s9 = scalar_select %p11323_p3, 1, 0 }
  0xe6   : > { %s12812_s19 = sld [smem:[#allocation59_spill]]  ;;  %p11334_p12 = pnand %p12811_p0, %p11283_p1 }
  0xe7   : > { %12810 = sst [smem:[#allocation80_spill]] %s12809_s9  ;;  %s12814_s6 = sadd.s32 1, %s10800_s21 }
  0xe8   : > { %s11341_s1 = scalar_select %p311_p10, %s10800_s21, %s12814_s6  }
  0xe9   : > { %s8557_s18 = scalar_select %p11283_p1, [#allocation3], [#allocation33] }
  0xea   : > { %12815 = sst [smem:[#allocation59_spill]] %s11341_s1  ;;  %p12816_p2 = pmov %p12811_p0 }
  0xeb   : > { %s8558_s24 = scalar_select %p11283_p1, %s10840_s5, 0 }
  0xec   : > { %s12982_s18 = smov (!%p12816_p2, %s8557_s18), [#allocation40]  ;;  %p12817_p8 = pmov %p12811_p0 }
  0xed   : > { %s675_s17 = scalar_lea.vmem [#allocation22], %s7572_s4  ;;  %s11355_s7 = sld [smem:[#allocation3 + %s10840_s5]] }
  0xee   : > { %s12984_s24 = smov (!%p12817_p8, %s8558_s24), 0  ;;  %s683_s30 = sshll.u32 %s675_s17, 4  ;;  %s11352_s30 = int_to_ptr.vmem [resolvable:$true] %s683_s30 }
  0xef   : > { %s676_s23 = sld [smem:[%s12982_s18 + %s12984_s24]]  ;;  %s369_s8 = sadd.s32 1, %s10776_s29 }
  0xf0   : > { %s11358_s6 = sld [smem:[#allocation3 + %s11226_s14]]  ;;  %p376_p6 = scmp.ne.s32.totalorder %s10776_s29, %s10772_s28 }
  0xf1   : > { %s12818_s13 = sld [smem:[#allocation99_spill]]  ;;  %p12820_p1 = scmp.eq.s32.totalorder %s10840_s5, 0 }
  0xf2   : > { %s12725_s18 = scalar_lea.sflag [#allocation23], %s11240_s22  ;;  %p10240_p4 = pneg %p11334_p12 }
  0xf3   : > { %p11372_p7 = por %p376_p6, %p12820_p1 }
  0xf5   : > { %s8413_s16 = sshll.u32 %s676_s23, 14 }
  0xf7   : > { %s12819_s9 = smov %s12818_s13  ;;  %s11368_s1 = scalar_lea.hbm %s12818_s13, %s8413_s16 }
  0xf8   : > { %s10238_s24 = scalar_lea.hbm %s11368_s1, 16384  ;;  %s10243_s12 = scalar_lea.hbm %s12819_s9, 65536 }
  0xf9   : > { %p10239_p13 = scmp.ne.s32.totalorder %s11368_s1, %s10238_s24  ;;  %p10244_p10 = scmp.lt.u32.totalorder %s11368_s1, %s12819_s9 }
  0xfa   : > { %p10245_p0 = scmp.lt.u32.totalorder %s10243_s12, %s10238_s24  ;;  %p10247_p8 = scmp.lt.u32.totalorder %s10238_s24, %s11368_s1 }
  0xfb   : > { %p10241_p9 = pnand %p10240_p4, %p10239_p13 }
  0xfc   : > { %p10246_p2 = por %p10245_p0, %p10244_p10 }
  0xfd   : > { %p10242_p11 = pneg %p10241_p9 }
  0xfe   : > { %p10248_p6 = por %p10247_p8, %p10246_p2 }
 0x100   : > { %p10249_p1 = pnand %p10248_p6, %p10242_p11 }
 0x102   : > { %10252 = shalt.err (!%p10249_p1)
}
 0x103   : > { %s10253_s16 = scalar_lea.vmem %s11352_s30, 16384  ;;  %s10850_s10 = smov [#allocation22]  }
 0x104   : > { %p10254_p13 = scmp.ne.s32.totalorder %s11352_s30, %s10253_s16  ;;  %s10258_s13 = sshll.u32 %s10850_s10, 4  ;;  %s10259_s13 = int_to_ptr.vmem [resolvable:$false] %s10258_s13 }
 0x105   : > { %s10260_s17 = scalar_lea.vmem %s10259_s13, 32768  ;;  %p10261_p3 = scmp.lt.s32.totalorder %s11352_s30, %s10259_s13 }
 0x106   : > { %p10256_p9 = pnand %p10254_p13, %p10240_p4  ;;  %p10262_p10 = scmp.lt.s32.totalorder %s10260_s17, %s10253_s16 }
 0x108   : > { %p10257_p5 = pneg %p10256_p9  ;;  %p10263_p0 = por %p10262_p10, %p10261_p3 }
 0x10a   : > { %p10264_p2 = pnand %p10263_p0, %p10257_p5 }
 0x10c   : > { %10267 = shalt.err (!%p10264_p2)
}
 0x10d   : > { %8641 = dma.hbm_to_vmem [thread:$0]  (!%p11334_p12), %s11368_s1, 16384, %s11352_s30, %s12725_s18, %s12806_s0, %s12806_s0, %s12805_s25  }
 0x10e   : > { %p12822_p3 = scmp.eq.s32.totalorder %s11096_s2, 0  ;;  %p12823_p5 = scmp.ne.s32.totalorder %s10772_s28, %s12812_s19 }
 0x10f   : > { %s366_s24 = ssub.s32 %s11355_s7, %s11358_s6  ;;  %s715_s12 = sand.u32 1, %s10776_s29  }
 0x110   : > { %p11412_p4 = por %p12823_p5, %p12822_p3  ;;  %p367_p11 = scmp.eq.s32.totalorder %s366_s24, 0 }
 0x111   : > { %s7578_s23 = sshll.u32 %s715_s12, 10  ;;  %p12825_p8 = scmp.lt.s32.totalorder %s10840_s5, 2 }
 0x112   : > { %s12824_s3 = scalar_select %p11412_p4, 1, 0 }
 0x113   : > { %p11423_p6 = pnand %p12825_p8, %p11372_p7  ;;  %p12828_p12 = pmov %p12825_p8 }
 0x114   : > { %s11430_s10 = scalar_select %p367_p11, %s10776_s29, %s369_s8  }
 0x115   : > { %s8563_s1 = scalar_select %p11372_p7, [#allocation3], [#allocation35] }
 0x116   : > { %12827 = sst [smem:[#allocation81_spill]] %s11430_s10  ;;  %p12829_p1 = pmov %p12825_p8 }
 0x117   : > { %s8564_s19 = scalar_select %p11372_p7, %s10840_s5, 0 }
 0x118   : > { %s12986_s1 = smov (!%p12828_p12, %s8563_s1), [#allocation42]  ;;  %s717_s7 = scalar_lea.vmem [#allocation25], %s7578_s23 }
 0x119   : > { %s12988_s19 = smov (!%p12829_p1, %s8564_s19), 0  ;;  %s725_s30 = sshll.u32 %s717_s7, 4  ;;  %s11443_s30 = int_to_ptr.vmem [resolvable:$true] %s725_s30 }
 0x11a   : > { %s11441_s6 = sld [smem:[%s12986_s1 + %s12988_s19]]  ;;  %s10851_s13 = smov [#allocation9]  }
 0x11b   : > { %s529_s17 = sshll.u32 %s10851_s13, 4  ;;  %s10852_s24 = smov [#allocation12]   ;;  %s530_s17 = int_to_ptr.vmem [resolvable:$true] %s529_s17 }
 0x11c   : > { %s553_s8 = sshll.u32 %s10852_s24, 4  ;;  %s12830_s18 = sld [smem:[#allocation90_spill]]  ;;  %s11445_s8 = int_to_ptr.vmem [resolvable:$true] %s553_s8 }
 0x11d   : > { %p12832_p13 = scmp.ne.s32.totalorder %s12795_s26, 0 }
 0x122   : > { %s12831_s9 = smov %s12830_s18  ;;  %s10268_s21 = scalar_lea.hbm %s12830_s18, 64 }
 0x123   : > { %p10269_p7 = scmp.ne.s32.totalorder %s12831_s9, %s10268_s21  ;;  %p10275_p0 = scmp.lt.u32.totalorder %s10268_s21, %s12831_s9 }
 0x125   : > { %p10271_p9 = pnand %p10269_p7, %p12832_p13 }
 0x127   : > { %p10272_p10 = pneg %p10271_p9 }
 0x129   : > { %p10277_p2 = pnand %p10275_p0, %p10272_p10 }
 0x12b   : > { %10280 = shalt.err (!%p10277_p2)
}
 0x12c   : > { %s10281_s19 = scalar_lea.vmem %s530_s17, 64  ;;  %p10289_p8 = scmp.lt.s32.totalorder %s530_s17, %s530_s17 }
 0x12d   : > { %p10282_p3 = scmp.ne.s32.totalorder %s530_s17, %s10281_s19  ;;  %p10290_p12 = scmp.lt.s32.totalorder %s10281_s19, %s10281_s19 }
 0x12f   : > { %p10284_p5 = pnand %p10282_p3, %p12832_p13  ;;  %p10291_p1 = por %p10290_p12, %p10289_p8 }
 0x131   : > { %p10285_p11 = pneg %p10284_p5 }
 0x133   : > { %p10292_p4 = pnand %p10291_p1, %p10285_p11 }
 0x135   : > { %10295 = shalt.err (!%p10292_p4)
}
 0x136   : > { %p12833_p7 = scmp.ne.s32.totalorder %s12792_s11, 0  ;;  %s12834_s7 = sld [smem:[#allocation92_spill]] }
 0x138   : > { %8604 = dma.hbm_to_vmem [thread:$0]  (!%p12833_p7), %s12831_s9, 64, %s530_s17, [#allocation8]  }
 0x13c   : > { %s12835_s4 = smov %s12834_s7  ;;  %s10296_s13 = scalar_lea.hbm %s12834_s7, 64 }
 0x13d   : > { %p10297_p9 = scmp.ne.s32.totalorder %s12835_s4, %s10296_s13  ;;  %p10303_p4 = scmp.lt.u32.totalorder %s10296_s13, %s12835_s4 }
 0x13f   : > { %p10299_p10 = pnand %p10297_p9, %p12832_p13 }
 0x141   : > { %p10300_p0 = pneg %p10299_p10 }
 0x143   : > { %p10305_p2 = pnand %p10303_p4, %p10300_p0 }
 0x145   : > { %10308 = shalt.err (!%p10305_p2)
}
 0x146   : > { %s10309_s17 = scalar_lea.vmem %s11445_s8, 64  ;;  %p10317_p8 = scmp.lt.s32.totalorder %s11445_s8, %s11445_s8 }
 0x147   : > { %p10310_p3 = scmp.ne.s32.totalorder %s11445_s8, %s10309_s17  ;;  %p10318_p12 = scmp.lt.s32.totalorder %s10309_s17, %s10309_s17 }
 0x149   : > { %p10312_p5 = pnand %p10310_p3, %p12832_p13  ;;  %p10319_p1 = por %p10318_p12, %p10317_p8 }
 0x14b   : > { %p10313_p11 = pneg %p10312_p5 }
 0x14d   : > { %p10320_p9 = pnand %p10319_p1, %p10313_p11 }
 0x14f   : > { %10323 = shalt.err (!%p10320_p9)
}
 0x150   : > { %8610 = dma.hbm_to_vmem [thread:$0]  (!%p12833_p7), %s12835_s4, 64, %s11445_s8, [#allocation11]  }
 0x151   : > { %s8415_s18 = sshll.u32 %s11441_s6, 14  ;;  %s12836_s7 = sld [smem:[#allocation101_spill]] }
 0x152   : > { %s10853_s24 = smov [#allocation15]   ;;  %s12732_s1 = scalar_lea.sflag [#allocation26], %s11240_s22 }
 0x153   : > { %s11494_s23 = sshll.u32 %s10853_s24, 4  ;;  %p10326_p0 = pneg %p11423_p6  ;;  %s578_s23 = int_to_ptr.vmem [resolvable:$true] %s11494_s23 }
 0x157   : > { %s12837_s12 = smov %s12836_s7  ;;  %s11492_s13 = scalar_lea.hbm %s12836_s7, %s8415_s18 }
 0x158   : > { %s10324_s17 = scalar_lea.hbm %s11492_s13, 16384  ;;  %s10329_s19 = scalar_lea.hbm %s12837_s12, 65536 }
 0x159   : > { %p10325_p10 = scmp.ne.s32.totalorder %s11492_s13, %s10324_s17  ;;  %p10330_p3 = scmp.lt.u32.totalorder %s11492_s13, %s12837_s12 }
 0x15a   : > { %p10331_p5 = scmp.lt.u32.totalorder %s10329_s19, %s10324_s17  ;;  %p10333_p8 = scmp.lt.u32.totalorder %s10324_s17, %s11492_s13 }
 0x15b   : > { %p10327_p4 = pnand %p10326_p0, %p10325_p10 }
 0x15c   : > { %p10332_p11 = por %p10331_p5, %p10330_p3 }
 0x15d   : > { %p10328_p2 = pneg %p10327_p4 }
 0x15e   : > { %p10334_p12 = por %p10333_p8, %p10332_p11 }
 0x160   : > { %p10335_p1 = pnand %p10334_p12, %p10328_p2 }
 0x162   : > { %10338 = shalt.err (!%p10335_p1)
}
 0x163   : > { %s10339_s21 = scalar_lea.vmem %s11443_s30, 16384  ;;  %s10854_s10 = smov [#allocation25]  }
 0x164   : > { %p10340_p9 = scmp.ne.s32.totalorder %s11443_s30, %s10339_s21  ;;  %s10344_s7 = sshll.u32 %s10854_s10, 4  ;;  %s10345_s7 = int_to_ptr.vmem [resolvable:$false] %s10344_s7 }
 0x165   : > { %s10346_s24 = scalar_lea.vmem %s10345_s7, 32768  ;;  %p10347_p7 = scmp.lt.s32.totalorder %s11443_s30, %s10345_s7 }
 0x166   : > { %p10342_p10 = pnand %p10340_p9, %p10326_p0  ;;  %p10348_p3 = scmp.lt.s32.totalorder %s10346_s24, %s10339_s21 }
 0x168   : > { %p10343_p4 = pneg %p10342_p10  ;;  %p10349_p5 = por %p10348_p3, %p10347_p7 }
 0x16a   : > { %p10350_p11 = pnand %p10349_p5, %p10343_p4 }
 0x16c   : > { %10353 = shalt.err (!%p10350_p11)
}
 0x16d   : > { %8651 = dma.hbm_to_vmem [thread:$0]  (!%p11423_p6), %s11492_s13, 16384, %s11443_s30, %s12732_s1, %s12806_s0, %s12806_s0, %s12805_s25  }
 0x16e   : > { %s12838_s8 = sld [smem:[#allocation94_spill]] }
 0x174   : > { %s10354_s19 = scalar_lea.hbm %s12838_s8, 64 }
 0x175   : > { %p10355_p7 = scmp.ne.s32.totalorder %s12838_s8, %s10354_s19  ;;  %p10361_p8 = scmp.lt.u32.totalorder %s10354_s19, %s12838_s8 }
 0x177   : > { %p10357_p0 = pnand %p10355_p7, %p12832_p13 }
 0x179   : > { %p10358_p2 = pneg %p10357_p0 }
 0x17b   : > { %p10363_p12 = pnand %p10361_p8, %p10358_p2 }
 0x17d   : > { %10366 = shalt.err (!%p10363_p12)
}
 0x17e   : > { %s10367_s10 = scalar_lea.vmem %s578_s23, 64  ;;  %p10375_p10 = scmp.lt.s32.totalorder %s578_s23, %s578_s23 }
 0x17f   : > { %p10368_p6 = scmp.ne.s32.totalorder %s578_s23, %s10367_s10  ;;  %p10376_p4 = scmp.lt.s32.totalorder %s10367_s10, %s10367_s10 }
 0x181   : > { %p10370_p1 = pnand %p10368_p6, %p12832_p13  ;;  %p10377_p3 = por %p10376_p4, %p10375_p10 }
 0x183   : > { %p10371_p9 = pneg %p10370_p1 }
 0x185   : > { %p10378_p5 = pnand %p10377_p3, %p10371_p9 }
 0x187   : > { %10381 = shalt.err (!%p10378_p5)
}
 0x188   : > { %p12839_p11 = scmp.ne.s32.totalorder %s12792_s11, 0  ;;  %s10855_s30 = smov [#allocation18]  }
 0x189   : > { %s601_s13 = sshll.u32 %s10855_s30, 4  ;;  %s12840_s17 = sld [smem:[#allocation96_spill]]  ;;  %s602_s13 = int_to_ptr.vmem [resolvable:$true] %s601_s13 }
 0x18a   : > { %8616 = dma.hbm_to_vmem [thread:$0]  (!%p12839_p11), %s12838_s8, 64, %s578_s23, [#allocation14]  }
 0x18f   : > { %s12841_s6 = smov %s12840_s17  ;;  %s10382_s19 = scalar_lea.hbm %s12840_s17, 64 }
 0x190   : > { %p10383_p7 = scmp.ne.s32.totalorder %s12841_s6, %s10382_s19  ;;  %p10389_p8 = scmp.lt.u32.totalorder %s10382_s19, %s12841_s6 }
 0x192   : > { %p10385_p0 = pnand %p10383_p7, %p12832_p13 }
 0x194   : > { %p10386_p2 = pneg %p10385_p0 }
 0x196   : > { %p10391_p12 = pnand %p10389_p8, %p10386_p2 }
 0x198   : > { %10394 = shalt.err (!%p10391_p12)
}
 0x199   : > { %s10395_s23 = scalar_lea.vmem %s602_s13, 64  ;;  %p10403_p10 = scmp.lt.s32.totalorder %s602_s13, %s602_s13 }
 0x19a   : > { %p10396_p6 = scmp.ne.s32.totalorder %s602_s13, %s10395_s23  ;;  %p10404_p4 = scmp.lt.s32.totalorder %s10395_s23, %s10395_s23 }
 0x19c   : > { %p10398_p1 = pnand %p10396_p6, %p12832_p13  ;;  %p10405_p3 = por %p10404_p4, %p10403_p10 }
 0x19e   : > { %p10399_p9 = pneg %p10398_p1 }
 0x1a0   : > { %p10406_p5 = pnand %p10405_p3, %p10399_p9 }
 0x1a2   : > { %10409 = shalt.err (!%p10406_p5)
}
 0x1a3   : > { %s12842_s0 = sld [smem:[#allocation77_spill]]  ;;  %s12843_s30 = sld [smem:[#allocation76_spill]] }
 0x1a4   : > { %s12844_s7 = sld [smem:[#allocation75_spill]]  ;;  %s7554_s26 = sadd.s32 4294967294, %s10840_s5  }
 0x1a5   : > { %8622 = dma.hbm_to_vmem [thread:$0]  (!%p12839_p11), %s12841_s6, 64, %s602_s13, [#allocation17]  }
 0x1a6   : > { %s58_s11 = ssub.s32 %s10840_s5, %s11226_s14  ;;  %p12846_p2 = scmp.eq.s32.totalorder %s10840_s5, 0 }
 0x1a7   : > { %p59_p13 = scmp.eq.s32.totalorder %s58_s11, 0  ;;  %p12847_p12 = scmp.eq.s32.totalorder %s11096_s2, 0 }
 0x1a8   : > { %p490_p1 = scmp.eq.s32.totalorder %s11096_s2, 1  ;;  %p496_p9 = scmp.eq.s32.totalorder %s7554_s26, 1 }
 0x1a9   : > { %s61_s24 = sadd.s32 1, %s12842_s0  ;;  %p68_p7 = scmp.ne.s32.totalorder %s12842_s0, %s12843_s30 }
 0x1aa   : > { %p74_p0 = scmp.ne.s32.totalorder %s12843_s30, %s12844_s7  ;;  %s612_s29 = sand.u32 1, %s12842_s0  }
 0x1ab   : > { %s11573_s17 = scalar_select %p59_p13, %s12842_s0, %s61_s24  }
 0x1ac   : > { %p70_p8 = por %p12846_p2, %p68_p7  ;;  %p11579_p6 = por %p12847_p12, %p74_p0 }
 0x1ad   : > { %12845 = sst [smem:[#allocation82_spill]] %s11573_s17  ;;  %s7565_s13 = sshll.u32 %s10840_s5, 4 }
 0x1ae   : > { %s12848_s19 = scalar_select %p11579_p6, 1, 0 }
 0x1af   : > { %p11586_p11 = por %p490_p1, %p68_p7  ;;  %p11590_p10 = por %p496_p9, %p74_p0 }
 0x1b0   : > { %s12852_s10 = sld [smem:[#allocation88_spill]]  ;;  %s615_s30 = scalar_lea.vmem [#allocation4], %s612_s29 }
 0x1b1   : > { %s12849_s18 = scalar_select %p11586_p11, 1, 0 }
 0x1b2   : > { %s12850_s16 = scalar_select %p11590_p10, 1, 0 }
 0x1b3   : > { %s622_s0 = sshll.u32 %s615_s30, 4  ;;  %p12853_p4 = scmp.lt.s32.totalorder %s10840_s5, 2  ;;  %s11599_s0 = int_to_ptr.vmem [resolvable:$true] %s622_s0 }
 0x1b4   : > { %12851 = sst [smem:[#allocation83_spill]] %s12850_s16  ;;  %s613_s26 = scalar_lea.sflag [#allocation5], %s612_s29 }
 0x1b5   : > { %p11603_p3 = pnand %p12853_p4, %p70_p8 }
 0x1b6   : > { %s11597_s25 = scalar_lea.hbm %s12852_s10, %s7565_s13  ;;  %s10415_s21 = scalar_lea.hbm %s12852_s10, 32 }
 0x1b7   : > { %s10410_s11 = scalar_lea.hbm %s11597_s25, 16  ;;  %p10412_p13 = pneg %p11603_p3 }
 0x1b8   : > { %p10411_p5 = scmp.ne.s32.totalorder %s11597_s25, %s10410_s11  ;;  %p10416_p2 = scmp.lt.u32.totalorder %s11597_s25, %s12852_s10 }
 0x1b9   : > { %p10417_p8 = scmp.lt.u32.totalorder %s10415_s21, %s10410_s11  ;;  %p10419_p1 = scmp.lt.u32.totalorder %s10410_s11, %s11597_s25 }
 0x1ba   : > { %p10413_p7 = pnand %p10412_p13, %p10411_p5 }
 0x1bb   : > { %p10418_p12 = por %p10417_p8, %p10416_p2 }
 0x1bc   : > { %p10414_p0 = pneg %p10413_p7 }
 0x1bd   : > { %p10420_p9 = por %p10419_p1, %p10418_p12 }
 0x1bf   : > { %p10421_p4 = pnand %p10420_p9, %p10414_p0 }
 0x1c1   : > { %10424 = shalt.err (!%p10421_p4)
}
 0x1c2   : > { %s10425_s29 = scalar_lea.vmem %s11599_s0, 16  ;;  %s10856_s24 = smov [#allocation4]  }
 0x1c3   : > { %p10426_p5 = scmp.ne.s32.totalorder %s11599_s0, %s10425_s29  ;;  %s10430_s13 = sshll.u32 %s10856_s24, 4  ;;  %s10431_s13 = int_to_ptr.vmem [resolvable:$false] %s10430_s13 }
 0x1c4   : > { %s10432_s23 = scalar_lea.vmem %s10431_s13, 32  ;;  %p10433_p11 = scmp.lt.s32.totalorder %s11599_s0, %s10431_s13 }
 0x1c5   : > { %p10428_p7 = pnand %p10426_p5, %p10412_p13  ;;  %p10434_p2 = scmp.lt.s32.totalorder %s10432_s23, %s10425_s29 }
 0x1c7   : > { %p10429_p10 = pneg %p10428_p7  ;;  %p10435_p8 = por %p10434_p2, %p10433_p11 }
 0x1c9   : > { %p10436_p12 = pnand %p10435_p8, %p10429_p10 }
 0x1cb   : > { %10439 = shalt.err (!%p10436_p12)
}
 0x1cc   : > { %s12855_s11 = sld [smem:[#allocation72_spill]]  ;;  %s12856_s21 = sld [smem:[#allocation73_spill]] }
 0x1cd   : > { %s12857_s30 = sld [smem:[#allocation71_spill]]  ;;  %p12858_p13 = scmp.eq.s32.totalorder %s11096_s2, 0 }
 0x1ce   : > { %8626 = dma.hbm_to_vmem [thread:$0]  (!%p11603_p3), %s11597_s25, 16, %s11599_s0, %s613_s26  }
 0x1cf   : > { %s280_s29 = sld [smem:[#allocation3 + %s10840_s5]]  ;;  %p12860_p1 = scmp.eq.s32.totalorder %s10840_s5, 0 }
 0x1d0   : > { %s281_s24 = sld [smem:[#allocation3 + %s11226_s14]]  ;;  %p12864_p3 = scmp.lt.s32.totalorder %s10840_s5, 2 }
 0x1d1   : > { %s12861_s25 = sld [smem:[#allocation68_spill]]  ;;  %s12862_s0 = sld [smem:[#allocation69_spill]] }
 0x1d2   : > { %p292_p11 = scmp.ne.s32.totalorder %s12856_s21, %s12855_s11  ;;  %s285_s7 = sadd.s32 1, %s12856_s21 }
 0x1d3   : > { %p298_p10 = scmp.ne.s32.totalorder %s12855_s11, %s12857_s30  ;;  %s653_s13 = sand.u32 1, %s12856_s21  }
 0x1d4   : > { %p294_p9 = por %p292_p11, %p12860_p1  ;;  %s7569_s26 = sshll.u32 %s653_s13, 2 }
 0x1d5   : > { %p11642_p0 = por %p298_p10, %p12858_p13  ;;  %s12863_s1 = sld [smem:[#allocation67_spill]] }
 0x1d6   : > { %s282_s4 = ssub.s32 %s280_s29, %s281_s24  ;;  %p11650_p4 = pnand %p12864_p3, %p294_p9 }
 0x1d7   : > { %s12859_s23 = scalar_select %p11642_p0, 1, 0 }
 0x1d8   : > { %p283_p5 = scmp.eq.s32.totalorder %s282_s4, 0  ;;  %s655_s30 = scalar_lea.vmem [#allocation21], %s7569_s26 }
 0x1d9   : > { %s664_s6 = sshll.u32 %s655_s30, 4  ;;  %p12867_p7 = pmov %p12864_p3  ;;  %s11668_s6 = int_to_ptr.vmem [resolvable:$true] %s664_s6 }
 0x1da   : > { %s8554_s8 = scalar_select %p294_p9, [#allocation3], [#allocation32] }
 0x1db   : > { %s12990_s21 = smov (!%p283_p5, %s12856_s21), %s285_s7  ;;  %p12868_p2 = pmov %p12864_p3 }
 0x1dc   : > { %12866 = sst [smem:[#allocation84_spill]] %s12990_s21  ;;  %s12992_s8 = smov (!%p12867_p7, %s8554_s8), [#allocation39] }
 0x1dd   : > { %s8555_s9 = scalar_select %p294_p9, %s10840_s5, 0 }
 0x1de   : > { %s11663_s24 = sld [smem:[#allocation3 + %s10840_s5]]  ;;  %p348_p8 = scmp.ne.s32.totalorder %s12862_s0, %s12861_s25 }
 0x1df   : > { %s12994_s9 = smov (!%p12868_p2, %s8555_s9), 0  ;;  %s11666_s13 = sld [smem:[#allocation3 + %s11226_s14]] }
 0x1e0   : > { %s656_s29 = sld [smem:[%s12992_s8 + %s12994_s9]]  ;;  %p354_p12 = scmp.ne.s32.totalorder %s12861_s25, %s12863_s1 }
 0x1e1   : > { %s695_s4 = sand.u32 1, %s12862_s0   ;;  %p12869_p11 = pmov %p12860_p1 }
 0x1e2   : > { %s11681_s26 = sshll.u32 %s695_s4, 2  ;;  %p11685_p1 = por %p354_p12, %p12858_p13 }
 0x1e3   : > { %p11677_p10 = por %p348_p8, %p12869_p11  ;;  %s12872_s12 = sld [smem:[#allocation98_spill]] }
 0x1e4   : > { %s12871_s9 = scalar_select %p11685_p1, 1, 0 }
 0x1e5   : > { %p10442_p3 = pneg %p11650_p4 }
 0x1e6   : > { %s8412_s30 = sshll.u32 %s656_s29, 6 }
 0x1e9   : > { %s662_s17 = scalar_lea.hbm %s12872_s12, %s8412_s30  ;;  %s10445_s29 = scalar_lea.hbm %s12872_s12, 256 }
 0x1ea   : > { %s10440_s21 = scalar_lea.hbm %s662_s17, 64  ;;  %p10446_p2 = scmp.lt.u32.totalorder %s662_s17, %s12872_s12 }
 0x1eb   : > { %p10441_p9 = scmp.ne.s32.totalorder %s662_s17, %s10440_s21  ;;  %p10447_p8 = scmp.lt.u32.totalorder %s10445_s29, %s10440_s21 }
 0x1ec   : > { %p10449_p11 = scmp.lt.u32.totalorder %s10440_s21, %s662_s17 }
 0x1ed   : > { %p10443_p5 = pnand %p10442_p3, %p10441_p9  ;;  %p10448_p12 = por %p10447_p8, %p10446_p2 }
 0x1ef   : > { %p10444_p7 = pneg %p10443_p5  ;;  %p10450_p13 = por %p10449_p11, %p10448_p12 }
 0x1f1   : > { %p10451_p1 = pnand %p10450_p13, %p10444_p7 }
 0x1f3   : > { %10454 = shalt.err (!%p10451_p1)
}
 0x1f4   : > { %s10455_s10 = scalar_lea.vmem %s11668_s6, 64  ;;  %s10857_s30 = smov [#allocation21]  }
 0x1f5   : > { %p10456_p9 = scmp.ne.s32.totalorder %s11668_s6, %s10455_s10  ;;  %s10460_s8 = sshll.u32 %s10857_s30, 4  ;;  %s10461_s8 = int_to_ptr.vmem [resolvable:$false] %s10460_s8 }
 0x1f6   : > { %s10462_s16 = scalar_lea.vmem %s10461_s8, 128  ;;  %p10463_p6 = scmp.lt.s32.totalorder %s11668_s6, %s10461_s8 }
 0x1f7   : > { %p10458_p5 = pnand %p10456_p9, %p10442_p3  ;;  %p10464_p2 = scmp.lt.s32.totalorder %s10462_s16, %s10455_s10 }
 0x1f9   : > { %p10459_p0 = pneg %p10458_p5  ;;  %p10465_p8 = por %p10464_p2, %p10463_p6 }
 0x1fb   : > { %p10466_p12 = pnand %p10465_p8, %p10459_p0 }
 0x1fd   : > { %10469 = shalt.err (!%p10466_p12)
}
 0x1fe   : > { %s12873_s21 = scalar_lea.sflag [#allocation20], %s11240_s22  ;;  %s12874_s1 = sld [smem:[#allocation64_spill]] }
 0x1ff   : > { %8636 = dma.hbm_to_vmem [thread:$0]  (!%p11650_p4), %s662_s17, 64, %s11668_s6, %s12873_s21  }
 0x200   : > { %s12875_s11 = sld [smem:[#allocation65_spill]]  ;;  %s338_s25 = ssub.s32 %s11663_s24, %s11666_s13 }
 0x201   : > { %s12876_s29 = sld [smem:[#allocation63_spill]]  ;;  %s341_s4 = sadd.s32 1, %s12862_s0 }
 0x202   : > { %p339_p6 = scmp.eq.s32.totalorder %s338_s25, 0  ;;  %s697_s10 = scalar_lea.vmem [#allocation24], %s11681_s26 }
 0x203   : > { %s706_s30 = sshll.u32 %s697_s10, 4  ;;  %p12878_p0 = scmp.lt.s32.totalorder %s10840_s5, 2  ;;  %s11741_s30 = int_to_ptr.vmem [resolvable:$true] %s706_s30 }
 0x204   : > { %s8560_s8 = scalar_select %p11677_p10, [#allocation3], [#allocation34] }
 0x205   : > { %s12996_s0 = smov (!%p339_p6, %s12862_s0), %s341_s4  ;;  %p12879_p4 = pmov %p12878_p0 }
 0x206   : > { %12877 = sst [smem:[#allocation85_spill]] %s12996_s0  ;;  %s12998_s8 = smov (!%p12878_p0, %s8560_s8), [#allocation41] }
 0x207   : > { %s8561_s16 = scalar_select %p11677_p10, %s10840_s5, 0 }
 0x208   : > { %p12880_p1 = pmov %p12878_p0  ;;  %s11739_s24 = sld [smem:[#allocation3 + %s10840_s5]] }
 0x209   : > { %s13000_s16 = smov (!%p12879_p4, %s8561_s16), 0  ;;  %s11744_s13 = sld [smem:[#allocation3 + %s11226_s14]] }
 0x20a   : > { %p11734_p3 = pnand %p12880_p1, %p11677_p10  ;;  %s698_s17 = sld [smem:[%s12998_s8 + %s13000_s16]] }
 0x20b   : > { %p404_p7 = scmp.ne.s32.totalorder %s12875_s11, %s12874_s1  ;;  %s12882_s4 = sld [smem:[#allocation100_spill]] }
 0x20c   : > { %p12883_p10 = scmp.eq.s32.totalorder %s10840_s5, 0  ;;  %p10472_p5 = pneg %p11734_p3 }
 0x20e   : > { %p11758_p13 = por %p404_p7, %p12883_p10 }
 0x210   : > { %s8414_s26 = sshll.u32 %s698_s17, 6 }
 0x211   : > { %s11754_s10 = scalar_lea.hbm %s12882_s4, %s8414_s26  ;;  %s10475_s25 = scalar_lea.hbm %s12882_s4, 256 }
 0x212   : > { %s10470_s16 = scalar_lea.hbm %s11754_s10, 64  ;;  %p10476_p12 = scmp.lt.u32.totalorder %s11754_s10, %s12882_s4 }
 0x213   : > { %p10471_p9 = scmp.ne.s32.totalorder %s11754_s10, %s10470_s16  ;;  %p10477_p6 = scmp.lt.u32.totalorder %s10475_s25, %s10470_s16 }
 0x214   : > { %p10479_p4 = scmp.lt.u32.totalorder %s10470_s16, %s11754_s10 }
 0x215   : > { %p10473_p2 = pnand %p10472_p5, %p10471_p9  ;;  %p10478_p0 = por %p10477_p6, %p10476_p12 }
 0x217   : > { %p10474_p8 = pneg %p10473_p2  ;;  %p10480_p1 = por %p10479_p4, %p10478_p0 }
 0x219   : > { %p10481_p7 = pnand %p10480_p1, %p10474_p8 }
 0x21b   : > { %10484 = shalt.err (!%p10481_p7)
}
 0x21c   : > { %s10485_s12 = scalar_lea.vmem %s11741_s30, 64  ;;  %s10858_s17 = smov [#allocation24]  }
 0x21d   : > { %p10486_p10 = scmp.ne.s32.totalorder %s11741_s30, %s10485_s12  ;;  %s10490_s26 = sshll.u32 %s10858_s17, 4  ;;  %s10491_s26 = int_to_ptr.vmem [resolvable:$false] %s10490_s26 }
 0x21e   : > { %s10492_s21 = scalar_lea.vmem %s10491_s26, 128  ;;  %p10493_p11 = scmp.lt.s32.totalorder %s11741_s30, %s10491_s26 }
 0x21f   : > { %p10488_p9 = pnand %p10486_p10, %p10472_p5  ;;  %p10494_p12 = scmp.lt.s32.totalorder %s10492_s21, %s10485_s12 }
 0x221   : > { %p10489_p2 = pneg %p10488_p9  ;;  %p10495_p6 = por %p10494_p12, %p10493_p11 }
 0x223   : > { %p10496_p0 = pnand %p10495_p6, %p10489_p2 }
 0x225   : > { %10499 = shalt.err (!%p10496_p0)
}
 0x226   : > { %s12885_s16 = scalar_lea.sflag [#allocation23], %s11240_s22  ;;  %p12886_p11 = scmp.eq.s32.totalorder %s11096_s2, 0 }
 0x227   : > { %8646 = dma.hbm_to_vmem [thread:$0]  (!%p11734_p3), %s11754_s10, 64, %s11741_s30, %s12885_s16  }
 0x228   : > { %p12887_p5 = scmp.ne.s32.totalorder %s12874_s1, %s12876_s29  ;;  %s12889_s6 = sand.u32 1, %s12875_s11  }
 0x229   : > { %s7581_s25 = sshll.u32 %s12889_s6, 2  ;;  %s12890_s7 = sld [smem:[#allocation61_spill]] }
 0x22a   : > { %p11794_p8 = por %p12887_p5, %p12886_p11  ;;  %s12891_s17 = sld [smem:[#allocation62_spill]] }
 0x22b   : > { %s394_s26 = ssub.s32 %s11739_s24, %s11744_s13  ;;  %s397_s21 = sadd.s32 1, %s12875_s11 }
 0x22c   : > { %s12888_s12 = scalar_select %p11794_p8, 1, 0 }
 0x22d   : > { %s12892_s4 = sld [smem:[#allocation60_spill]]  ;;  %p395_p4 = scmp.eq.s32.totalorder %s394_s26, 0 }
 0x22e   : > { %s8566_s0 = scalar_select %p11758_p13, [#allocation3], [#allocation36] }
 0x22f   : > { %s13002_s11 = smov (!%p395_p4, %s12875_s11), %s397_s21  ;;  %p12894_p3 = scmp.lt.s32.totalorder %s10840_s5, 2 }
 0x230   : > { %12893 = sst [smem:[#allocation86_spill]] %s13002_s11  ;;  %s739_s29 = scalar_lea.vmem [#allocation27], %s7581_s25 }
 0x231   : > { %s8567_s1 = scalar_select %p11758_p13, %s10840_s5, 0 }
 0x232   : > { %s13004_s0 = smov (!%p12894_p3, %s8566_s0), [#allocation43]  ;;  %p12895_p1 = pmov %p12894_p3 }
 0x233   : > { %s748_s30 = sshll.u32 %s739_s29, 4  ;;  %s11824_s10 = sld [smem:[#allocation3 + %s10840_s5]]  ;;  %s11829_s30 = int_to_ptr.vmem [resolvable:$true] %s748_s30 }
 0x234   : > { %s13006_s1 = smov (!%p12895_p1, %s8567_s1), 0  ;;  %p12896_p7 = pmov %p12895_p1 }
 0x235   : > { %s740_s13 = sld [smem:[%s13004_s0 + %s13006_s1]]  ;;  %p460_p9 = scmp.ne.s32.totalorder %s12891_s17, %s12890_s7 }
 0x236   : > { %p11819_p10 = pnand %p12896_p7, %p11758_p13  ;;  %s11827_s16 = sld [smem:[#allocation3 + %s11226_s14]] }
 0x237   : > { %s12898_s8 = sld [smem:[#allocation102_spill]]  ;;  %p12899_p13 = scmp.eq.s32.totalorder %s10840_s5, 0 }
 0x238   : > { %p10502_p0 = pneg %p11819_p10 }
 0x239   : > { %p11842_p12 = por %p460_p9, %p12899_p13 }
 0x23b   : > { %s8416_s6 = sshll.u32 %s740_s13, 6 }
 0x23d   : > { %s11838_s21 = scalar_lea.hbm %s12898_s8, %s8416_s6  ;;  %s10505_s6 = scalar_lea.hbm %s12898_s8, 256 }
 0x23e   : > { %s10500_s1 = scalar_lea.hbm %s11838_s21, 64  ;;  %p10506_p4 = scmp.lt.u32.totalorder %s11838_s21, %s12898_s8 }
 0x23f   : > { %p10501_p6 = scmp.ne.s32.totalorder %s11838_s21, %s10500_s1  ;;  %p10507_p3 = scmp.lt.u32.totalorder %s10505_s6, %s10500_s1 }
 0x240   : > { %p10509_p7 = scmp.lt.u32.totalorder %s10500_s1, %s11838_s21 }
 0x241   : > { %p10503_p11 = pnand %p10502_p0, %p10501_p6  ;;  %p10508_p1 = por %p10507_p3, %p10506_p4 }
 0x243   : > { %p10504_p5 = pneg %p10503_p11  ;;  %p10510_p9 = por %p10509_p7, %p10508_p1 }
 0x245   : > { %p10511_p13 = pnand %p10510_p9, %p10504_p5 }
 0x247   : > { %10514 = shalt.err (!%p10511_p13)
}
 0x248   : > { %s10515_s11 = scalar_lea.vmem %s11829_s30, 64  ;;  %s10859_s29 = smov [#allocation27]  }
 0x249   : > { %p10516_p6 = scmp.ne.s32.totalorder %s11829_s30, %s10515_s11  ;;  %s10520_s13 = sshll.u32 %s10859_s29, 4  ;;  %s10521_s13 = int_to_ptr.vmem [resolvable:$false] %s10520_s13 }
 0x24a   : > { %s10522_s25 = scalar_lea.vmem %s10521_s13, 128  ;;  %p10523_p8 = scmp.lt.s32.totalorder %s11829_s30, %s10521_s13 }
 0x24b   : > { %p10518_p11 = pnand %p10516_p6, %p10502_p0  ;;  %p10524_p4 = scmp.lt.s32.totalorder %s10522_s25, %s10515_s11 }
 0x24d   : > { %p10519_p2 = pneg %p10518_p11  ;;  %p10525_p3 = por %p10524_p4, %p10523_p8 }
 0x24f   : > { %p10526_p1 = pnand %p10525_p3, %p10519_p2 }
 0x251   : > { %10529 = shalt.err (!%p10526_p1)
}
 0x252   : > { %s12901_s1 = scalar_lea.sflag [#allocation26], %s11240_s22  ;;  %p12902_p8 = scmp.eq.s32.totalorder %s11096_s2, 0 }
 0x253   : > { %8656 = dma.hbm_to_vmem [thread:$0]  (!%p11819_p10), %s11838_s21, 64, %s11829_s30, %s12901_s1  }
 0x254   : > { %p12903_p2 = scmp.ne.s32.totalorder %s12890_s7, %s12892_s4  ;;  %s450_s11 = ssub.s32 %s11824_s10, %s11827_s16 }
 0x255   : > { %s453_s24 = sadd.s32 1, %s12891_s17  ;;  %p451_p5 = scmp.eq.s32.totalorder %s450_s11, 0 }
 0x256   : > { %p11878_p0 = por %p12903_p2, %p12902_p8  ;;  %s765_s6 = sand.u32 1, %s12891_s17  }
 0x257   : > { %s8569_s26 = scalar_select %p11842_p12, [#allocation3], [#allocation37] }
 0x258   : > { %s13008_s17 = smov (!%p451_p5, %s12891_s17), %s453_s24  ;;  %p12905_p7 = scmp.lt.s32.totalorder %s10840_s5, 2 }
 0x259   : > { %s8570_s29 = scalar_select %p11842_p12, %s10840_s5, 0 }
 0x25a   : > { %s13010_s26 = smov (!%p12905_p7, %s8569_s26), [#allocation44]  ;;  %p12906_p9 = pmov %p12905_p7 }
 0x25b   : > { %p12907_p10 = pmov %p12905_p7  ;;  %s768_s30 = scalar_lea.vmem [#allocation28], %s765_s6 }
 0x25c   : > { %s13012_s29 = smov (!%p12906_p9, %s8570_s29), 0  ;;  %s776_s10 = sshll.u32 %s768_s30, 4  ;;  %s11906_s10 = int_to_ptr.vmem [resolvable:$true] %s776_s10 }
 0x25d   : > { %p11902_p13 = pnand %p12907_p10, %p11842_p12  ;;  %s769_s7 = sld [smem:[%s13010_s26 + %s13012_s29]] }
 0x25e   : > { %s12909_s25 = sld [smem:[#allocation104_spill]]  ;;  %s766_s0 = scalar_lea.sflag [#allocation29], %s765_s6 }
 0x25f   : > { %p10532_p6 = pneg %p11902_p13 }
 0x263   : > { %s7584_s16 = sshll.u32 %s769_s7, 4 }
 0x264   : > { %s12910_s8 = smov %s12909_s25  ;;  %s11911_s1 = scalar_lea.hbm %s12909_s25, %s7584_s16 }
 0x265   : > { %s10530_s11 = scalar_lea.hbm %s11911_s1, 16  ;;  %s10535_s29 = scalar_lea.hbm %s12910_s8, 64 }
 0x266   : > { %p10531_p12 = scmp.ne.s32.totalorder %s11911_s1, %s10530_s11  ;;  %p10536_p3 = scmp.lt.u32.totalorder %s11911_s1, %s12910_s8 }
 0x267   : > { %p10537_p1 = scmp.lt.u32.totalorder %s10535_s29, %s10530_s11  ;;  %p10539_p2 = scmp.lt.u32.totalorder %s10530_s11, %s11911_s1 }
 0x268   : > { %p10533_p11 = pnand %p10532_p6, %p10531_p12 }
 0x269   : > { %p10538_p8 = por %p10537_p1, %p10536_p3 }
 0x26a   : > { %p10534_p4 = pneg %p10533_p11 }
 0x26b   : > { %p10540_p5 = por %p10539_p2, %p10538_p8 }
 0x26d   : > { %p10541_p7 = pnand %p10540_p5, %p10534_p4 }
 0x26f   : > { %10544 = shalt.err (!%p10541_p7)
}
 0x270   : > { %s10545_s6 = scalar_lea.vmem %s11906_s10, 16  ;;  %s10860_s16 = smov [#allocation28]  }
 0x271   : > { %p10546_p9 = scmp.ne.s32.totalorder %s11906_s10, %s10545_s6  ;;  %s10550_s21 = sshll.u32 %s10860_s16, 4  ;;  %s10551_s21 = int_to_ptr.vmem [resolvable:$false] %s10550_s21 }
 0x272   : > { %s10552_s13 = scalar_lea.vmem %s10551_s21, 32  ;;  %p10553_p11 = scmp.lt.s32.totalorder %s11906_s10, %s10551_s21 }
 0x273   : > { %p10548_p10 = pnand %p10546_p9, %p10532_p6  ;;  %p10554_p3 = scmp.lt.s32.totalorder %s10552_s13, %s10545_s6 }
 0x275   : > { %p10549_p12 = pneg %p10548_p10  ;;  %p10555_p1 = por %p10554_p3, %p10553_p11 }
 0x277   : > { %p10556_p8 = pnand %p10555_p1, %p10549_p12 }
 0x279   : > { %10559 = shalt.err (!%p10556_p8)
}
 0x27a   : > { %8661 = dma.hbm_to_vmem [thread:$0]  (!%p11902_p13), %s11911_s1, 16, %s11906_s10, %s766_s0  }
 0x27b   : > { %s12911_s25 = sld [smem:[#allocation78_spill]] }
 0x281   : > { %p12912_p4 = scmp.ne.s32.totalorder %s12911_s25, 0 }
 0x282   : > { %s12913_s11 = sld [smem:[#allocation76_spill]] (!%p12912_p4)  ;;  %p12914_p6 = scmp.ne.s32.totalorder (!%p12912_p4), %s12848_s19, 0 }
 0x283   : > { %785 = sbr.rel (%p12912_p4) target bundleno = 2883 (0xb43), region = 88 }
 0x288   : > { %s11941_s24 = sand.u32 (!%p12912_p4), 1, %s12913_s11  }
 0x289   : > { %s788_s26 = scalar_lea.sflag (!%p12912_p4), [#allocation5], %s11941_s24  ;;  %s790_s29 = scalar_lea.vmem (!%p12912_p4), [#allocation4], %s11941_s24 }
 0x28a   : > { %10691 = dma.done.wait (%p12914_p6), %s788_s26, 16  }
 0x28b   : > { %10693 = vsyncadd (%p12914_p6), %s788_s26, 4294967280  ;;  %p12915_p2 = scmp.eq.s32.totalorder %s11096_s2, 0 }
 0x28d   : > { %10695 = dma.done.wait (%p12915_p2), [#allocation8], 576   ;;  %p12916_p13 = pmov %p12915_p2 }
 0x28e   : > { %p12917_p5 = pmov %p12915_p2 }
 0x28f   : > { %10697 = vsyncadd (%p12916_p13), [#allocation8], 4294966720 }
 0x290   : > { %10699 = dma.done.wait (%p12917_p5), [#allocation11], 16448   ;;  %p12918_p7 = pmov %p12915_p2 }
 0x291   : > { %p12919_p9 = pmov %p12915_p2 }
 0x292   : > { %10701 = vsyncadd (%p12918_p7), [#allocation11], 4294950848 }
 0x293   : > { %10703 = dma.done.wait (%p12919_p9), [#allocation14], 16448   ;;  %p12920_p10 = pmov %p12915_p2 }
 0x294   : > { %p12921_p12 = pmov %p12915_p2 }
 0x295   : > { %10705 = vsyncadd (%p12920_p10), [#allocation14], 4294950848 }
 0x296   : > { %10707 = dma.done.wait (%p12921_p12), [#allocation17], 16448   ;;  %p12922_p11 = pmov %p12915_p2 }
 0x297   : > { %s827_s19 = sand.u32 1, %s11096_s2   ;;  %s829_s4 = sand.u32 1, %s10820_s15  }
 0x298   : > { %10709 = vsyncadd (%p12922_p11), [#allocation17], 4294950848  ;;  %s7594_s10 = sshll.u32 %s829_s4, 10  ;;  %s828_s1 = scalar_lea.sflag [#allocation20], %s827_s19 }
 0x299   : > { %s11967_s0 = scalar_lea.vmem [#allocation19], %s7594_s10  ;;  %p12923_p3 = scmp.ne.s32.totalorder %s12800_s27, 0 }
 0x29b   : > { %10711 = dma.done.wait (%p12923_p3), %s828_s1, 16384  }
 0x29c   : > { %10713 = vsyncadd (%p12923_p3), %s828_s1, 4294950912  ;;  %s12924_s7 = sld [smem:[#allocation72_spill]]  ;;  %p12925_p1 = scmp.ne.s32.totalorder %s12859_s23, 0 }
 0x2a2   : > { %s838_s30 = sand.u32 1, %s12924_s7  }
 0x2a3   : > { %s11974_s6 = sshll.u32 %s838_s30, 2 }
 0x2a4   : > { %s840_s16 = scalar_lea.vmem [#allocation21], %s11974_s6 }
 0x2a5   : > { %10715 = dma.done.wait (%p12925_p1), %s828_s1, 64  }
 0x2a6   : > { %10717 = vsyncadd (%p12925_p1), %s828_s1, 4294967232  ;;  %s12926_s21 = sld [smem:[#allocation80_spill]]  ;;  %s847_s13 = sand.u32 1, %s10796_s20  }
 0x2a7   : > { %s7596_s25 = sshll.u32 %s847_s13, 10  ;;  %s846_s11 = scalar_lea.sflag [#allocation23], %s827_s19 }
 0x2a8   : > { %s11982_s26 = scalar_lea.vmem [#allocation22], %s7596_s25 }
 0x2ac   : > { %p12927_p8 = scmp.ne.s32.totalorder %s12926_s21, 0 }
 0x2ae   : > { %10719 = dma.done.wait (%p12927_p8), %s846_s11, 16384  }
 0x2af   : > { %10721 = vsyncadd (%p12927_p8), %s846_s11, 4294950912  ;;  %s12928_s27 = sld [smem:[#allocation68_spill]]  ;;  %p12929_p4 = scmp.ne.s32.totalorder %s12871_s9, 0 }
 0x2b5   : > { %s856_s4 = sand.u32 1, %s12928_s27  }
 0x2b6   : > { %s11989_s10 = sshll.u32 %s856_s4, 2 }
 0x2b7   : > { %s858_s23 = scalar_lea.vmem [#allocation24], %s11989_s10 }
 0x2b8   : > { %10723 = dma.done.wait (%p12929_p4), %s846_s11, 64  }
 0x2b9   : > { %10725 = vsyncadd (%p12929_p4), %s846_s11, 4294967232  ;;  %s865_s1 = sand.u32 1, %s10772_s28   ;;  %s864_s30 = scalar_lea.sflag [#allocation26], %s827_s19 }
 0x2ba   : > { %s7598_s7 = sshll.u32 %s865_s1, 10  ;;  %p12930_p6 = scmp.ne.s32.totalorder %s12824_s3, 0 }
 0x2bb   : > { %s11997_s13 = scalar_lea.vmem [#allocation25], %s7598_s7 }
 0x2bc   : > { %10727 = dma.done.wait (%p12930_p6), %s864_s30, 16384  }
 0x2bd   : > { %10729 = vsyncadd (%p12930_p6), %s864_s30, 4294950912  ;;  %s12931_s21 = sld [smem:[#allocation64_spill]]  ;;  %p12932_p2 = scmp.ne.s32.totalorder %s12888_s12, 0 }
 0x2c3   : > { %s874_s25 = sand.u32 1, %s12931_s21  }
 0x2c4   : > { %s12004_s27 = sshll.u32 %s874_s25, 2 }
 0x2c5   : > { %s876_s9 = scalar_lea.vmem [#allocation27], %s12004_s27 }
 0x2c6   : > { %10731 = dma.done.wait (%p12932_p2), %s864_s30, 64  }
 0x2c7   : > { %10733 = vsyncadd (%p12932_p2), %s864_s30, 4294967232  ;;  %s12933_s19 = sld [smem:[#allocation61_spill]] }
 0x2cd   : > { %s881_s11 = sand.u32 1, %s12933_s19  }
 0x2ce   : > { %s882_s4 = scalar_lea.sflag [#allocation29], %s881_s11  ;;  %s12012_s1 = scalar_lea.vmem [#allocation28], %s881_s11 }
 0x2cf   : > { %10735 = dma.done.wait (%p11878_p0), %s882_s4, 16  }
 0x2d0   : > { %10737 = vsyncadd (%p11878_p0), %s882_s4, 4294967280  ;;  %v10861_v0 = vmov 0   ;;  %v8896_v1 = vld [vmem:[#allocation7 + $0x4] ss:$16 sps:$4 sm:$0xff]   ;;  %v8898_v2 = vld [vmem:[#allocation7] ss:$16 sps:$4 sm:$0xff]  }
 0x2d1   : > { %1072 = vmatprep.mubr.bf16.mxu0 %v10861_v0  ;;  %1113 = vmatprep.mubr.bf16.mxu1 %v10861_v0  ;;  %v988_v3 = vld [vmem:[%s790_s29] sm:$0x1]  ;;  %v8901_v6 = vld [vmem:[#allocation7 + $0x8] ss:$16 sps:$4 sm:$0xff]   ;;  %vm1036_vm0 = vcmask 130048   ;;  %s979_s3 = sld [smem:[#allocation3 + %s11096_s2]] }
 0x2d2   : > { %1040 = vmatprep.subr.bf16.mxu0 %v8896_v1  ;;  %v994_v4 = vpack.c.bf16 %v988_v3, %v988_v3  ;;  %v8899_v5 = vld [vmem:[#allocation7 + $0xc] ss:$16 sps:$4 sm:$0xff]   ;;  %v8902_v7 = vld [vmem:[#allocation10] ss:$16 sps:$4 sm:$0xff]   ;;  %v8904_v8 = vld [vmem:[#allocation10 + $0x4] ss:$16 sps:$4 sm:$0xff]  }
 0x2d3   : > { %1041 = vmatpush1.bf16.msra.mxu0 %v8898_v2  ;;  %1081 = vmatprep.subr.bf16.mxu1 %v8899_v5  ;;  %v8905_v9 = vld [vmem:[#allocation10 + $0x8] ss:$16 sps:$4 sm:$0xff]   ;;  %v8907_v10 = vld [vmem:[#allocation10 + $0xc] ss:$16 sps:$4 sm:$0xff]   ;;  %v8910_v11 = vld [vmem:[#allocation10 + $0x24] ss:$16 sps:$4 sm:$0xff]  }
 0x2d4   : > { %1082 = vmatpush1.bf16.msra.mxu1 %v8901_v6  ;;  %1920 = vmatprep.subr.bf16.mxu0 %v8904_v8  ;;  %v8908_v12 = vld [vmem:[#allocation10 + $0x20] ss:$16 sps:$4 sm:$0xff]   ;;  %v8913_v13 = vld [vmem:[#allocation10 + $0x2c] ss:$16 sps:$4 sm:$0xff]   ;;  %v8911_v14 = vld [vmem:[#allocation10 + $0x28] ss:$16 sps:$4 sm:$0xff]  }
 0x2d5   : > { %2002 = vmatprep.subr.bf16.mxu1 %v8907_v10  ;;  %v8916_v15 = vld [vmem:[#allocation10 + $0x44] ss:$16 sps:$4 sm:$0xff]   ;;  %v8919_v16 = vld [vmem:[#allocation10 + $0x4c] ss:$16 sps:$4 sm:$0xff]   ;;  %v8914_v17 = vld [vmem:[#allocation10 + $0x40] ss:$16 sps:$4 sm:$0xff]  }
 0x2d6   : > { %7606 = vmatmul.mubr.msk.bf16.vlgmr.msra.gmra.mrb[0].mxu0 %vm1036_vm0, %v994_v4  ;;  %v8922_v18 = vld [vmem:[#allocation10 + $0x64] ss:$16 sps:$4 sm:$0xff]   ;;  %v8917_v19 = vld [vmem:[#allocation10 + $0x48] ss:$16 sps:$4 sm:$0xff]   ;;  %v8925_v20 = vld [vmem:[#allocation10 + $0x6c] ss:$16 sps:$4 sm:$0xff]  }
 0x2d7   : > { %1921 = vmatpush1.bf16.msra.mxu0 %v8902_v7  ;;  %7607 = vmatmul.mubr.msk.bf16.vlgmr.msra.gmra.mrb[0].mxu1 %vm1036_vm0, %v994_v4  ;;  %v8920_v21 = vld [vmem:[#allocation10 + $0x60] ss:$16 sps:$4 sm:$0xff]   ;;  %v8928_v22 = vld [vmem:[#allocation10 + $0x84] ss:$16 sps:$4 sm:$0xff]   ;;  %v8923_v23 = vld [vmem:[#allocation10 + $0x68] ss:$16 sps:$4 sm:$0xff]  }
 0x2d8   : > { %1922 = vmatprep.subr.bf16.mxu0 %v8910_v11  ;;  %2003 = vmatpush1.bf16.msra.mxu1 %v8905_v9  ;;  %v8931_v24 = vld [vmem:[#allocation10 + $0x8c] ss:$16 sps:$4 sm:$0xff]   ;;  %v8926_v25 = vld [vmem:[#allocation10 + $0x80] ss:$16 sps:$4 sm:$0xff]   ;;  %v8934_v26 = vld [vmem:[#allocation10 + $0xa4] ss:$16 sps:$4 sm:$0xff]   ;;  %v1016_v9 = vlaneseq }
 0x2d9   : > { %2004 = vmatprep.subr.bf16.mxu1 %v8913_v13  ;;  %v8929_v27 = vld [vmem:[#allocation10 + $0x88] ss:$16 sps:$4 sm:$0xff]   ;;  %v8937_v28 = vld [vmem:[#allocation10 + $0xac] ss:$16 sps:$4 sm:$0xff]   ;;  %v8932_v29 = vld [vmem:[#allocation10 + $0xa0] ss:$16 sps:$4 sm:$0xff]  }
 0x2da   : > { %v8940_v30 = vld [vmem:[#allocation10 + $0xc4] ss:$16 sps:$4 sm:$0xff]   ;;  %v8935_v31 = vld [vmem:[#allocation10 + $0xa8] ss:$16 sps:$4 sm:$0xff]   ;;  %v8943_v32 = vld [vmem:[#allocation10 + $0xcc] ss:$16 sps:$4 sm:$0xff]  }
 0x2db   : > { %1923 = vmatpush1.bf16.msra.mxu0 %v8908_v12  ;;  %v8938_v33 = vld [vmem:[#allocation10 + $0xc0] ss:$16 sps:$4 sm:$0xff]   ;;  %v8946_v34 = vld [vmem:[#allocation10 + $0xe4] ss:$16 sps:$4 sm:$0xff]   ;;  %v8941_v35 = vld [vmem:[#allocation10 + $0xc8] ss:$16 sps:$4 sm:$0xff]  }
 0x2dc   : > { %1924 = vmatprep.subr.bf16.mxu0 %v8916_v15  ;;  %2005 = vmatpush1.bf16.msra.mxu1 %v8911_v14  ;;  %v8949_v36 = vld [vmem:[#allocation10 + $0xec] ss:$16 sps:$4 sm:$0xff]   ;;  %v8944_v37 = vld [vmem:[#allocation10 + $0xe0] ss:$16 sps:$4 sm:$0xff]   ;;  %v8952_v38 = vld [vmem:[#allocation10 + $0x104] ss:$16 sps:$4 sm:$0xff]  }
 0x2dd   : > { %2006 = vmatprep.subr.bf16.mxu1 %v8919_v16  ;;  %v8947_v39 = vld [vmem:[#allocation10 + $0xe8] ss:$16 sps:$4 sm:$0xff]   ;;  %v8955_v40 = vld [vmem:[#allocation10 + $0x10c] ss:$16 sps:$4 sm:$0xff]   ;;  %v8950_v41 = vld [vmem:[#allocation10 + $0x100] ss:$16 sps:$4 sm:$0xff]  }
 0x2de   : > { %v8958_v42 = vld [vmem:[#allocation10 + $0x124] ss:$16 sps:$4 sm:$0xff]   ;;  %v8953_v43 = vld [vmem:[#allocation10 + $0x108] ss:$16 sps:$4 sm:$0xff]   ;;  %v8956_v44 = vld [vmem:[#allocation10 + $0x120] ss:$16 sps:$4 sm:$0xff]  }
 0x2df   : > { %1925 = vmatpush1.bf16.msra.mxu0 %v8914_v17  ;;  %v8961_v45 = vld [vmem:[#allocation10 + $0x12c] ss:$16 sps:$4 sm:$0xff]   ;;  %v8959_v46 = vld [vmem:[#allocation10 + $0x128] ss:$16 sps:$4 sm:$0xff]   ;;  %v8964_v47 = vld [vmem:[#allocation10 + $0x144] ss:$16 sps:$4 sm:$0xff]  }
 0x2e0   : > { %1926 = vmatprep.subr.bf16.mxu0 %v8922_v18  ;;  %2007 = vmatpush1.bf16.msra.mxu1 %v8917_v19  ;;  %v8967_v48 = vld [vmem:[#allocation10 + $0x14c] ss:$16 sps:$4 sm:$0xff]   ;;  %v8962_v49 = vld [vmem:[#allocation10 + $0x140] ss:$16 sps:$4 sm:$0xff]   ;;  %v8970_v50 = vld [vmem:[#allocation10 + $0x164] ss:$16 sps:$4 sm:$0xff]  }
 0x2e1   : > { %2008 = vmatprep.subr.bf16.mxu1 %v8925_v20  ;;  %v8965_v51 = vld [vmem:[#allocation10 + $0x148] ss:$16 sps:$4 sm:$0xff]   ;;  %v8973_v52 = vld [vmem:[#allocation10 + $0x16c] ss:$16 sps:$4 sm:$0xff]   ;;  %v8968_v53 = vld [vmem:[#allocation10 + $0x160] ss:$16 sps:$4 sm:$0xff]  }
 0x2e2   : > { %v8976_v54 = vld [vmem:[#allocation10 + $0x184] ss:$16 sps:$4 sm:$0xff]   ;;  %v8971_v55 = vld [vmem:[#allocation10 + $0x168] ss:$16 sps:$4 sm:$0xff]   ;;  %v8979_v56 = vld [vmem:[#allocation10 + $0x18c] ss:$16 sps:$4 sm:$0xff]  }
 0x2e3   : > { %1927 = vmatpush1.bf16.msra.mxu0 %v8920_v21  ;;  %v8974_v57 = vld [vmem:[#allocation10 + $0x180] ss:$16 sps:$4 sm:$0xff]   ;;  %v8982_v58 = vld [vmem:[#allocation10 + $0x1a4] ss:$16 sps:$4 sm:$0xff]   ;;  %v8977_v59 = vld [vmem:[#allocation10 + $0x188] ss:$16 sps:$4 sm:$0xff]  }
 0x2e4   : > { %1928 = vmatprep.subr.bf16.mxu0 %v8928_v22  ;;  %2009 = vmatpush1.bf16.msra.mxu1 %v8923_v23  ;;  %v8985_v60 = vld [vmem:[#allocation10 + $0x1ac] ss:$16 sps:$4 sm:$0xff]   ;;  %v8980_v61 = vld [vmem:[#allocation10 + $0x1a0] ss:$16 sps:$4 sm:$0xff]   ;;  %v8983_v62 = vld [vmem:[#allocation10 + $0x1a8] ss:$16 sps:$4 sm:$0xff]  }
 0x2e5   : > { %2010 = vmatprep.subr.bf16.mxu1 %v8931_v24  ;;  %v8988_v63 = vld [vmem:[#allocation10 + $0x1c4] ss:$16 sps:$4 sm:$0xff]   ;;  %v8991_v0 = vld [vmem:[#allocation10 + $0x1cc] ss:$16 sps:$4 sm:$0xff]   ;;  %v8986_v1 = vld [vmem:[#allocation10 + $0x1c0] ss:$16 sps:$4 sm:$0xff]  }
 0x2e6   : > { %v8989_v2 = vld [vmem:[#allocation10 + $0x1c8] ss:$16 sps:$4 sm:$0xff]   ;;  %v8994_v3 = vld [vmem:[#allocation10 + $0x1e4] ss:$16 sps:$4 sm:$0xff]   ;;  %v8997_v4 = vld [vmem:[#allocation10 + $0x1ec] ss:$16 sps:$4 sm:$0xff]  }
 0x2e7   : > { %1929 = vmatpush1.bf16.msra.mxu0 %v8926_v25  ;;  %v8992_v5 = vld [vmem:[#allocation10 + $0x1e0] ss:$16 sps:$4 sm:$0xff]   ;;  %v8995_v6 = vld [vmem:[#allocation10 + $0x1e8] ss:$16 sps:$4 sm:$0xff]   ;;  %v9000_v7 = vld [vmem:[#allocation10 + $0x204] ss:$16 sps:$4 sm:$0xff]  }
 0x2e8   : > { %1930 = vmatprep.subr.bf16.mxu0 %v8934_v26  ;;  %2011 = vmatpush1.bf16.msra.mxu1 %v8929_v27  ;;  %v9003_v8 = vld [vmem:[#allocation10 + $0x20c] ss:$16 sps:$4 sm:$0xff]   ;;  %v12020_v10 = vshrl.u32 %v1016_v9, 7  ;;  %v9060_v9 = vld [vmem:[#allocation10 + $0x344] ss:$16 sps:$4 sm:$0xff]   ;;  %p980_p0 = scmp.lt.s32.totalorder %s979_s3, 3 }
 0x2e9   : > { %2012 = vmatprep.subr.bf16.mxu1 %v8937_v28  ;;  %v12025_v12 = vld [vmem:[#allocation9] sm:$0xf]  ;;  %v8998_v28 = vld [vmem:[#allocation10 + $0x200] ss:$16 sps:$4 sm:$0xff]   ;;  %vm7239_vm1 = vcmask 516096   ;;  %s12935_s30 = sld [smem:[#allocation105_spill]] }
 0x2ea   : > { %v12023_v11 = vsub.s32 0, %v12020_v10  ;;  %v12028_v13 = vsub.s32 1, %v12020_v10  ;;  %v12031_v14 = vsub.s32 3, %v12020_v10  ;;  %s13014_s3 = smov (!%p980_p0, %s979_s3), 3  ;;  %s7242_s21 = scalar_lea.sflag [#allocation6], %s11941_s24 }
 0x2eb   : > { %1931 = vmatpush1.bf16.msra.mxu0 %v8932_v29  ;;  %v9001_v29 = vld [vmem:[#allocation10 + $0x208] ss:$16 sps:$4 sm:$0xff]   ;;  %s8417_s12 = sshll.u32 %s13014_s3, 8  ;;  %p12937_p5 = scmp.ne.s32.totalorder %s12849_s18, 0 }
 0x2ec   : > { %1932 = vmatprep.subr.bf16.mxu0 %v8940_v30  ;;  %2013 = vmatpush1.bf16.msra.mxu1 %v8935_v31  ;;  %v1019_v15 = vrot.slane %v12025_v12, %v12023_v11  ;;  %v1023_v16 = vrot.slane %v12025_v12, %v12028_v13  ;;  %v1031_v18 = vrot.slane %v12025_v12, %v12031_v14 }
 0x2ed   : > { %2014 = vmatprep.subr.bf16.mxu1 %v8943_v32  ;;  %v9006_v32 = vld [vmem:[#allocation10 + $0x224] ss:$16 sps:$4 sm:$0xff]  }
 0x2ef   : > { %1933 = vmatpush1.bf16.msra.mxu0 %v8938_v33  ;;  %v9009_v33 = vld [vmem:[#allocation10 + $0x22c] ss:$16 sps:$4 sm:$0xff]  }
 0x2f0   : > { %1934 = vmatprep.subr.bf16.mxu0 %v8946_v34  ;;  %2015 = vmatpush1.bf16.msra.mxu1 %v8941_v35 }
 0x2f1   : > { %2016 = vmatprep.subr.bf16.mxu1 %v8949_v36 }
 0x2f3   : > { %1935 = vmatpush1.bf16.msra.mxu0 %v8944_v37 }
 0x2f4   : > { %1936 = vmatprep.subr.bf16.mxu0 %v8952_v38  ;;  %2017 = vmatpush1.bf16.msra.mxu1 %v8947_v39  ;;  %v9004_v38 = vld [vmem:[#allocation10 + $0x220] ss:$16 sps:$4 sm:$0xff]   ;;  %v9007_v39 = vld [vmem:[#allocation10 + $0x228] ss:$16 sps:$4 sm:$0xff]  }
 0x2f5   : > { %2018 = vmatprep.subr.bf16.mxu1 %v8955_v40 }
 0x2f7   : > { %1937 = vmatpush1.bf16.msra.mxu0 %v8950_v41  ;;  %v9012_v41 = vld [vmem:[#allocation10 + $0x244] ss:$16 sps:$4 sm:$0xff]  }
 0x2f8   : > { %1938 = vmatprep.subr.bf16.mxu0 %v8958_v42  ;;  %2019 = vmatpush1.bf16.msra.mxu1 %v8953_v43  ;;  %v9015_v42 = vld [vmem:[#allocation10 + $0x24c] ss:$16 sps:$4 sm:$0xff]   ;;  %v9010_v43 = vld [vmem:[#allocation10 + $0x240] ss:$16 sps:$4 sm:$0xff]  }
 0x2f9   : > { %2020 = vmatprep.subr.bf16.mxu1 %v8961_v45  ;;  %v9018_v45 = vld [vmem:[#allocation10 + $0x264] ss:$16 sps:$4 sm:$0xff]  }
 0x2fb   : > { %1939 = vmatpush1.bf16.msra.mxu0 %v8956_v44  ;;  %v9013_v44 = vld [vmem:[#allocation10 + $0x248] ss:$16 sps:$4 sm:$0xff]  }
 0x2fc   : > { %1940 = vmatprep.subr.bf16.mxu0 %v8964_v47  ;;  %2021 = vmatpush1.bf16.msra.mxu1 %v8959_v46  ;;  %v9021_v46 = vld [vmem:[#allocation10 + $0x26c] ss:$16 sps:$4 sm:$0xff]   ;;  %v9016_v47 = vld [vmem:[#allocation10 + $0x260] ss:$16 sps:$4 sm:$0xff]  }
 0x2fd   : > { %2022 = vmatprep.subr.bf16.mxu1 %v8967_v48  ;;  %v9019_v48 = vld [vmem:[#allocation10 + $0x268] ss:$16 sps:$4 sm:$0xff]  }
 0x2ff   : > { %1941 = vmatpush1.bf16.msra.mxu0 %v8962_v49  ;;  %v9024_v49 = vld [vmem:[#allocation10 + $0x284] ss:$16 sps:$4 sm:$0xff]  }
 0x300   : > { %1942 = vmatprep.subr.bf16.mxu0 %v8970_v50  ;;  %2023 = vmatpush1.bf16.msra.mxu1 %v8965_v51  ;;  %v9027_v50 = vld [vmem:[#allocation10 + $0x28c] ss:$16 sps:$4 sm:$0xff]   ;;  %v9022_v51 = vld [vmem:[#allocation10 + $0x280] ss:$16 sps:$4 sm:$0xff]  }
 0x301   : > { %2024 = vmatprep.subr.bf16.mxu1 %v8973_v52  ;;  %v9025_v52 = vld [vmem:[#allocation10 + $0x288] ss:$16 sps:$4 sm:$0xff]  }
 0x303   : > { %1943 = vmatpush1.bf16.msra.mxu0 %v8968_v53  ;;  %v9030_v53 = vld [vmem:[#allocation10 + $0x2a4] ss:$16 sps:$4 sm:$0xff]  }
 0x304   : > { %1944 = vmatprep.subr.bf16.mxu0 %v8976_v54  ;;  %2025 = vmatpush1.bf16.msra.mxu1 %v8971_v55  ;;  %v9033_v54 = vld [vmem:[#allocation10 + $0x2ac] ss:$16 sps:$4 sm:$0xff]   ;;  %v9028_v55 = vld [vmem:[#allocation10 + $0x2a0] ss:$16 sps:$4 sm:$0xff]  }
 0x305   : > { %2026 = vmatprep.subr.bf16.mxu1 %v8979_v56  ;;  %v9031_v56 = vld [vmem:[#allocation10 + $0x2a8] ss:$16 sps:$4 sm:$0xff]  }
 0x307   : > { %1945 = vmatpush1.bf16.msra.mxu0 %v8974_v57  ;;  %v9036_v57 = vld [vmem:[#allocation10 + $0x2c4] ss:$16 sps:$4 sm:$0xff]  }
 0x308   : > { %1946 = vmatprep.subr.bf16.mxu0 %v8982_v58  ;;  %2027 = vmatpush1.bf16.msra.mxu1 %v8977_v59  ;;  %v9039_v58 = vld [vmem:[#allocation10 + $0x2cc] ss:$16 sps:$4 sm:$0xff]   ;;  %v9034_v59 = vld [vmem:[#allocation10 + $0x2c0] ss:$16 sps:$4 sm:$0xff]  }
 0x309   : > { %2028 = vmatprep.subr.bf16.mxu1 %v8985_v60  ;;  %v9037_v60 = vld [vmem:[#allocation10 + $0x2c8] ss:$16 sps:$4 sm:$0xff]  }
 0x30b   : > { %1947 = vmatpush1.bf16.msra.mxu0 %v8980_v61  ;;  %v9042_v61 = vld [vmem:[#allocation10 + $0x2e4] ss:$16 sps:$4 sm:$0xff]  }
 0x30c   : > { %2029 = vmatpush1.bf16.msra.mxu1 %v8983_v62  ;;  %1948 = vmatprep.subr.bf16.mxu0 %v8988_v63  ;;  %v9045_v62 = vld [vmem:[#allocation10 + $0x2ec] ss:$16 sps:$4 sm:$0xff]   ;;  %v9040_v63 = vld [vmem:[#allocation10 + $0x2e0] ss:$16 sps:$4 sm:$0xff]  }
 0x30d   : > { %2030 = vmatprep.subr.bf16.mxu1 %v8991_v0  ;;  %v9043_v0 = vld [vmem:[#allocation10 + $0x2e8] ss:$16 sps:$4 sm:$0xff]  }
 0x30f   : > { %1949 = vmatpush1.bf16.msra.mxu0 %v8986_v1  ;;  %v9048_v1 = vld [vmem:[#allocation10 + $0x304] ss:$16 sps:$4 sm:$0xff]  }
 0x310   : > { %2031 = vmatpush1.bf16.msra.mxu1 %v8989_v2  ;;  %1950 = vmatprep.subr.bf16.mxu0 %v8994_v3  ;;  %v9051_v2 = vld [vmem:[#allocation10 + $0x30c] ss:$16 sps:$4 sm:$0xff]   ;;  %v9046_v3 = vld [vmem:[#allocation10 + $0x300] ss:$16 sps:$4 sm:$0xff]  }
 0x311   : > { %2032 = vmatprep.subr.bf16.mxu1 %v8997_v4  ;;  %v9049_v4 = vld [vmem:[#allocation10 + $0x308] ss:$16 sps:$4 sm:$0xff]  }
 0x313   : > { %1951 = vmatpush1.bf16.msra.mxu0 %v8992_v5  ;;  %v9054_v5 = vld [vmem:[#allocation10 + $0x324] ss:$16 sps:$4 sm:$0xff]  }
 0x314   : > { %2033 = vmatpush1.bf16.msra.mxu1 %v8995_v6  ;;  %1961 = vmatprep.subr.bf16.mxu0 %v9000_v7  ;;  %v9057_v6 = vld [vmem:[#allocation10 + $0x32c] ss:$16 sps:$4 sm:$0xff]   ;;  %v9052_v7 = vld [vmem:[#allocation10 + $0x320] ss:$16 sps:$4 sm:$0xff]  }
 0x315   : > { %2043 = vmatprep.subr.bf16.mxu1 %v9003_v8  ;;  %v9055_v8 = vld [vmem:[#allocation10 + $0x328] ss:$16 sps:$4 sm:$0xff]  }
 0x3a9   : > { %v1074_v17 = vpop.f32.mrb[0].mxu0 }
 0x3aa   : > { %v1075_v19 = vadd.f32 %v1074_v17, %v1019_v15  ;;  %v1076_v20 = vpop.f32.mrb[1].mxu0  ;;  %v12039_v23 = vpop.f32.mrb[0].mxu1  ;;  %v9063_v15 = vld [vmem:[#allocation10 + $0x34c] ss:$16 sps:$4 sm:$0xff]   ;;  %v9061_v17 = vld [vmem:[#allocation10 + $0x348] ss:$16 sps:$4 sm:$0xff]  }
 0x3ab   : > { %v1077_v21 = vadd.f32 %v1076_v20, %v1023_v16  ;;  %v1078_v22 = vpop.f32.mrb[2].mxu0  ;;  %v1117_v26 = vpop.f32.mrb[1].mxu1  ;;  %v9058_v16 = vld [vmem:[#allocation10 + $0x340] ss:$16 sps:$4 sm:$0xff]  }
 0x3ac   : > { %v1122_v24 = vmax.f32 %v1075_v19, 0.0  ;;  %v1079_v25 = vpop.f32.mrb[3].mxu0  ;;  %v1118_v30 = vadd.f32 %v1117_v26, %v1031_v18  ;;  %v1119_v31 = vpop.f32.mrb[2].mxu1  ;;  %v9066_v18 = vld [vmem:[#allocation10 + $0x364] ss:$16 sps:$4 sm:$0xff]  }
 0x3ad   : > { %v1123_v27 = vmax.f32 %v1077_v21, 0.0  ;;  %v1120_v34 = vpop.f32.mrb[3].mxu1  ;;  %v9069_v19 = vld [vmem:[#allocation10 + $0x36c] ss:$16 sps:$4 sm:$0xff]   ;;  %v9064_v20 = vld [vmem:[#allocation10 + $0x360] ss:$16 sps:$4 sm:$0xff]  }
 0x3ae   : > { %v1125_v36 = vmax.f32 %v1118_v30, 0.0  ;;  %v1255_v37 = vpack.c.bf16 %v1122_v24, %v1122_v24  ;;  %v9067_v21 = vld [vmem:[#allocation10 + $0x368] ss:$16 sps:$4 sm:$0xff]   ;;  %v9072_v22 = vld [vmem:[#allocation10 + $0x384] ss:$16 sps:$4 sm:$0xff]  }
 0x3af   : > { %v1256_v35 = vpack.c.bf16 %v1123_v27, %v1123_v27  ;;  %v9075_v24 = vld [vmem:[#allocation10 + $0x38c] ss:$16 sps:$4 sm:$0xff]   ;;  %v9070_v25 = vld [vmem:[#allocation10 + $0x380] ss:$16 sps:$4 sm:$0xff]   ;;  %v9073_v26 = vld [vmem:[#allocation10 + $0x388] ss:$16 sps:$4 sm:$0xff]  }
 0x3b0   : > { %v1258_v40 = vpack.c.bf16 %v1125_v36, %v1125_v36  ;;  %v9078_v27 = vld [vmem:[#allocation10 + $0x3a4] ss:$16 sps:$4 sm:$0xff]   ;;  %v9076_v30 = vld [vmem:[#allocation10 + $0x3a0] ss:$16 sps:$4 sm:$0xff]   ;;  %v9079_v31 = vld [vmem:[#allocation10 + $0x3a8] ss:$16 sps:$4 sm:$0xff]  }
 0x3b1   : > { %1952 = vmatprep.mubr.bf16.mxu0 %v1256_v35  ;;  %2034 = vmatprep.mubr.bf16.mxu1 %v1256_v35  ;;  %v9082_v35 = vld [vmem:[#allocation10 + $0x3c0] ss:$16 sps:$4 sm:$0xff]   ;;  %v9085_v36 = vld [vmem:[#allocation10 + $0x3c8] ss:$16 sps:$4 sm:$0xff]  }
 0x3b2   : > { %1953 = vmatmul.mubr.bf16.vlgmr.msra.gmra.mrb[4].mxu0 %v1255_v37  ;;  %2035 = vmatmul.mubr.bf16.vlgmr.msra.gmra.mrb[4].mxu1 %v1255_v37  ;;  %v9090_v37 = vld [vmem:[#allocation10 + $0x3e4] ss:$16 sps:$4 sm:$0xff]  }
 0x3b3   : > { %1962 = vmatpush1.bf16.msra.mxu0 %v8998_v28  ;;  %2044 = vmatpush1.bf16.msra.mxu1 %v9001_v29  ;;  %v9081_v28 = vld [vmem:[#allocation10 + $0x3ac] ss:$16 sps:$4 sm:$0xff]   ;;  %v12042_v29 = vsub.s32 2, %v12020_v10 }
 0x3b4   : > { %1963 = vmatprep.subr.bf16.mxu0 %v9006_v32  ;;  %2045 = vmatprep.subr.bf16.mxu1 %v9009_v33  ;;  %v9084_v32 = vld [vmem:[#allocation10 + $0x3c4] ss:$16 sps:$4 sm:$0xff]   ;;  %v9087_v33 = vld [vmem:[#allocation10 + $0x3cc] ss:$16 sps:$4 sm:$0xff]  }
 0x3b5   : > { %1993 = vmatprep.mubr.bf16.mxu0 %v1258_v40  ;;  %2075 = vmatprep.mubr.bf16.mxu1 %v1258_v40  ;;  %v1027_v34 = vrot.slane %v12025_v12, %v12042_v29  ;;  %v9091_v40 = vld [vmem:[#allocation10 + $0x3e8] ss:$16 sps:$4 sm:$0xff]   ;;  %v9094_v12 = vld [vmem:[#allocation13] ss:$16 sps:$4 sm:$0xff]  }
 0x3b7   : > { %1964 = vmatpush1.bf16.msra.mxu0 %v9004_v38  ;;  %2046 = vmatpush1.bf16.msra.mxu1 %v9007_v39  ;;  %v9093_v38 = vld [vmem:[#allocation10 + $0x3ec] ss:$16 sps:$4 sm:$0xff]   ;;  %v1116_v10 = vadd.f32 %v12039_v23, %v1027_v34  ;;  %v9088_v39 = vld [vmem:[#allocation10 + $0x3e0] ss:$16 sps:$4 sm:$0xff]   ;;  %v9100_v23 = vld [vmem:[#allocation13 + $0x20] ss:$16 sps:$4 sm:$0xff]  }
 0x3b8   : > { %1965 = vmatprep.subr.bf16.mxu0 %v9012_v41  ;;  %2047 = vmatprep.subr.bf16.mxu1 %v9015_v42  ;;  %v9096_v41 = vld [vmem:[#allocation13 + $0x4] ss:$16 sps:$4 sm:$0xff]   ;;  %v9099_v42 = vld [vmem:[#allocation13 + $0xc] ss:$16 sps:$4 sm:$0xff]   ;;  %v9166_v34 = vld [vmem:[#allocation13 + $0x180] ss:$16 sps:$4 sm:$0xff]  }
 0x3bb   : > { %1966 = vmatpush1.bf16.msra.mxu0 %v9010_v43  ;;  %2048 = vmatpush1.bf16.msra.mxu1 %v9013_v44  ;;  %v1124_v43 = vmax.f32 %v1116_v10, 0.0  ;;  %v9097_v44 = vld [vmem:[#allocation13 + $0x8] ss:$16 sps:$4 sm:$0xff]  }
 0x3bc   : > { %1967 = vmatprep.subr.bf16.mxu0 %v9018_v45  ;;  %2049 = vmatprep.subr.bf16.mxu1 %v9021_v46  ;;  %v9102_v45 = vld [vmem:[#allocation13 + $0x24] ss:$16 sps:$4 sm:$0xff]   ;;  %v9105_v46 = vld [vmem:[#allocation13 + $0x2c] ss:$16 sps:$4 sm:$0xff]   ;;  %v9175_v10 = vld [vmem:[#allocation13 + $0x1a8] ss:$16 sps:$4 sm:$0xff]  }
 0x3bf   : > { %1968 = vmatpush1.bf16.msra.mxu0 %v9016_v47  ;;  %2050 = vmatpush1.bf16.msra.mxu1 %v9019_v48  ;;  %v1257_v47 = vpack.c.bf16 %v1124_v43, %v1124_v43  ;;  %v9103_v48 = vld [vmem:[#allocation13 + $0x28] ss:$16 sps:$4 sm:$0xff]   ;;  %v9186_v43 = vld [vmem:[#allocation13 + $0x1e4] ss:$16 sps:$4 sm:$0xff]  }
 0x3c0   : > { %1969 = vmatprep.subr.bf16.mxu0 %v9024_v49  ;;  %2051 = vmatprep.subr.bf16.mxu1 %v9027_v50  ;;  %v9108_v49 = vld [vmem:[#allocation13 + $0x44] ss:$16 sps:$4 sm:$0xff]   ;;  %v9111_v50 = vld [vmem:[#allocation13 + $0x4c] ss:$16 sps:$4 sm:$0xff]  }
 0x3c3   : > { %1970 = vmatpush1.bf16.msra.mxu0 %v9022_v51  ;;  %2052 = vmatpush1.bf16.msra.mxu1 %v9025_v52  ;;  %v9106_v51 = vld [vmem:[#allocation13 + $0x40] ss:$16 sps:$4 sm:$0xff]   ;;  %v9109_v52 = vld [vmem:[#allocation13 + $0x48] ss:$16 sps:$4 sm:$0xff]  }
 0x3c4   : > { %1971 = vmatprep.subr.bf16.mxu0 %v9030_v53  ;;  %2053 = vmatprep.subr.bf16.mxu1 %v9033_v54  ;;  %v9114_v53 = vld [vmem:[#allocation13 + $0x64] ss:$16 sps:$4 sm:$0xff]   ;;  %v9117_v54 = vld [vmem:[#allocation13 + $0x6c] ss:$16 sps:$4 sm:$0xff]  }
 0x3c7   : > { %1972 = vmatpush1.bf16.msra.mxu0 %v9028_v55  ;;  %2054 = vmatpush1.bf16.msra.mxu1 %v9031_v56  ;;  %v9112_v55 = vld [vmem:[#allocation13 + $0x60] ss:$16 sps:$4 sm:$0xff]   ;;  %v9115_v56 = vld [vmem:[#allocation13 + $0x68] ss:$16 sps:$4 sm:$0xff]  }
 0x3c8   : > { %1973 = vmatprep.subr.bf16.mxu0 %v9036_v57  ;;  %2055 = vmatprep.subr.bf16.mxu1 %v9039_v58  ;;  %v9120_v57 = vld [vmem:[#allocation13 + $0x84] ss:$16 sps:$4 sm:$0xff]   ;;  %v9123_v58 = vld [vmem:[#allocation13 + $0x8c] ss:$16 sps:$4 sm:$0xff]  }
 0x3cb   : > { %1974 = vmatpush1.bf16.msra.mxu0 %v9034_v59  ;;  %2056 = vmatpush1.bf16.msra.mxu1 %v9037_v60  ;;  %v9118_v59 = vld [vmem:[#allocation13 + $0x80] ss:$16 sps:$4 sm:$0xff]   ;;  %v9121_v60 = vld [vmem:[#allocation13 + $0x88] ss:$16 sps:$4 sm:$0xff]  }
 0x3cc   : > { %1975 = vmatprep.subr.bf16.mxu0 %v9042_v61  ;;  %2057 = vmatprep.subr.bf16.mxu1 %v9045_v62  ;;  %v9126_v61 = vld [vmem:[#allocation13 + $0xa4] ss:$16 sps:$4 sm:$0xff]   ;;  %v9129_v62 = vld [vmem:[#allocation13 + $0xac] ss:$16 sps:$4 sm:$0xff]  }
 0x3cf   : > { %1976 = vmatpush1.bf16.msra.mxu0 %v9040_v63  ;;  %2058 = vmatpush1.bf16.msra.mxu1 %v9043_v0  ;;  %v9124_v63 = vld [vmem:[#allocation13 + $0xa0] ss:$16 sps:$4 sm:$0xff]   ;;  %v9127_v0 = vld [vmem:[#allocation13 + $0xa8] ss:$16 sps:$4 sm:$0xff]  }
 0x3d0   : > { %1977 = vmatprep.subr.bf16.mxu0 %v9048_v1  ;;  %2059 = vmatprep.subr.bf16.mxu1 %v9051_v2  ;;  %v9132_v1 = vld [vmem:[#allocation13 + $0xc4] ss:$16 sps:$4 sm:$0xff]   ;;  %v9135_v2 = vld [vmem:[#allocation13 + $0xcc] ss:$16 sps:$4 sm:$0xff]  }
 0x3d3   : > { %1978 = vmatpush1.bf16.msra.mxu0 %v9046_v3  ;;  %2060 = vmatpush1.bf16.msra.mxu1 %v9049_v4  ;;  %v9130_v3 = vld [vmem:[#allocation13 + $0xc0] ss:$16 sps:$4 sm:$0xff]   ;;  %v9133_v4 = vld [vmem:[#allocation13 + $0xc8] ss:$16 sps:$4 sm:$0xff]  }
 0x3d4   : > { %1979 = vmatprep.subr.bf16.mxu0 %v9054_v5  ;;  %2061 = vmatprep.subr.bf16.mxu1 %v9057_v6  ;;  %v9138_v5 = vld [vmem:[#allocation13 + $0xe4] ss:$16 sps:$4 sm:$0xff]   ;;  %v9141_v6 = vld [vmem:[#allocation13 + $0xec] ss:$16 sps:$4 sm:$0xff]  }
 0x3d7   : > { %1980 = vmatpush1.bf16.msra.mxu0 %v9052_v7  ;;  %2062 = vmatpush1.bf16.msra.mxu1 %v9055_v8  ;;  %v9136_v7 = vld [vmem:[#allocation13 + $0xe0] ss:$16 sps:$4 sm:$0xff]   ;;  %v9139_v8 = vld [vmem:[#allocation13 + $0xe8] ss:$16 sps:$4 sm:$0xff]  }
 0x3d8   : > { %1981 = vmatprep.subr.bf16.mxu0 %v9060_v9  ;;  %2063 = vmatprep.subr.bf16.mxu1 %v9063_v15  ;;  %v9144_v9 = vld [vmem:[#allocation13 + $0x104] ss:$16 sps:$4 sm:$0xff]   ;;  %v9147_v15 = vld [vmem:[#allocation13 + $0x10c] ss:$16 sps:$4 sm:$0xff]  }
 0x3db   : > { %1982 = vmatpush1.bf16.msra.mxu0 %v9058_v16  ;;  %2064 = vmatpush1.bf16.msra.mxu1 %v9061_v17  ;;  %v9142_v16 = vld [vmem:[#allocation13 + $0x100] ss:$16 sps:$4 sm:$0xff]   ;;  %v9145_v17 = vld [vmem:[#allocation13 + $0x108] ss:$16 sps:$4 sm:$0xff]  }
 0x3dc   : > { %1983 = vmatprep.subr.bf16.mxu0 %v9066_v18  ;;  %2065 = vmatprep.subr.bf16.mxu1 %v9069_v19  ;;  %v9150_v18 = vld [vmem:[#allocation13 + $0x124] ss:$16 sps:$4 sm:$0xff]   ;;  %v9153_v19 = vld [vmem:[#allocation13 + $0x12c] ss:$16 sps:$4 sm:$0xff]  }
 0x3df   : > { %1984 = vmatpush1.bf16.msra.mxu0 %v9064_v20  ;;  %2066 = vmatpush1.bf16.msra.mxu1 %v9067_v21  ;;  %v9148_v20 = vld [vmem:[#allocation13 + $0x120] ss:$16 sps:$4 sm:$0xff]   ;;  %v9151_v21 = vld [vmem:[#allocation13 + $0x128] ss:$16 sps:$4 sm:$0xff]  }
 0x3e0   : > { %1985 = vmatprep.subr.bf16.mxu0 %v9072_v22  ;;  %2067 = vmatprep.subr.bf16.mxu1 %v9075_v24  ;;  %v9156_v22 = vld [vmem:[#allocation13 + $0x144] ss:$16 sps:$4 sm:$0xff]   ;;  %v9159_v24 = vld [vmem:[#allocation13 + $0x14c] ss:$16 sps:$4 sm:$0xff]  }
 0x3e3   : > { %1986 = vmatpush1.bf16.msra.mxu0 %v9070_v25  ;;  %2068 = vmatpush1.bf16.msra.mxu1 %v9073_v26  ;;  %v9154_v25 = vld [vmem:[#allocation13 + $0x140] ss:$16 sps:$4 sm:$0xff]   ;;  %v9157_v26 = vld [vmem:[#allocation13 + $0x148] ss:$16 sps:$4 sm:$0xff]  }
 0x3e4   : > { %1987 = vmatprep.subr.bf16.mxu0 %v9078_v27  ;;  %2069 = vmatprep.subr.bf16.mxu1 %v9081_v28  ;;  %v9162_v27 = vld [vmem:[#allocation13 + $0x164] ss:$16 sps:$4 sm:$0xff]   ;;  %v9165_v28 = vld [vmem:[#allocation13 + $0x16c] ss:$16 sps:$4 sm:$0xff]  }
 0x3e7   : > { %1988 = vmatpush1.bf16.msra.mxu0 %v9076_v30  ;;  %2070 = vmatpush1.bf16.msra.mxu1 %v9079_v31  ;;  %v9160_v30 = vld [vmem:[#allocation13 + $0x160] ss:$16 sps:$4 sm:$0xff]   ;;  %v9163_v31 = vld [vmem:[#allocation13 + $0x168] ss:$16 sps:$4 sm:$0xff]  }
 0x3e8   : > { %1989 = vmatprep.subr.bf16.mxu0 %v9084_v32  ;;  %2071 = vmatprep.subr.bf16.mxu1 %v9087_v33  ;;  %v9168_v32 = vld [vmem:[#allocation13 + $0x184] ss:$16 sps:$4 sm:$0xff]   ;;  %v9171_v33 = vld [vmem:[#allocation13 + $0x18c] ss:$16 sps:$4 sm:$0xff]  }
 0x3eb   : > { %1990 = vmatpush1.bf16.msra.mxu0 %v9082_v35  ;;  %2072 = vmatpush1.bf16.msra.mxu1 %v9085_v36  ;;  %v9169_v35 = vld [vmem:[#allocation13 + $0x188] ss:$16 sps:$4 sm:$0xff]   ;;  %v9174_v36 = vld [vmem:[#allocation13 + $0x1a4] ss:$16 sps:$4 sm:$0xff]  }
 0x3ec   : > { %1991 = vmatprep.subr.bf16.mxu0 %v9090_v37  ;;  %2073 = vmatprep.subr.bf16.mxu1 %v9093_v38  ;;  %v9177_v37 = vld [vmem:[#allocation13 + $0x1ac] ss:$16 sps:$4 sm:$0xff]   ;;  %v9172_v38 = vld [vmem:[#allocation13 + $0x1a0] ss:$16 sps:$4 sm:$0xff]  }
 0x3ef   : > { %1992 = vmatpush1.bf16.msra.mxu0 %v9088_v39  ;;  %2074 = vmatpush1.bf16.msra.mxu1 %v9091_v40  ;;  %v9180_v39 = vld [vmem:[#allocation13 + $0x1c4] ss:$16 sps:$4 sm:$0xff]   ;;  %v9183_v40 = vld [vmem:[#allocation13 + $0x1cc] ss:$16 sps:$4 sm:$0xff]  }
 0x3f0   : > { %2882 = vmatprep.subr.bf16.mxu0 %v9096_v41  ;;  %2964 = vmatprep.subr.bf16.mxu1 %v9099_v42  ;;  %v9178_v41 = vld [vmem:[#allocation13 + $0x1c0] ss:$16 sps:$4 sm:$0xff]   ;;  %v9181_v42 = vld [vmem:[#allocation13 + $0x1c8] ss:$16 sps:$4 sm:$0xff]  }
 0x3f2   : > { %1994 = vmatmul.mubr.bf16.vlgmr.msra.gmra.mrb[4].mxu0 %v1257_v47  ;;  %2076 = vmatmul.mubr.bf16.vlgmr.msra.gmra.mrb[4].mxu1 %v1257_v47  ;;  %v9195_v47 = vld [vmem:[#allocation13 + $0x20c] ss:$16 sps:$4 sm:$0xff]  }
 0x3f3   : > { %2883 = vmatpush1.bf16.msra.mxu0 %v9094_v12  ;;  %2965 = vmatpush1.bf16.msra.mxu1 %v9097_v44  ;;  %v9189_v12 = vld [vmem:[#allocation13 + $0x1ec] ss:$16 sps:$4 sm:$0xff]   ;;  %v9184_v44 = vld [vmem:[#allocation13 + $0x1e0] ss:$16 sps:$4 sm:$0xff]  }
 0x3f4   : > { %2884 = vmatprep.subr.bf16.mxu0 %v9102_v45  ;;  %2966 = vmatprep.subr.bf16.mxu1 %v9105_v46  ;;  %v9187_v45 = vld [vmem:[#allocation13 + $0x1e8] ss:$16 sps:$4 sm:$0xff]   ;;  %v9192_v46 = vld [vmem:[#allocation13 + $0x204] ss:$16 sps:$4 sm:$0xff]  }
 0x3f7   : > { %2885 = vmatpush1.bf16.msra.mxu0 %v9100_v23  ;;  %2967 = vmatpush1.bf16.msra.mxu1 %v9103_v48  ;;  %v12047_v23 = vld [vmem:[#allocation12] sm:$0xf] }
 0x3f8   : > { %2886 = vmatprep.subr.bf16.mxu0 %v9108_v49  ;;  %2968 = vmatprep.subr.bf16.mxu1 %v9111_v50  ;;  %v1903_v48 = vrot.slane %v12047_v23, %v12023_v11  ;;  %v1907_v49 = vrot.slane %v12047_v23, %v12028_v13  ;;  %v1915_v50 = vrot.slane %v12047_v23, %v12031_v14 }
 0x3fb   : > { %2887 = vmatpush1.bf16.msra.mxu0 %v9106_v51  ;;  %2969 = vmatpush1.bf16.msra.mxu1 %v9109_v52 }
 0x3fc   : > { %2888 = vmatprep.subr.bf16.mxu0 %v9114_v53  ;;  %2970 = vmatprep.subr.bf16.mxu1 %v9117_v54 }
 0x3ff   : > { %2889 = vmatpush1.bf16.msra.mxu0 %v9112_v55  ;;  %2971 = vmatpush1.bf16.msra.mxu1 %v9115_v56 }
 0x400   : > { %2890 = vmatprep.subr.bf16.mxu0 %v9120_v57  ;;  %2972 = vmatprep.subr.bf16.mxu1 %v9123_v58 }
 0x403   : > { %2891 = vmatpush1.bf16.msra.mxu0 %v9118_v59  ;;  %2973 = vmatpush1.bf16.msra.mxu1 %v9121_v60 }
 0x404   : > { %2892 = vmatprep.subr.bf16.mxu0 %v9126_v61  ;;  %2974 = vmatprep.subr.bf16.mxu1 %v9129_v62 }
 0x407   : > { %2893 = vmatpush1.bf16.msra.mxu0 %v9124_v63  ;;  %2975 = vmatpush1.bf16.msra.mxu1 %v9127_v0 }
 0x408   : > { %2894 = vmatprep.subr.bf16.mxu0 %v9132_v1  ;;  %2976 = vmatprep.subr.bf16.mxu1 %v9135_v2  ;;  %v9190_v2 = vld [vmem:[#allocation13 + $0x200] ss:$16 sps:$4 sm:$0xff]  }
 0x40b   : > { %2895 = vmatpush1.bf16.msra.mxu0 %v9130_v3  ;;  %2977 = vmatpush1.bf16.msra.mxu1 %v9133_v4  ;;  %v9193_v3 = vld [vmem:[#allocation13 + $0x208] ss:$16 sps:$4 sm:$0xff]  }
 0x40c   : > { %2896 = vmatprep.subr.bf16.mxu0 %v9138_v5  ;;  %2978 = vmatprep.subr.bf16.mxu1 %v9141_v6  ;;  %v9198_v5 = vld [vmem:[#allocation13 + $0x224] ss:$16 sps:$4 sm:$0xff]   ;;  %v9201_v6 = vld [vmem:[#allocation13 + $0x22c] ss:$16 sps:$4 sm:$0xff]  }
 0x40f   : > { %2897 = vmatpush1.bf16.msra.mxu0 %v9136_v7  ;;  %2979 = vmatpush1.bf16.msra.mxu1 %v9139_v8  ;;  %v9196_v8 = vld [vmem:[#allocation13 + $0x220] ss:$16 sps:$4 sm:$0xff]  }
 0x410   : > { %2898 = vmatprep.subr.bf16.mxu0 %v9144_v9  ;;  %2980 = vmatprep.subr.bf16.mxu1 %v9147_v15  ;;  %v9199_v9 = vld [vmem:[#allocation13 + $0x228] ss:$16 sps:$4 sm:$0xff]   ;;  %v9204_v15 = vld [vmem:[#allocation13 + $0x244] ss:$16 sps:$4 sm:$0xff]  }
 0x413   : > { %2899 = vmatpush1.bf16.msra.mxu0 %v9142_v16  ;;  %2981 = vmatpush1.bf16.msra.mxu1 %v9145_v17  ;;  %v9207_v16 = vld [vmem:[#allocation13 + $0x24c] ss:$16 sps:$4 sm:$0xff]   ;;  %v9202_v17 = vld [vmem:[#allocation13 + $0x240] ss:$16 sps:$4 sm:$0xff]  }
 0x414   : > { %2900 = vmatprep.subr.bf16.mxu0 %v9150_v18  ;;  %2982 = vmatprep.subr.bf16.mxu1 %v9153_v19  ;;  %v9205_v18 = vld [vmem:[#allocation13 + $0x248] ss:$16 sps:$4 sm:$0xff]   ;;  %v9210_v19 = vld [vmem:[#allocation13 + $0x264] ss:$16 sps:$4 sm:$0xff]  }
 0x417   : > { %2901 = vmatpush1.bf16.msra.mxu0 %v9148_v20  ;;  %2983 = vmatpush1.bf16.msra.mxu1 %v9151_v21  ;;  %v9213_v20 = vld [vmem:[#allocation13 + $0x26c] ss:$16 sps:$4 sm:$0xff]   ;;  %v9208_v21 = vld [vmem:[#allocation13 + $0x260] ss:$16 sps:$4 sm:$0xff]  }
 0x418   : > { %2902 = vmatprep.subr.bf16.mxu0 %v9156_v22  ;;  %2984 = vmatprep.subr.bf16.mxu1 %v9159_v24  ;;  %v9211_v22 = vld [vmem:[#allocation13 + $0x268] ss:$16 sps:$4 sm:$0xff]   ;;  %v9216_v24 = vld [vmem:[#allocation13 + $0x284] ss:$16 sps:$4 sm:$0xff]  }
 0x41b   : > { %2903 = vmatpush1.bf16.msra.mxu0 %v9154_v25  ;;  %2985 = vmatpush1.bf16.msra.mxu1 %v9157_v26  ;;  %v9219_v25 = vld [vmem:[#allocation13 + $0x28c] ss:$16 sps:$4 sm:$0xff]   ;;  %v9214_v26 = vld [vmem:[#allocation13 + $0x280] ss:$16 sps:$4 sm:$0xff]  }
 0x41c   : > { %2904 = vmatprep.subr.bf16.mxu0 %v9162_v27  ;;  %2986 = vmatprep.subr.bf16.mxu1 %v9165_v28  ;;  %v9217_v27 = vld [vmem:[#allocation13 + $0x288] ss:$16 sps:$4 sm:$0xff]   ;;  %v9222_v28 = vld [vmem:[#allocation13 + $0x2a4] ss:$16 sps:$4 sm:$0xff]  }
 0x41f   : > { %2905 = vmatpush1.bf16.msra.mxu0 %v9160_v30  ;;  %2987 = vmatpush1.bf16.msra.mxu1 %v9163_v31  ;;  %v9225_v30 = vld [vmem:[#allocation13 + $0x2ac] ss:$16 sps:$4 sm:$0xff]   ;;  %v9220_v31 = vld [vmem:[#allocation13 + $0x2a0] ss:$16 sps:$4 sm:$0xff]  }
 0x420   : > { %2906 = vmatprep.subr.bf16.mxu0 %v9168_v32  ;;  %2988 = vmatprep.subr.bf16.mxu1 %v9171_v33  ;;  %v9223_v32 = vld [vmem:[#allocation13 + $0x2a8] ss:$16 sps:$4 sm:$0xff]   ;;  %v9228_v33 = vld [vmem:[#allocation13 + $0x2c4] ss:$16 sps:$4 sm:$0xff]  }
 0x423   : > { %2907 = vmatpush1.bf16.msra.mxu0 %v9166_v34  ;;  %2989 = vmatpush1.bf16.msra.mxu1 %v9169_v35  ;;  %v9231_v34 = vld [vmem:[#allocation13 + $0x2cc] ss:$16 sps:$4 sm:$0xff]   ;;  %v9226_v35 = vld [vmem:[#allocation13 + $0x2c0] ss:$16 sps:$4 sm:$0xff]  }
 0x424   : > { %2908 = vmatprep.subr.bf16.mxu0 %v9174_v36  ;;  %2990 = vmatprep.subr.bf16.mxu1 %v9177_v37  ;;  %v9229_v36 = vld [vmem:[#allocation13 + $0x2c8] ss:$16 sps:$4 sm:$0xff]   ;;  %v9234_v37 = vld [vmem:[#allocation13 + $0x2e4] ss:$16 sps:$4 sm:$0xff]  }
 0x427   : > { %2909 = vmatpush1.bf16.msra.mxu0 %v9172_v38  ;;  %2991 = vmatpush1.bf16.msra.mxu1 %v9175_v10  ;;  %v9237_v38 = vld [vmem:[#allocation13 + $0x2ec] ss:$16 sps:$4 sm:$0xff]   ;;  %v9232_v10 = vld [vmem:[#allocation13 + $0x2e0] ss:$16 sps:$4 sm:$0xff]  }
 0x428   : > { %2910 = vmatprep.subr.bf16.mxu0 %v9180_v39  ;;  %2992 = vmatprep.subr.bf16.mxu1 %v9183_v40  ;;  %v9235_v39 = vld [vmem:[#allocation13 + $0x2e8] ss:$16 sps:$4 sm:$0xff]   ;;  %v9240_v40 = vld [vmem:[#allocation13 + $0x304] ss:$16 sps:$4 sm:$0xff]  }
 0x42b   : > { %2911 = vmatpush1.bf16.msra.mxu0 %v9178_v41  ;;  %2993 = vmatpush1.bf16.msra.mxu1 %v9181_v42  ;;  %v9243_v41 = vld [vmem:[#allocation13 + $0x30c] ss:$16 sps:$4 sm:$0xff]   ;;  %v9238_v42 = vld [vmem:[#allocation13 + $0x300] ss:$16 sps:$4 sm:$0xff]  }
 0x42c   : > { %2912 = vmatprep.subr.bf16.mxu0 %v9186_v43  ;;  %2994 = vmatprep.subr.bf16.mxu1 %v9189_v12  ;;  %v9241_v43 = vld [vmem:[#allocation13 + $0x308] ss:$16 sps:$4 sm:$0xff]   ;;  %v9246_v12 = vld [vmem:[#allocation13 + $0x324] ss:$16 sps:$4 sm:$0xff]  }
 0x42f   : > { %2913 = vmatpush1.bf16.msra.mxu0 %v9184_v44  ;;  %2995 = vmatpush1.bf16.msra.mxu1 %v9187_v45  ;;  %v9249_v44 = vld [vmem:[#allocation13 + $0x32c] ss:$16 sps:$4 sm:$0xff]   ;;  %v9244_v45 = vld [vmem:[#allocation13 + $0x320] ss:$16 sps:$4 sm:$0xff]  }
 0x430   : > { %2923 = vmatprep.subr.bf16.mxu0 %v9192_v46  ;;  %3005 = vmatprep.subr.bf16.mxu1 %v9195_v47  ;;  %v9247_v46 = vld [vmem:[#allocation13 + $0x328] ss:$16 sps:$4 sm:$0xff]   ;;  %v9252_v47 = vld [vmem:[#allocation13 + $0x344] ss:$16 sps:$4 sm:$0xff]  }
 0x4c5   : > { %v1995_v51 = vpop.f32.mrb[4].mxu0  ;;  %v12055_v52 = vpop.f32.mrb[4].mxu1 }
 0x4c6   : > { %v8462_v53 = vadd.f32 %v1995_v51, %v1903_v48  ;;  %v1997_v54 = vpop.f32.mrb[5].mxu0  ;;  %v2079_v55 = vpop.f32.mrb[5].mxu1  ;;  %v9255_v48 = vld [vmem:[#allocation13 + $0x34c] ss:$16 sps:$4 sm:$0xff]   ;;  %v9258_v51 = vld [vmem:[#allocation13 + $0x364] ss:$16 sps:$4 sm:$0xff]  }
 0x4c7   : > { %v8463_v56 = vadd.f32 %v1997_v54, %v1907_v49  ;;  %v8465_v57 = vadd.f32 %v2079_v55, %v1915_v50  ;;  %v1999_v58 = vpop.f32.mrb[6].mxu0  ;;  %v2081_v59 = vpop.f32.mrb[6].mxu1  ;;  %v9250_v49 = vld [vmem:[#allocation13 + $0x340] ss:$16 sps:$4 sm:$0xff]   ;;  %v9253_v50 = vld [vmem:[#allocation13 + $0x348] ss:$16 sps:$4 sm:$0xff]  }
 0x4c8   : > { %v2084_v60 = vmax.f32 %v8462_v53, 0.0  ;;  %v2000_v61 = vpop.f32.mrb[7].mxu0  ;;  %v2082_v62 = vpop.f32.mrb[7].mxu1  ;;  %v9261_v53 = vld [vmem:[#allocation13 + $0x36c] ss:$16 sps:$4 sm:$0xff]  }
 0x4c9   : > { %v2085_v63 = vmax.f32 %v8463_v56, 0.0  ;;  %v2087_v0 = vmax.f32 %v8465_v57, 0.0  ;;  %v9256_v54 = vld [vmem:[#allocation13 + $0x360] ss:$16 sps:$4 sm:$0xff]   ;;  %v9259_v55 = vld [vmem:[#allocation13 + $0x368] ss:$16 sps:$4 sm:$0xff]  }
 0x4ca   : > { %v2217_v4 = vpack.c.bf16 %v2084_v60, %v2084_v60  ;;  %v9264_v56 = vld [vmem:[#allocation13 + $0x384] ss:$16 sps:$4 sm:$0xff]   ;;  %v9267_v57 = vld [vmem:[#allocation13 + $0x38c] ss:$16 sps:$4 sm:$0xff]   ;;  %v9262_v58 = vld [vmem:[#allocation13 + $0x380] ss:$16 sps:$4 sm:$0xff]  }
 0x4cb   : > { %v2218_v1 = vpack.c.bf16 %v2085_v63, %v2085_v63  ;;  %v2220_v7 = vpack.c.bf16 %v2087_v0, %v2087_v0  ;;  %v9265_v59 = vld [vmem:[#allocation13 + $0x388] ss:$16 sps:$4 sm:$0xff]   ;;  %v9270_v60 = vld [vmem:[#allocation13 + $0x3a4] ss:$16 sps:$4 sm:$0xff]   ;;  %v9273_v61 = vld [vmem:[#allocation13 + $0x3ac] ss:$16 sps:$4 sm:$0xff]   ;;  %v1911_v0 = vrot.slane %v12047_v23, %v12042_v29 }
 0x4cc   : > { %v9268_v62 = vld [vmem:[#allocation13 + $0x3a0] ss:$16 sps:$4 sm:$0xff]   ;;  %v9271_v63 = vld [vmem:[#allocation13 + $0x3a8] ss:$16 sps:$4 sm:$0xff]  }
 0x4cd   : > { %2914 = vmatprep.mubr.bf16.mxu0 %v2218_v1  ;;  %2996 = vmatprep.mubr.bf16.mxu1 %v2218_v1  ;;  %v9276_v1 = vld [vmem:[#allocation13 + $0x3c4] ss:$16 sps:$4 sm:$0xff]   ;;  %v9288_v23 = vld [vmem:[#allocation16 + $0x4] ss:$16 sps:$4 sm:$0xff]  }
 0x4ce   : > { %2915 = vmatmul.mubr.bf16.vlgmr.msra.gmra.mrb[8].mxu0 %v2217_v4  ;;  %2997 = vmatmul.mubr.bf16.vlgmr.msra.gmra.mrb[8].mxu1 %v2217_v4  ;;  %v9277_v4 = vld [vmem:[#allocation13 + $0x3c8] ss:$16 sps:$4 sm:$0xff]  }
 0x4cf   : > { %2924 = vmatpush1.bf16.msra.mxu0 %v9190_v2  ;;  %3006 = vmatpush1.bf16.msra.mxu1 %v9193_v3  ;;  %v9279_v2 = vld [vmem:[#allocation13 + $0x3cc] ss:$16 sps:$4 sm:$0xff]   ;;  %v9274_v3 = vld [vmem:[#allocation13 + $0x3c0] ss:$16 sps:$4 sm:$0xff]  }
 0x4d0   : > { %2955 = vmatprep.mubr.bf16.mxu0 %v2220_v7  ;;  %3037 = vmatprep.mubr.bf16.mxu1 %v2220_v7  ;;  %v9285_v7 = vld [vmem:[#allocation13 + $0x3ec] ss:$16 sps:$4 sm:$0xff]  }
 0x4d1   : > { %2925 = vmatprep.subr.bf16.mxu0 %v9198_v5  ;;  %3007 = vmatprep.subr.bf16.mxu1 %v9201_v6  ;;  %v8464_v5 = vadd.f32 %v12055_v52, %v1911_v0  ;;  %v9282_v6 = vld [vmem:[#allocation13 + $0x3e4] ss:$16 sps:$4 sm:$0xff]   ;;  %v9294_v52 = vld [vmem:[#allocation16 + $0x24] ss:$16 sps:$4 sm:$0xff]  }
 0x4d2   : > { %v9360_v0 = vld [vmem:[#allocation16 + $0x184] ss:$16 sps:$4 sm:$0xff]  }
 0x4d3   : > { %2926 = vmatpush1.bf16.msra.mxu0 %v9196_v8  ;;  %3008 = vmatpush1.bf16.msra.mxu1 %v9199_v9  ;;  %v9280_v8 = vld [vmem:[#allocation13 + $0x3e0] ss:$16 sps:$4 sm:$0xff]   ;;  %v9283_v9 = vld [vmem:[#allocation13 + $0x3e8] ss:$16 sps:$4 sm:$0xff]  }
 0x4d4   : > { %2927 = vmatprep.subr.bf16.mxu0 %v9204_v15  ;;  %3009 = vmatprep.subr.bf16.mxu1 %v9207_v16  ;;  %v2086_v15 = vmax.f32 %v8464_v5, 0.0  ;;  %v9291_v16 = vld [vmem:[#allocation16 + $0xc] ss:$16 sps:$4 sm:$0xff]  }
 0x4d5   : > { %v9369_v5 = vld [vmem:[#allocation16 + $0x1ac] ss:$16 sps:$4 sm:$0xff]  }
 0x4d7   : > { %2928 = vmatpush1.bf16.msra.mxu0 %v9202_v17  ;;  %3010 = vmatpush1.bf16.msra.mxu1 %v9205_v18  ;;  %v9286_v17 = vld [vmem:[#allocation16] ss:$16 sps:$4 sm:$0xff]   ;;  %v9289_v18 = vld [vmem:[#allocation16 + $0x8] ss:$16 sps:$4 sm:$0xff]  }
 0x4d8   : > { %2929 = vmatprep.subr.bf16.mxu0 %v9210_v19  ;;  %3011 = vmatprep.subr.bf16.mxu1 %v9213_v20  ;;  %v2219_v19 = vpack.c.bf16 %v2086_v15, %v2086_v15  ;;  %v9297_v20 = vld [vmem:[#allocation16 + $0x2c] ss:$16 sps:$4 sm:$0xff]   ;;  %v9370_v15 = vld [vmem:[#allocation16 + $0x1c0] ss:$16 sps:$4 sm:$0xff]  }
 0x4db   : > { %2930 = vmatpush1.bf16.msra.mxu0 %v9208_v21  ;;  %3012 = vmatpush1.bf16.msra.mxu1 %v9211_v22  ;;  %v9292_v21 = vld [vmem:[#allocation16 + $0x20] ss:$16 sps:$4 sm:$0xff]   ;;  %v9295_v22 = vld [vmem:[#allocation16 + $0x28] ss:$16 sps:$4 sm:$0xff]  }
 0x4dc   : > { %2931 = vmatprep.subr.bf16.mxu0 %v9216_v24  ;;  %3013 = vmatprep.subr.bf16.mxu1 %v9219_v25  ;;  %v9300_v24 = vld [vmem:[#allocation16 + $0x44] ss:$16 sps:$4 sm:$0xff]   ;;  %v9303_v25 = vld [vmem:[#allocation16 + $0x4c] ss:$16 sps:$4 sm:$0xff]  }
 0x4df   : > { %2932 = vmatpush1.bf16.msra.mxu0 %v9214_v26  ;;  %3014 = vmatpush1.bf16.msra.mxu1 %v9217_v27  ;;  %v9298_v26 = vld [vmem:[#allocation16 + $0x40] ss:$16 sps:$4 sm:$0xff]   ;;  %v9301_v27 = vld [vmem:[#allocation16 + $0x48] ss:$16 sps:$4 sm:$0xff]  }
 0x4e0   : > { %2933 = vmatprep.subr.bf16.mxu0 %v9222_v28  ;;  %3015 = vmatprep.subr.bf16.mxu1 %v9225_v30  ;;  %v9306_v28 = vld [vmem:[#allocation16 + $0x64] ss:$16 sps:$4 sm:$0xff]   ;;  %v9309_v30 = vld [vmem:[#allocation16 + $0x6c] ss:$16 sps:$4 sm:$0xff]  }
 0x4e3   : > { %2934 = vmatpush1.bf16.msra.mxu0 %v9220_v31  ;;  %3016 = vmatpush1.bf16.msra.mxu1 %v9223_v32  ;;  %v9304_v31 = vld [vmem:[#allocation16 + $0x60] ss:$16 sps:$4 sm:$0xff]   ;;  %v9307_v32 = vld [vmem:[#allocation16 + $0x68] ss:$16 sps:$4 sm:$0xff]  }
 0x4e4   : > { %2935 = vmatprep.subr.bf16.mxu0 %v9228_v33  ;;  %3017 = vmatprep.subr.bf16.mxu1 %v9231_v34  ;;  %v9312_v33 = vld [vmem:[#allocation16 + $0x84] ss:$16 sps:$4 sm:$0xff]   ;;  %v9315_v34 = vld [vmem:[#allocation16 + $0x8c] ss:$16 sps:$4 sm:$0xff]  }
 0x4e7   : > { %2936 = vmatpush1.bf16.msra.mxu0 %v9226_v35  ;;  %3018 = vmatpush1.bf16.msra.mxu1 %v9229_v36  ;;  %v9310_v35 = vld [vmem:[#allocation16 + $0x80] ss:$16 sps:$4 sm:$0xff]   ;;  %v9313_v36 = vld [vmem:[#allocation16 + $0x88] ss:$16 sps:$4 sm:$0xff]  }
 0x4e8   : > { %2937 = vmatprep.subr.bf16.mxu0 %v9234_v37  ;;  %3019 = vmatprep.subr.bf16.mxu1 %v9237_v38  ;;  %v9318_v37 = vld [vmem:[#allocation16 + $0xa4] ss:$16 sps:$4 sm:$0xff]   ;;  %v9321_v38 = vld [vmem:[#allocation16 + $0xac] ss:$16 sps:$4 sm:$0xff]  }
 0x4eb   : > { %2938 = vmatpush1.bf16.msra.mxu0 %v9232_v10  ;;  %3020 = vmatpush1.bf16.msra.mxu1 %v9235_v39  ;;  %v9316_v10 = vld [vmem:[#allocation16 + $0xa0] ss:$16 sps:$4 sm:$0xff]   ;;  %v9319_v39 = vld [vmem:[#allocation16 + $0xa8] ss:$16 sps:$4 sm:$0xff]  }
 0x4ec   : > { %2939 = vmatprep.subr.bf16.mxu0 %v9240_v40  ;;  %3021 = vmatprep.subr.bf16.mxu1 %v9243_v41  ;;  %v9324_v40 = vld [vmem:[#allocation16 + $0xc4] ss:$16 sps:$4 sm:$0xff]   ;;  %v9327_v41 = vld [vmem:[#allocation16 + $0xcc] ss:$16 sps:$4 sm:$0xff]  }
 0x4ef   : > { %2940 = vmatpush1.bf16.msra.mxu0 %v9238_v42  ;;  %3022 = vmatpush1.bf16.msra.mxu1 %v9241_v43  ;;  %v9322_v42 = vld [vmem:[#allocation16 + $0xc0] ss:$16 sps:$4 sm:$0xff]   ;;  %v9325_v43 = vld [vmem:[#allocation16 + $0xc8] ss:$16 sps:$4 sm:$0xff]  }
 0x4f0   : > { %2941 = vmatprep.subr.bf16.mxu0 %v9246_v12  ;;  %3023 = vmatprep.subr.bf16.mxu1 %v9249_v44  ;;  %v9330_v12 = vld [vmem:[#allocation16 + $0xe4] ss:$16 sps:$4 sm:$0xff]   ;;  %v9333_v44 = vld [vmem:[#allocation16 + $0xec] ss:$16 sps:$4 sm:$0xff]  }
 0x4f3   : > { %2942 = vmatpush1.bf16.msra.mxu0 %v9244_v45  ;;  %3024 = vmatpush1.bf16.msra.mxu1 %v9247_v46  ;;  %v9328_v45 = vld [vmem:[#allocation16 + $0xe0] ss:$16 sps:$4 sm:$0xff]   ;;  %v9331_v46 = vld [vmem:[#allocation16 + $0xe8] ss:$16 sps:$4 sm:$0xff]  }
 0x4f4   : > { %2943 = vmatprep.subr.bf16.mxu0 %v9252_v47  ;;  %3025 = vmatprep.subr.bf16.mxu1 %v9255_v48  ;;  %v9336_v47 = vld [vmem:[#allocation16 + $0x104] ss:$16 sps:$4 sm:$0xff]   ;;  %v9339_v48 = vld [vmem:[#allocation16 + $0x10c] ss:$16 sps:$4 sm:$0xff]  }
 0x4f7   : > { %2944 = vmatpush1.bf16.msra.mxu0 %v9250_v49  ;;  %3026 = vmatpush1.bf16.msra.mxu1 %v9253_v50  ;;  %v9334_v49 = vld [vmem:[#allocation16 + $0x100] ss:$16 sps:$4 sm:$0xff]   ;;  %v9337_v50 = vld [vmem:[#allocation16 + $0x108] ss:$16 sps:$4 sm:$0xff]  }
 0x4f8   : > { %2945 = vmatprep.subr.bf16.mxu0 %v9258_v51  ;;  %3027 = vmatprep.subr.bf16.mxu1 %v9261_v53  ;;  %v9342_v51 = vld [vmem:[#allocation16 + $0x124] ss:$16 sps:$4 sm:$0xff]   ;;  %v9345_v53 = vld [vmem:[#allocation16 + $0x12c] ss:$16 sps:$4 sm:$0xff]  }
 0x4fb   : > { %2946 = vmatpush1.bf16.msra.mxu0 %v9256_v54  ;;  %3028 = vmatpush1.bf16.msra.mxu1 %v9259_v55  ;;  %v9340_v54 = vld [vmem:[#allocation16 + $0x120] ss:$16 sps:$4 sm:$0xff]   ;;  %v9343_v55 = vld [vmem:[#allocation16 + $0x128] ss:$16 sps:$4 sm:$0xff]  }
 0x4fc   : > { %2947 = vmatprep.subr.bf16.mxu0 %v9264_v56  ;;  %3029 = vmatprep.subr.bf16.mxu1 %v9267_v57  ;;  %v9348_v56 = vld [vmem:[#allocation16 + $0x144] ss:$16 sps:$4 sm:$0xff]   ;;  %v9351_v57 = vld [vmem:[#allocation16 + $0x14c] ss:$16 sps:$4 sm:$0xff]  }
 0x4ff   : > { %2948 = vmatpush1.bf16.msra.mxu0 %v9262_v58  ;;  %3030 = vmatpush1.bf16.msra.mxu1 %v9265_v59  ;;  %v9346_v58 = vld [vmem:[#allocation16 + $0x140] ss:$16 sps:$4 sm:$0xff]   ;;  %v9349_v59 = vld [vmem:[#allocation16 + $0x148] ss:$16 sps:$4 sm:$0xff]  }
 0x500   : > { %2949 = vmatprep.subr.bf16.mxu0 %v9270_v60  ;;  %3031 = vmatprep.subr.bf16.mxu1 %v9273_v61  ;;  %v9354_v60 = vld [vmem:[#allocation16 + $0x164] ss:$16 sps:$4 sm:$0xff]   ;;  %v9357_v61 = vld [vmem:[#allocation16 + $0x16c] ss:$16 sps:$4 sm:$0xff]  }
 0x503   : > { %2950 = vmatpush1.bf16.msra.mxu0 %v9268_v62  ;;  %3032 = vmatpush1.bf16.msra.mxu1 %v9271_v63  ;;  %v9352_v62 = vld [vmem:[#allocation16 + $0x160] ss:$16 sps:$4 sm:$0xff]   ;;  %v9355_v63 = vld [vmem:[#allocation16 + $0x168] ss:$16 sps:$4 sm:$0xff]  }
 0x504   : > { %2951 = vmatprep.subr.bf16.mxu0 %v9276_v1  ;;  %3033 = vmatprep.subr.bf16.mxu1 %v9279_v2  ;;  %v9363_v1 = vld [vmem:[#allocation16 + $0x18c] ss:$16 sps:$4 sm:$0xff]   ;;  %v9358_v2 = vld [vmem:[#allocation16 + $0x180] ss:$16 sps:$4 sm:$0xff]  }
 0x507   : > { %2952 = vmatpush1.bf16.msra.mxu0 %v9274_v3  ;;  %3034 = vmatpush1.bf16.msra.mxu1 %v9277_v4  ;;  %v9361_v3 = vld [vmem:[#allocation16 + $0x188] ss:$16 sps:$4 sm:$0xff]   ;;  %v9366_v4 = vld [vmem:[#allocation16 + $0x1a4] ss:$16 sps:$4 sm:$0xff]  }
 0x508   : > { %2953 = vmatprep.subr.bf16.mxu0 %v9282_v6  ;;  %3035 = vmatprep.subr.bf16.mxu1 %v9285_v7  ;;  %v9364_v6 = vld [vmem:[#allocation16 + $0x1a0] ss:$16 sps:$4 sm:$0xff]   ;;  %v9367_v7 = vld [vmem:[#allocation16 + $0x1a8] ss:$16 sps:$4 sm:$0xff]  }
 0x50b   : > { %2954 = vmatpush1.bf16.msra.mxu0 %v9280_v8  ;;  %3036 = vmatpush1.bf16.msra.mxu1 %v9283_v9  ;;  %v9372_v8 = vld [vmem:[#allocation16 + $0x1c4] ss:$16 sps:$4 sm:$0xff]   ;;  %v9375_v9 = vld [vmem:[#allocation16 + $0x1cc] ss:$16 sps:$4 sm:$0xff]  }
 0x50c   : > { %3844 = vmatprep.subr.bf16.mxu0 %v9288_v23  ;;  %3926 = vmatprep.subr.bf16.mxu1 %v9291_v16  ;;  %v9373_v23 = vld [vmem:[#allocation16 + $0x1c8] ss:$16 sps:$4 sm:$0xff]   ;;  %v9378_v16 = vld [vmem:[#allocation16 + $0x1e4] ss:$16 sps:$4 sm:$0xff]  }
 0x50e   : > { %2956 = vmatmul.mubr.bf16.vlgmr.msra.gmra.mrb[8].mxu0 %v2219_v19  ;;  %3038 = vmatmul.mubr.bf16.vlgmr.msra.gmra.mrb[8].mxu1 %v2219_v19  ;;  %v9379_v19 = vld [vmem:[#allocation16 + $0x1e8] ss:$16 sps:$4 sm:$0xff]  }
 0x50f   : > { %3845 = vmatpush1.bf16.msra.mxu0 %v9286_v17  ;;  %3927 = vmatpush1.bf16.msra.mxu1 %v9289_v18  ;;  %v9381_v17 = vld [vmem:[#allocation16 + $0x1ec] ss:$16 sps:$4 sm:$0xff]   ;;  %v9376_v18 = vld [vmem:[#allocation16 + $0x1e0] ss:$16 sps:$4 sm:$0xff]  }
 0x510   : > { %3846 = vmatprep.subr.bf16.mxu0 %v9294_v52  ;;  %3928 = vmatprep.subr.bf16.mxu1 %v9297_v20  ;;  %v9384_v52 = vld [vmem:[#allocation16 + $0x204] ss:$16 sps:$4 sm:$0xff]   ;;  %v9387_v20 = vld [vmem:[#allocation16 + $0x20c] ss:$16 sps:$4 sm:$0xff]  }
 0x513   : > { %3847 = vmatpush1.bf16.msra.mxu0 %v9292_v21  ;;  %3929 = vmatpush1.bf16.msra.mxu1 %v9295_v22  ;;  %v12060_v21 = vld [vmem:[#allocation15] sm:$0xf] }
 0x514   : > { %3848 = vmatprep.subr.bf16.mxu0 %v9300_v24  ;;  %3930 = vmatprep.subr.bf16.mxu1 %v9303_v25  ;;  %v2865_v22 = vrot.slane %v12060_v21, %v12023_v11  ;;  %v2869_v24 = vrot.slane %v12060_v21, %v12028_v13  ;;  %v2877_v25 = vrot.slane %v12060_v21, %v12031_v14 }
 0x517   : > { %3849 = vmatpush1.bf16.msra.mxu0 %v9298_v26  ;;  %3931 = vmatpush1.bf16.msra.mxu1 %v9301_v27 }
 0x518   : > { %3850 = vmatprep.subr.bf16.mxu0 %v9306_v28  ;;  %3932 = vmatprep.subr.bf16.mxu1 %v9309_v30 }
 0x51b   : > { %3851 = vmatpush1.bf16.msra.mxu0 %v9304_v31  ;;  %3933 = vmatpush1.bf16.msra.mxu1 %v9307_v32 }
 0x51c   : > { %3852 = vmatprep.subr.bf16.mxu0 %v9312_v33  ;;  %3934 = vmatprep.subr.bf16.mxu1 %v9315_v34 }
 0x51f   : > { %3853 = vmatpush1.bf16.msra.mxu0 %v9310_v35  ;;  %3935 = vmatpush1.bf16.msra.mxu1 %v9313_v36 }
 0x520   : > { %3854 = vmatprep.subr.bf16.mxu0 %v9318_v37  ;;  %3936 = vmatprep.subr.bf16.mxu1 %v9321_v38 }
 0x523   : > { %3855 = vmatpush1.bf16.msra.mxu0 %v9316_v10  ;;  %3937 = vmatpush1.bf16.msra.mxu1 %v9319_v39 }
 0x524   : > { %3856 = vmatprep.subr.bf16.mxu0 %v9324_v40  ;;  %3938 = vmatprep.subr.bf16.mxu1 %v9327_v41  ;;  %v9382_v41 = vld [vmem:[#allocation16 + $0x200] ss:$16 sps:$4 sm:$0xff]  }
 0x527   : > { %3857 = vmatpush1.bf16.msra.mxu0 %v9322_v42  ;;  %3939 = vmatpush1.bf16.msra.mxu1 %v9325_v43  ;;  %v9385_v42 = vld [vmem:[#allocation16 + $0x208] ss:$16 sps:$4 sm:$0xff]  }
 0x528   : > { %3858 = vmatprep.subr.bf16.mxu0 %v9330_v12  ;;  %3940 = vmatprep.subr.bf16.mxu1 %v9333_v44  ;;  %v9390_v12 = vld [vmem:[#allocation16 + $0x224] ss:$16 sps:$4 sm:$0xff]   ;;  %v9393_v44 = vld [vmem:[#allocation16 + $0x22c] ss:$16 sps:$4 sm:$0xff]  }
 0x52b   : > { %3859 = vmatpush1.bf16.msra.mxu0 %v9328_v45  ;;  %3941 = vmatpush1.bf16.msra.mxu1 %v9331_v46  ;;  %v9388_v46 = vld [vmem:[#allocation16 + $0x220] ss:$16 sps:$4 sm:$0xff]  }
 0x52c   : > { %3860 = vmatprep.subr.bf16.mxu0 %v9336_v47  ;;  %3942 = vmatprep.subr.bf16.mxu1 %v9339_v48  ;;  %v9391_v47 = vld [vmem:[#allocation16 + $0x228] ss:$16 sps:$4 sm:$0xff]   ;;  %v9396_v48 = vld [vmem:[#allocation16 + $0x244] ss:$16 sps:$4 sm:$0xff]  }
 0x52f   : > { %3861 = vmatpush1.bf16.msra.mxu0 %v9334_v49  ;;  %3943 = vmatpush1.bf16.msra.mxu1 %v9337_v50  ;;  %v9399_v49 = vld [vmem:[#allocation16 + $0x24c] ss:$16 sps:$4 sm:$0xff]   ;;  %v9394_v50 = vld [vmem:[#allocation16 + $0x240] ss:$16 sps:$4 sm:$0xff]  }
 0x530   : > { %3862 = vmatprep.subr.bf16.mxu0 %v9342_v51  ;;  %3944 = vmatprep.subr.bf16.mxu1 %v9345_v53  ;;  %v9397_v51 = vld [vmem:[#allocation16 + $0x248] ss:$16 sps:$4 sm:$0xff]   ;;  %v9402_v53 = vld [vmem:[#allocation16 + $0x264] ss:$16 sps:$4 sm:$0xff]  }
 0x533   : > { %3863 = vmatpush1.bf16.msra.mxu0 %v9340_v54  ;;  %3945 = vmatpush1.bf16.msra.mxu1 %v9343_v55  ;;  %v9405_v54 = vld [vmem:[#allocation16 + $0x26c] ss:$16 sps:$4 sm:$0xff]   ;;  %v9400_v55 = vld [vmem:[#allocation16 + $0x260] ss:$16 sps:$4 sm:$0xff]  }
 0x534   : > { %3864 = vmatprep.subr.bf16.mxu0 %v9348_v56  ;;  %3946 = vmatprep.subr.bf16.mxu1 %v9351_v57  ;;  %v9403_v56 = vld [vmem:[#allocation16 + $0x268] ss:$16 sps:$4 sm:$0xff]   ;;  %v9408_v57 = vld [vmem:[#allocation16 + $0x284] ss:$16 sps:$4 sm:$0xff]  }
 0x537   : > { %3865 = vmatpush1.bf16.msra.mxu0 %v9346_v58  ;;  %3947 = vmatpush1.bf16.msra.mxu1 %v9349_v59  ;;  %v9411_v58 = vld [vmem:[#allocation16 + $0x28c] ss:$16 sps:$4 sm:$0xff]   ;;  %v9406_v59 = vld [vmem:[#allocation16 + $0x280] ss:$16 sps:$4 sm:$0xff]  }
 0x538   : > { %3866 = vmatprep.subr.bf16.mxu0 %v9354_v60  ;;  %3948 = vmatprep.subr.bf16.mxu1 %v9357_v61  ;;  %v9409_v60 = vld [vmem:[#allocation16 + $0x288] ss:$16 sps:$4 sm:$0xff]   ;;  %v9414_v61 = vld [vmem:[#allocation16 + $0x2a4] ss:$16 sps:$4 sm:$0xff]  }
 0x53b   : > { %3867 = vmatpush1.bf16.msra.mxu0 %v9352_v62  ;;  %3949 = vmatpush1.bf16.msra.mxu1 %v9355_v63  ;;  %v9417_v62 = vld [vmem:[#allocation16 + $0x2ac] ss:$16 sps:$4 sm:$0xff]   ;;  %v9412_v63 = vld [vmem:[#allocation16 + $0x2a0] ss:$16 sps:$4 sm:$0xff]  }
 0x53c   : > { %3868 = vmatprep.subr.bf16.mxu0 %v9360_v0  ;;  %3950 = vmatprep.subr.bf16.mxu1 %v9363_v1  ;;  %v9415_v0 = vld [vmem:[#allocation16 + $0x2a8] ss:$16 sps:$4 sm:$0xff]   ;;  %v9420_v1 = vld [vmem:[#allocation16 + $0x2c4] ss:$16 sps:$4 sm:$0xff]  }
 0x53f   : > { %3869 = vmatpush1.bf16.msra.mxu0 %v9358_v2  ;;  %3951 = vmatpush1.bf16.msra.mxu1 %v9361_v3  ;;  %v9423_v2 = vld [vmem:[#allocation16 + $0x2cc] ss:$16 sps:$4 sm:$0xff]   ;;  %v9418_v3 = vld [vmem:[#allocation16 + $0x2c0] ss:$16 sps:$4 sm:$0xff]  }
 0x540   : > { %3870 = vmatprep.subr.bf16.mxu0 %v9366_v4  ;;  %3952 = vmatprep.subr.bf16.mxu1 %v9369_v5  ;;  %v9421_v4 = vld [vmem:[#allocation16 + $0x2c8] ss:$16 sps:$4 sm:$0xff]   ;;  %v9426_v5 = vld [vmem:[#allocation16 + $0x2e4] ss:$16 sps:$4 sm:$0xff]  }
 0x543   : > { %3871 = vmatpush1.bf16.msra.mxu0 %v9364_v6  ;;  %3953 = vmatpush1.bf16.msra.mxu1 %v9367_v7  ;;  %v9429_v6 = vld [vmem:[#allocation16 + $0x2ec] ss:$16 sps:$4 sm:$0xff]   ;;  %v9424_v7 = vld [vmem:[#allocation16 + $0x2e0] ss:$16 sps:$4 sm:$0xff]  }
 0x544   : > { %3872 = vmatprep.subr.bf16.mxu0 %v9372_v8  ;;  %3954 = vmatprep.subr.bf16.mxu1 %v9375_v9  ;;  %v9427_v8 = vld [vmem:[#allocation16 + $0x2e8] ss:$16 sps:$4 sm:$0xff]   ;;  %v9432_v9 = vld [vmem:[#allocation16 + $0x304] ss:$16 sps:$4 sm:$0xff]  }
 0x547   : > { %3873 = vmatpush1.bf16.msra.mxu0 %v9370_v15  ;;  %3955 = vmatpush1.bf16.msra.mxu1 %v9373_v23  ;;  %v9435_v15 = vld [vmem:[#allocation16 + $0x30c] ss:$16 sps:$4 sm:$0xff]   ;;  %v9430_v23 = vld [vmem:[#allocation16 + $0x300] ss:$16 sps:$4 sm:$0xff]  }
 0x548   : > { %3874 = vmatprep.subr.bf16.mxu0 %v9378_v16  ;;  %3956 = vmatprep.subr.bf16.mxu1 %v9381_v17  ;;  %v9433_v16 = vld [vmem:[#allocation16 + $0x308] ss:$16 sps:$4 sm:$0xff]   ;;  %v9438_v17 = vld [vmem:[#allocation16 + $0x324] ss:$16 sps:$4 sm:$0xff]  }
 0x54b   : > { %3875 = vmatpush1.bf16.msra.mxu0 %v9376_v18  ;;  %3957 = vmatpush1.bf16.msra.mxu1 %v9379_v19  ;;  %v9441_v18 = vld [vmem:[#allocation16 + $0x32c] ss:$16 sps:$4 sm:$0xff]   ;;  %v9436_v19 = vld [vmem:[#allocation16 + $0x320] ss:$16 sps:$4 sm:$0xff]  }
 0x54c   : > { %3885 = vmatprep.subr.bf16.mxu0 %v9384_v52  ;;  %3967 = vmatprep.subr.bf16.mxu1 %v9387_v20  ;;  %v9439_v52 = vld [vmem:[#allocation16 + $0x328] ss:$16 sps:$4 sm:$0xff]   ;;  %v9444_v20 = vld [vmem:[#allocation16 + $0x344] ss:$16 sps:$4 sm:$0xff]  }
 0x5e1   : > { %v2957_v26 = vpop.f32.mrb[8].mxu0  ;;  %v12068_v27 = vpop.f32.mrb[8].mxu1 }
 0x5e2   : > { %v8466_v28 = vadd.f32 %v2957_v26, %v2865_v22  ;;  %v2959_v30 = vpop.f32.mrb[9].mxu0  ;;  %v3041_v31 = vpop.f32.mrb[9].mxu1  ;;  %v9447_v22 = vld [vmem:[#allocation16 + $0x34c] ss:$16 sps:$4 sm:$0xff]   ;;  %v9450_v26 = vld [vmem:[#allocation16 + $0x364] ss:$16 sps:$4 sm:$0xff]  }
 0x5e3   : > { %v8467_v32 = vadd.f32 %v2959_v30, %v2869_v24  ;;  %v8469_v33 = vadd.f32 %v3041_v31, %v2877_v25  ;;  %v2961_v34 = vpop.f32.mrb[10].mxu0  ;;  %v3043_v35 = vpop.f32.mrb[10].mxu1  ;;  %v9442_v24 = vld [vmem:[#allocation16 + $0x340] ss:$16 sps:$4 sm:$0xff]   ;;  %v9445_v25 = vld [vmem:[#allocation16 + $0x348] ss:$16 sps:$4 sm:$0xff]  }
 0x5e4   : > { %v3046_v36 = vmax.f32 %v8466_v28, 0.0  ;;  %v2962_v37 = vpop.f32.mrb[11].mxu0  ;;  %v3044_v38 = vpop.f32.mrb[11].mxu1  ;;  %v9453_v28 = vld [vmem:[#allocation16 + $0x36c] ss:$16 sps:$4 sm:$0xff]  }
 0x5e5   : > { %v3047_v10 = vmax.f32 %v8467_v32, 0.0  ;;  %v3049_v39 = vmax.f32 %v8469_v33, 0.0  ;;  %v9448_v30 = vld [vmem:[#allocation16 + $0x360] ss:$16 sps:$4 sm:$0xff]   ;;  %v9451_v31 = vld [vmem:[#allocation16 + $0x368] ss:$16 sps:$4 sm:$0xff]  }
 0x5e6   : > { %v3179_v43 = vpack.c.bf16 %v3046_v36, %v3046_v36  ;;  %v9456_v32 = vld [vmem:[#allocation16 + $0x384] ss:$16 sps:$4 sm:$0xff]   ;;  %v9459_v33 = vld [vmem:[#allocation16 + $0x38c] ss:$16 sps:$4 sm:$0xff]   ;;  %v9454_v34 = vld [vmem:[#allocation16 + $0x380] ss:$16 sps:$4 sm:$0xff]  }
 0x5e7   : > { %v3180_v40 = vpack.c.bf16 %v3047_v10, %v3047_v10  ;;  %v3182_v45 = vpack.c.bf16 %v3049_v39, %v3049_v39  ;;  %v9457_v35 = vld [vmem:[#allocation16 + $0x388] ss:$16 sps:$4 sm:$0xff]   ;;  %v9462_v36 = vld [vmem:[#allocation16 + $0x3a4] ss:$16 sps:$4 sm:$0xff]   ;;  %v9465_v37 = vld [vmem:[#allocation16 + $0x3ac] ss:$16 sps:$4 sm:$0xff]   ;;  %v2873_v39 = vrot.slane %v12060_v21, %v12042_v29 }
 0x5e8   : > { %v9460_v38 = vld [vmem:[#allocation16 + $0x3a0] ss:$16 sps:$4 sm:$0xff]   ;;  %v9463_v10 = vld [vmem:[#allocation16 + $0x3a8] ss:$16 sps:$4 sm:$0xff]  }
 0x5e9   : > { %3876 = vmatprep.mubr.bf16.mxu0 %v3180_v40  ;;  %3958 = vmatprep.mubr.bf16.mxu1 %v3180_v40  ;;  %v9468_v40 = vld [vmem:[#allocation16 + $0x3c4] ss:$16 sps:$4 sm:$0xff]   ;;  %v9472_v21 = vld [vmem:[#allocation16 + $0x3e0] ss:$16 sps:$4 sm:$0xff]  }
 0x5ea   : > { %3877 = vmatmul.mubr.bf16.vlgmr.msra.gmra.mrb[12].mxu0 %v3179_v43  ;;  %3959 = vmatmul.mubr.bf16.vlgmr.msra.gmra.mrb[12].mxu1 %v3179_v43  ;;  %v9469_v43 = vld [vmem:[#allocation16 + $0x3c8] ss:$16 sps:$4 sm:$0xff]  }
 0x5eb   : > { %3886 = vmatpush1.bf16.msra.mxu0 %v9382_v41  ;;  %3968 = vmatpush1.bf16.msra.mxu1 %v9385_v42  ;;  %v9471_v41 = vld [vmem:[#allocation16 + $0x3cc] ss:$16 sps:$4 sm:$0xff]   ;;  %v9466_v42 = vld [vmem:[#allocation16 + $0x3c0] ss:$16 sps:$4 sm:$0xff]  }
 0x5ec   : > { %3917 = vmatprep.mubr.bf16.mxu0 %v3182_v45  ;;  %3999 = vmatprep.mubr.bf16.mxu1 %v3182_v45  ;;  %v9477_v45 = vld [vmem:[#allocation16 + $0x3ec] ss:$16 sps:$4 sm:$0xff]  }
 0x5ed   : > { %3887 = vmatprep.subr.bf16.mxu0 %v9390_v12  ;;  %3969 = vmatprep.subr.bf16.mxu1 %v9393_v44  ;;  %v8468_v12 = vadd.f32 %v12068_v27, %v2873_v39  ;;  %v9474_v44 = vld [vmem:[#allocation16 + $0x3e4] ss:$16 sps:$4 sm:$0xff]   ;;  %v9552_v39 = vld [vmem:[%s11967_s0 + $0x184] ss:$16 sps:$4 sm:$0xff]  }
 0x5ee   : > { %v9478_v27 = vld [vmem:[%s11967_s0] ss:$16 sps:$4 sm:$0xff]  }
 0x5ef   : > { %3888 = vmatpush1.bf16.msra.mxu0 %v9388_v46  ;;  %3970 = vmatpush1.bf16.msra.mxu1 %v9391_v47  ;;  %v9475_v46 = vld [vmem:[#allocation16 + $0x3e8] ss:$16 sps:$4 sm:$0xff]   ;;  %v3048_v47 = vmax.f32 %v8468_v12, 0.0  ;;  %v9561_v12 = vld [vmem:[%s11967_s0 + $0x1ac] ss:$16 sps:$4 sm:$0xff]  }
 0x5f0   : > { %3889 = vmatprep.subr.bf16.mxu0 %v9396_v48  ;;  %3971 = vmatprep.subr.bf16.mxu1 %v9399_v49  ;;  %v9480_v48 = vld [vmem:[%s11967_s0 + $0x4] ss:$16 sps:$4 sm:$0xff]   ;;  %v9483_v49 = vld [vmem:[%s11967_s0 + $0xc] ss:$16 sps:$4 sm:$0xff]  }
 0x5f3   : > { %3890 = vmatpush1.bf16.msra.mxu0 %v9394_v50  ;;  %3972 = vmatpush1.bf16.msra.mxu1 %v9397_v51  ;;  %v9481_v50 = vld [vmem:[%s11967_s0 + $0x8] ss:$16 sps:$4 sm:$0xff]   ;;  %v3181_v51 = vpack.c.bf16 %v3048_v47, %v3048_v47  ;;  %v9562_v47 = vld [vmem:[%s11967_s0 + $0x1c0] ss:$16 sps:$4 sm:$0xff]  }
 0x5f4   : > { %3891 = vmatprep.subr.bf16.mxu0 %v9402_v53  ;;  %3973 = vmatprep.subr.bf16.mxu1 %v9405_v54  ;;  %v9486_v53 = vld [vmem:[%s11967_s0 + $0x24] ss:$16 sps:$4 sm:$0xff]   ;;  %v9489_v54 = vld [vmem:[%s11967_s0 + $0x2c] ss:$16 sps:$4 sm:$0xff]  }
 0x5f7   : > { %3892 = vmatpush1.bf16.msra.mxu0 %v9400_v55  ;;  %3974 = vmatpush1.bf16.msra.mxu1 %v9403_v56  ;;  %v9484_v55 = vld [vmem:[%s11967_s0 + $0x20] ss:$16 sps:$4 sm:$0xff]   ;;  %v9487_v56 = vld [vmem:[%s11967_s0 + $0x28] ss:$16 sps:$4 sm:$0xff]  }
 0x5f8   : > { %3893 = vmatprep.subr.bf16.mxu0 %v9408_v57  ;;  %3975 = vmatprep.subr.bf16.mxu1 %v9411_v58  ;;  %v9492_v57 = vld [vmem:[%s11967_s0 + $0x44] ss:$16 sps:$4 sm:$0xff]   ;;  %v9495_v58 = vld [vmem:[%s11967_s0 + $0x4c] ss:$16 sps:$4 sm:$0xff]  }
 0x5fb   : > { %3894 = vmatpush1.bf16.msra.mxu0 %v9406_v59  ;;  %3976 = vmatpush1.bf16.msra.mxu1 %v9409_v60  ;;  %v9490_v59 = vld [vmem:[%s11967_s0 + $0x40] ss:$16 sps:$4 sm:$0xff]   ;;  %v9493_v60 = vld [vmem:[%s11967_s0 + $0x48] ss:$16 sps:$4 sm:$0xff]  }
 0x5fc   : > { %3895 = vmatprep.subr.bf16.mxu0 %v9414_v61  ;;  %3977 = vmatprep.subr.bf16.mxu1 %v9417_v62  ;;  %v9498_v61 = vld [vmem:[%s11967_s0 + $0x64] ss:$16 sps:$4 sm:$0xff]   ;;  %v9501_v62 = vld [vmem:[%s11967_s0 + $0x6c] ss:$16 sps:$4 sm:$0xff]  }
 0x5ff   : > { %3896 = vmatpush1.bf16.msra.mxu0 %v9412_v63  ;;  %3978 = vmatpush1.bf16.msra.mxu1 %v9415_v0  ;;  %v9496_v63 = vld [vmem:[%s11967_s0 + $0x60] ss:$16 sps:$4 sm:$0xff]   ;;  %v9499_v0 = vld [vmem:[%s11967_s0 + $0x68] ss:$16 sps:$4 sm:$0xff]  }
 0x600   : > { %3897 = vmatprep.subr.bf16.mxu0 %v9420_v1  ;;  %3979 = vmatprep.subr.bf16.mxu1 %v9423_v2  ;;  %v9504_v1 = vld [vmem:[%s11967_s0 + $0x84] ss:$16 sps:$4 sm:$0xff]   ;;  %v9507_v2 = vld [vmem:[%s11967_s0 + $0x8c] ss:$16 sps:$4 sm:$0xff]  }
 0x603   : > { %3898 = vmatpush1.bf16.msra.mxu0 %v9418_v3  ;;  %3980 = vmatpush1.bf16.msra.mxu1 %v9421_v4  ;;  %v9502_v3 = vld [vmem:[%s11967_s0 + $0x80] ss:$16 sps:$4 sm:$0xff]   ;;  %v9505_v4 = vld [vmem:[%s11967_s0 + $0x88] ss:$16 sps:$4 sm:$0xff]  }
 0x604   : > { %3899 = vmatprep.subr.bf16.mxu0 %v9426_v5  ;;  %3981 = vmatprep.subr.bf16.mxu1 %v9429_v6  ;;  %v9510_v5 = vld [vmem:[%s11967_s0 + $0xa4] ss:$16 sps:$4 sm:$0xff]   ;;  %v9513_v6 = vld [vmem:[%s11967_s0 + $0xac] ss:$16 sps:$4 sm:$0xff]  }
 0x607   : > { %3900 = vmatpush1.bf16.msra.mxu0 %v9424_v7  ;;  %3982 = vmatpush1.bf16.msra.mxu1 %v9427_v8  ;;  %v9508_v7 = vld [vmem:[%s11967_s0 + $0xa0] ss:$16 sps:$4 sm:$0xff]   ;;  %v9511_v8 = vld [vmem:[%s11967_s0 + $0xa8] ss:$16 sps:$4 sm:$0xff]  }
 0x608   : > { %3901 = vmatprep.subr.bf16.mxu0 %v9432_v9  ;;  %3983 = vmatprep.subr.bf16.mxu1 %v9435_v15  ;;  %v9516_v9 = vld [vmem:[%s11967_s0 + $0xc4] ss:$16 sps:$4 sm:$0xff]   ;;  %v9519_v15 = vld [vmem:[%s11967_s0 + $0xcc] ss:$16 sps:$4 sm:$0xff]  }
 0x60b   : > { %3902 = vmatpush1.bf16.msra.mxu0 %v9430_v23  ;;  %3984 = vmatpush1.bf16.msra.mxu1 %v9433_v16  ;;  %v9514_v23 = vld [vmem:[%s11967_s0 + $0xc0] ss:$16 sps:$4 sm:$0xff]   ;;  %v9517_v16 = vld [vmem:[%s11967_s0 + $0xc8] ss:$16 sps:$4 sm:$0xff]  }
 0x60c   : > { %3903 = vmatprep.subr.bf16.mxu0 %v9438_v17  ;;  %3985 = vmatprep.subr.bf16.mxu1 %v9441_v18  ;;  %v9522_v17 = vld [vmem:[%s11967_s0 + $0xe4] ss:$16 sps:$4 sm:$0xff]   ;;  %v9525_v18 = vld [vmem:[%s11967_s0 + $0xec] ss:$16 sps:$4 sm:$0xff]  }
 0x60f   : > { %3904 = vmatpush1.bf16.msra.mxu0 %v9436_v19  ;;  %3986 = vmatpush1.bf16.msra.mxu1 %v9439_v52  ;;  %v9520_v19 = vld [vmem:[%s11967_s0 + $0xe0] ss:$16 sps:$4 sm:$0xff]   ;;  %v9523_v52 = vld [vmem:[%s11967_s0 + $0xe8] ss:$16 sps:$4 sm:$0xff]  }
 0x610   : > { %3905 = vmatprep.subr.bf16.mxu0 %v9444_v20  ;;  %3987 = vmatprep.subr.bf16.mxu1 %v9447_v22  ;;  %v9528_v20 = vld [vmem:[%s11967_s0 + $0x104] ss:$16 sps:$4 sm:$0xff]   ;;  %v9531_v22 = vld [vmem:[%s11967_s0 + $0x10c] ss:$16 sps:$4 sm:$0xff]  }
 0x613   : > { %3906 = vmatpush1.bf16.msra.mxu0 %v9442_v24  ;;  %3988 = vmatpush1.bf16.msra.mxu1 %v9445_v25  ;;  %v9526_v24 = vld [vmem:[%s11967_s0 + $0x100] ss:$16 sps:$4 sm:$0xff]   ;;  %v9529_v25 = vld [vmem:[%s11967_s0 + $0x108] ss:$16 sps:$4 sm:$0xff]  }
 0x614   : > { %3907 = vmatprep.subr.bf16.mxu0 %v9450_v26  ;;  %3989 = vmatprep.subr.bf16.mxu1 %v9453_v28  ;;  %v9534_v26 = vld [vmem:[%s11967_s0 + $0x124] ss:$16 sps:$4 sm:$0xff]   ;;  %v9537_v28 = vld [vmem:[%s11967_s0 + $0x12c] ss:$16 sps:$4 sm:$0xff]  }
 0x617   : > { %3908 = vmatpush1.bf16.msra.mxu0 %v9448_v30  ;;  %3990 = vmatpush1.bf16.msra.mxu1 %v9451_v31  ;;  %v9532_v30 = vld [vmem:[%s11967_s0 + $0x120] ss:$16 sps:$4 sm:$0xff]   ;;  %v9535_v31 = vld [vmem:[%s11967_s0 + $0x128] ss:$16 sps:$4 sm:$0xff]  }
 0x618   : > { %3909 = vmatprep.subr.bf16.mxu0 %v9456_v32  ;;  %3991 = vmatprep.subr.bf16.mxu1 %v9459_v33  ;;  %v9540_v32 = vld [vmem:[%s11967_s0 + $0x144] ss:$16 sps:$4 sm:$0xff]   ;;  %v9543_v33 = vld [vmem:[%s11967_s0 + $0x14c] ss:$16 sps:$4 sm:$0xff]  }
 0x61b   : > { %3910 = vmatpush1.bf16.msra.mxu0 %v9454_v34  ;;  %3992 = vmatpush1.bf16.msra.mxu1 %v9457_v35  ;;  %v9538_v34 = vld [vmem:[%s11967_s0 + $0x140] ss:$16 sps:$4 sm:$0xff]   ;;  %v9541_v35 = vld [vmem:[%s11967_s0 + $0x148] ss:$16 sps:$4 sm:$0xff]  }
 0x61c   : > { %3911 = vmatprep.subr.bf16.mxu0 %v9462_v36  ;;  %3993 = vmatprep.subr.bf16.mxu1 %v9465_v37  ;;  %v9546_v36 = vld [vmem:[%s11967_s0 + $0x164] ss:$16 sps:$4 sm:$0xff]   ;;  %v9549_v37 = vld [vmem:[%s11967_s0 + $0x16c] ss:$16 sps:$4 sm:$0xff]  }
 0x61f   : > { %3912 = vmatpush1.bf16.msra.mxu0 %v9460_v38  ;;  %3994 = vmatpush1.bf16.msra.mxu1 %v9463_v10  ;;  %v9544_v38 = vld [vmem:[%s11967_s0 + $0x160] ss:$16 sps:$4 sm:$0xff]   ;;  %v9547_v10 = vld [vmem:[%s11967_s0 + $0x168] ss:$16 sps:$4 sm:$0xff]  }
 0x620   : > { %3913 = vmatprep.subr.bf16.mxu0 %v9468_v40  ;;  %3995 = vmatprep.subr.bf16.mxu1 %v9471_v41  ;;  %v9555_v40 = vld [vmem:[%s11967_s0 + $0x18c] ss:$16 sps:$4 sm:$0xff]   ;;  %v9550_v41 = vld [vmem:[%s11967_s0 + $0x180] ss:$16 sps:$4 sm:$0xff]  }
 0x623   : > { %3914 = vmatpush1.bf16.msra.mxu0 %v9466_v42  ;;  %3996 = vmatpush1.bf16.msra.mxu1 %v9469_v43  ;;  %v9553_v42 = vld [vmem:[%s11967_s0 + $0x188] ss:$16 sps:$4 sm:$0xff]   ;;  %v9558_v43 = vld [vmem:[%s11967_s0 + $0x1a4] ss:$16 sps:$4 sm:$0xff]  }
 0x624   : > { %3915 = vmatprep.subr.bf16.mxu0 %v9474_v44  ;;  %3997 = vmatprep.subr.bf16.mxu1 %v9477_v45  ;;  %v9556_v44 = vld [vmem:[%s11967_s0 + $0x1a0] ss:$16 sps:$4 sm:$0xff]   ;;  %v9559_v45 = vld [vmem:[%s11967_s0 + $0x1a8] ss:$16 sps:$4 sm:$0xff]  }
 0x627   : > { %3916 = vmatpush1.bf16.msra.mxu0 %v9472_v21  ;;  %3998 = vmatpush1.bf16.msra.mxu1 %v9475_v46  ;;  %v9564_v21 = vld [vmem:[%s11967_s0 + $0x1c4] ss:$16 sps:$4 sm:$0xff]   ;;  %v9567_v46 = vld [vmem:[%s11967_s0 + $0x1cc] ss:$16 sps:$4 sm:$0xff]  }
 0x628   : > { %4806 = vmatprep.subr.bf16.mxu0 %v9480_v48  ;;  %4888 = vmatprep.subr.bf16.mxu1 %v9483_v49  ;;  %v9565_v48 = vld [vmem:[%s11967_s0 + $0x1c8] ss:$16 sps:$4 sm:$0xff]   ;;  %v9570_v49 = vld [vmem:[%s11967_s0 + $0x1e4] ss:$16 sps:$4 sm:$0xff]  }
 0x62a   : > { %3918 = vmatmul.mubr.bf16.vlgmr.msra.gmra.mrb[12].mxu0 %v3181_v51  ;;  %4000 = vmatmul.mubr.bf16.vlgmr.msra.gmra.mrb[12].mxu1 %v3181_v51  ;;  %v9571_v51 = vld [vmem:[%s11967_s0 + $0x1e8] ss:$16 sps:$4 sm:$0xff]  }
 0x62b   : > { %4807 = vmatpush1.bf16.msra.mxu0 %v9478_v27  ;;  %4889 = vmatpush1.bf16.msra.mxu1 %v9481_v50  ;;  %v9573_v27 = vld [vmem:[%s11967_s0 + $0x1ec] ss:$16 sps:$4 sm:$0xff]   ;;  %v9568_v50 = vld [vmem:[%s11967_s0 + $0x1e0] ss:$16 sps:$4 sm:$0xff]  }
 0x62c   : > { %4808 = vmatprep.subr.bf16.mxu0 %v9486_v53  ;;  %4890 = vmatprep.subr.bf16.mxu1 %v9489_v54  ;;  %v9576_v53 = vld [vmem:[%s11967_s0 + $0x204] ss:$16 sps:$4 sm:$0xff]   ;;  %v9579_v54 = vld [vmem:[%s11967_s0 + $0x20c] ss:$16 sps:$4 sm:$0xff]  }
 0x62f   : > { %4809 = vmatpush1.bf16.msra.mxu0 %v9484_v55  ;;  %4891 = vmatpush1.bf16.msra.mxu1 %v9487_v56  ;;  %v12139_v55 = vld [vmem:[#allocation18] sm:$0xf] }
 0x630   : > { %4810 = vmatprep.subr.bf16.mxu0 %v9492_v57  ;;  %4892 = vmatprep.subr.bf16.mxu1 %v9495_v58  ;;  %v3827_v56 = vrot.slane %v12139_v55, %v12023_v11  ;;  %v3831_v57 = vrot.slane %v12139_v55, %v12028_v13  ;;  %v3839_v58 = vrot.slane %v12139_v55, %v12031_v14 }
 0x633   : > { %4811 = vmatpush1.bf16.msra.mxu0 %v9490_v59  ;;  %4893 = vmatpush1.bf16.msra.mxu1 %v9493_v60 }
 0x634   : > { %4812 = vmatprep.subr.bf16.mxu0 %v9498_v61  ;;  %4894 = vmatprep.subr.bf16.mxu1 %v9501_v62 }
 0x637   : > { %4813 = vmatpush1.bf16.msra.mxu0 %v9496_v63  ;;  %4895 = vmatpush1.bf16.msra.mxu1 %v9499_v0 }
 0x638   : > { %4814 = vmatprep.subr.bf16.mxu0 %v9504_v1  ;;  %4896 = vmatprep.subr.bf16.mxu1 %v9507_v2 }
 0x63b   : > { %4815 = vmatpush1.bf16.msra.mxu0 %v9502_v3  ;;  %4897 = vmatpush1.bf16.msra.mxu1 %v9505_v4 }
 0x63c   : > { %4816 = vmatprep.subr.bf16.mxu0 %v9510_v5  ;;  %4898 = vmatprep.subr.bf16.mxu1 %v9513_v6 }
 0x63f   : > { %4817 = vmatpush1.bf16.msra.mxu0 %v9508_v7  ;;  %4899 = vmatpush1.bf16.msra.mxu1 %v9511_v8 }
 0x640   : > { %4818 = vmatprep.subr.bf16.mxu0 %v9516_v9  ;;  %4900 = vmatprep.subr.bf16.mxu1 %v9519_v15  ;;  %v9574_v15 = vld [vmem:[%s11967_s0 + $0x200] ss:$16 sps:$4 sm:$0xff]  }
 0x643   : > { %4819 = vmatpush1.bf16.msra.mxu0 %v9514_v23  ;;  %4901 = vmatpush1.bf16.msra.mxu1 %v9517_v16  ;;  %v9577_v23 = vld [vmem:[%s11967_s0 + $0x208] ss:$16 sps:$4 sm:$0xff]  }
 0x644   : > { %4820 = vmatprep.subr.bf16.mxu0 %v9522_v17  ;;  %4902 = vmatprep.subr.bf16.mxu1 %v9525_v18  ;;  %v9582_v17 = vld [vmem:[%s11967_s0 + $0x224] ss:$16 sps:$4 sm:$0xff]   ;;  %v9585_v18 = vld [vmem:[%s11967_s0 + $0x22c] ss:$16 sps:$4 sm:$0xff]  }
 0x647   : > { %4821 = vmatpush1.bf16.msra.mxu0 %v9520_v19  ;;  %4903 = vmatpush1.bf16.msra.mxu1 %v9523_v52  ;;  %v9580_v52 = vld [vmem:[%s11967_s0 + $0x220] ss:$16 sps:$4 sm:$0xff]  }
 0x648   : > { %4822 = vmatprep.subr.bf16.mxu0 %v9528_v20  ;;  %4904 = vmatprep.subr.bf16.mxu1 %v9531_v22  ;;  %v9583_v20 = vld [vmem:[%s11967_s0 + $0x228] ss:$16 sps:$4 sm:$0xff]   ;;  %v9588_v22 = vld [vmem:[%s11967_s0 + $0x244] ss:$16 sps:$4 sm:$0xff]  }
 0x64b   : > { %4823 = vmatpush1.bf16.msra.mxu0 %v9526_v24  ;;  %4905 = vmatpush1.bf16.msra.mxu1 %v9529_v25  ;;  %v9591_v24 = vld [vmem:[%s11967_s0 + $0x24c] ss:$16 sps:$4 sm:$0xff]   ;;  %v9586_v25 = vld [vmem:[%s11967_s0 + $0x240] ss:$16 sps:$4 sm:$0xff]  }
 0x64c   : > { %4824 = vmatprep.subr.bf16.mxu0 %v9534_v26  ;;  %4906 = vmatprep.subr.bf16.mxu1 %v9537_v28  ;;  %v9589_v26 = vld [vmem:[%s11967_s0 + $0x248] ss:$16 sps:$4 sm:$0xff]   ;;  %v9594_v28 = vld [vmem:[%s11967_s0 + $0x264] ss:$16 sps:$4 sm:$0xff]  }
 0x64f   : > { %4825 = vmatpush1.bf16.msra.mxu0 %v9532_v30  ;;  %4907 = vmatpush1.bf16.msra.mxu1 %v9535_v31  ;;  %v9597_v30 = vld [vmem:[%s11967_s0 + $0x26c] ss:$16 sps:$4 sm:$0xff]   ;;  %v9592_v31 = vld [vmem:[%s11967_s0 + $0x260] ss:$16 sps:$4 sm:$0xff]  }
 0x650   : > { %4826 = vmatprep.subr.bf16.mxu0 %v9540_v32  ;;  %4908 = vmatprep.subr.bf16.mxu1 %v9543_v33  ;;  %v9595_v32 = vld [vmem:[%s11967_s0 + $0x268] ss:$16 sps:$4 sm:$0xff]   ;;  %v9600_v33 = vld [vmem:[%s11967_s0 + $0x284] ss:$16 sps:$4 sm:$0xff]  }
 0x653   : > { %4827 = vmatpush1.bf16.msra.mxu0 %v9538_v34  ;;  %4909 = vmatpush1.bf16.msra.mxu1 %v9541_v35  ;;  %v9603_v34 = vld [vmem:[%s11967_s0 + $0x28c] ss:$16 sps:$4 sm:$0xff]   ;;  %v9598_v35 = vld [vmem:[%s11967_s0 + $0x280] ss:$16 sps:$4 sm:$0xff]  }
 0x654   : > { %4828 = vmatprep.subr.bf16.mxu0 %v9546_v36  ;;  %4910 = vmatprep.subr.bf16.mxu1 %v9549_v37  ;;  %v9601_v36 = vld [vmem:[%s11967_s0 + $0x288] ss:$16 sps:$4 sm:$0xff]   ;;  %v9606_v37 = vld [vmem:[%s11967_s0 + $0x2a4] ss:$16 sps:$4 sm:$0xff]  }
 0x657   : > { %4829 = vmatpush1.bf16.msra.mxu0 %v9544_v38  ;;  %4911 = vmatpush1.bf16.msra.mxu1 %v9547_v10  ;;  %v9609_v38 = vld [vmem:[%s11967_s0 + $0x2ac] ss:$16 sps:$4 sm:$0xff]   ;;  %v9604_v10 = vld [vmem:[%s11967_s0 + $0x2a0] ss:$16 sps:$4 sm:$0xff]  }
 0x658   : > { %4830 = vmatprep.subr.bf16.mxu0 %v9552_v39  ;;  %4912 = vmatprep.subr.bf16.mxu1 %v9555_v40  ;;  %v9607_v39 = vld [vmem:[%s11967_s0 + $0x2a8] ss:$16 sps:$4 sm:$0xff]   ;;  %v9612_v40 = vld [vmem:[%s11967_s0 + $0x2c4] ss:$16 sps:$4 sm:$0xff]  }
 0x65b   : > { %4831 = vmatpush1.bf16.msra.mxu0 %v9550_v41  ;;  %4913 = vmatpush1.bf16.msra.mxu1 %v9553_v42  ;;  %v9615_v41 = vld [vmem:[%s11967_s0 + $0x2cc] ss:$16 sps:$4 sm:$0xff]   ;;  %v9610_v42 = vld [vmem:[%s11967_s0 + $0x2c0] ss:$16 sps:$4 sm:$0xff]  }
 0x65c   : > { %4832 = vmatprep.subr.bf16.mxu0 %v9558_v43  ;;  %4914 = vmatprep.subr.bf16.mxu1 %v9561_v12  ;;  %v9613_v43 = vld [vmem:[%s11967_s0 + $0x2c8] ss:$16 sps:$4 sm:$0xff]   ;;  %v9618_v12 = vld [vmem:[%s11967_s0 + $0x2e4] ss:$16 sps:$4 sm:$0xff]  }
 0x65f   : > { %4833 = vmatpush1.bf16.msra.mxu0 %v9556_v44  ;;  %4915 = vmatpush1.bf16.msra.mxu1 %v9559_v45  ;;  %v9621_v44 = vld [vmem:[%s11967_s0 + $0x2ec] ss:$16 sps:$4 sm:$0xff]   ;;  %v9616_v45 = vld [vmem:[%s11967_s0 + $0x2e0] ss:$16 sps:$4 sm:$0xff]  }
 0x660   : > { %4834 = vmatprep.subr.bf16.mxu0 %v9564_v21  ;;  %4916 = vmatprep.subr.bf16.mxu1 %v9567_v46  ;;  %v9619_v21 = vld [vmem:[%s11967_s0 + $0x2e8] ss:$16 sps:$4 sm:$0xff]   ;;  %v9624_v46 = vld [vmem:[%s11967_s0 + $0x304] ss:$16 sps:$4 sm:$0xff]  }
 0x663   : > { %4835 = vmatpush1.bf16.msra.mxu0 %v9562_v47  ;;  %4917 = vmatpush1.bf16.msra.mxu1 %v9565_v48  ;;  %v9627_v47 = vld [vmem:[%s11967_s0 + $0x30c] ss:$16 sps:$4 sm:$0xff]   ;;  %v9622_v48 = vld [vmem:[%s11967_s0 + $0x300] ss:$16 sps:$4 sm:$0xff]  }
 0x664   : > { %4836 = vmatprep.subr.bf16.mxu0 %v9570_v49  ;;  %4918 = vmatprep.subr.bf16.mxu1 %v9573_v27  ;;  %v9625_v49 = vld [vmem:[%s11967_s0 + $0x308] ss:$16 sps:$4 sm:$0xff]   ;;  %v9630_v27 = vld [vmem:[%s11967_s0 + $0x324] ss:$16 sps:$4 sm:$0xff]  }
 0x667   : > { %4837 = vmatpush1.bf16.msra.mxu0 %v9568_v50  ;;  %4919 = vmatpush1.bf16.msra.mxu1 %v9571_v51  ;;  %v9633_v50 = vld [vmem:[%s11967_s0 + $0x32c] ss:$16 sps:$4 sm:$0xff]   ;;  %v9628_v51 = vld [vmem:[%s11967_s0 + $0x320] ss:$16 sps:$4 sm:$0xff]  }
 0x668   : > { %4847 = vmatprep.subr.bf16.mxu0 %v9576_v53  ;;  %4929 = vmatprep.subr.bf16.mxu1 %v9579_v54  ;;  %v9631_v53 = vld [vmem:[%s11967_s0 + $0x328] ss:$16 sps:$4 sm:$0xff]   ;;  %v9636_v54 = vld [vmem:[%s11967_s0 + $0x344] ss:$16 sps:$4 sm:$0xff]  }
 0x6fd   : > { %v3919_v59 = vpop.f32.mrb[12].mxu0  ;;  %v12147_v60 = vpop.f32.mrb[12].mxu1 }
 0x6fe   : > { %v8470_v61 = vadd.f32 %v3919_v59, %v3827_v56  ;;  %v3921_v62 = vpop.f32.mrb[13].mxu0  ;;  %v4003_v63 = vpop.f32.mrb[13].mxu1  ;;  %v9639_v56 = vld [vmem:[%s11967_s0 + $0x34c] ss:$16 sps:$4 sm:$0xff]   ;;  %v9642_v59 = vld [vmem:[%s11967_s0 + $0x364] ss:$16 sps:$4 sm:$0xff]  }
 0x6ff   : > { %v8471_v0 = vadd.f32 %v3921_v62, %v3831_v57  ;;  %v8473_v1 = vadd.f32 %v4003_v63, %v3839_v58  ;;  %v3923_v2 = vpop.f32.mrb[14].mxu0  ;;  %v4005_v3 = vpop.f32.mrb[14].mxu1  ;;  %v9634_v57 = vld [vmem:[%s11967_s0 + $0x340] ss:$16 sps:$4 sm:$0xff]   ;;  %v9637_v58 = vld [vmem:[%s11967_s0 + $0x348] ss:$16 sps:$4 sm:$0xff]  }
 0x700   : > { %v4008_v4 = vmax.f32 %v8470_v61, 0.0  ;;  %v3924_v5 = vpop.f32.mrb[15].mxu0  ;;  %v4006_v6 = vpop.f32.mrb[15].mxu1  ;;  %v9645_v61 = vld [vmem:[%s11967_s0 + $0x36c] ss:$16 sps:$4 sm:$0xff]  }
 0x701   : > { %v4009_v7 = vmax.f32 %v8471_v0, 0.0  ;;  %v4011_v8 = vmax.f32 %v8473_v1, 0.0  ;;  %v9640_v62 = vld [vmem:[%s11967_s0 + $0x360] ss:$16 sps:$4 sm:$0xff]   ;;  %v9643_v63 = vld [vmem:[%s11967_s0 + $0x368] ss:$16 sps:$4 sm:$0xff]  }
 0x702   : > { %v4141_v16 = vpack.c.bf16 %v4008_v4, %v4008_v4  ;;  %v9648_v0 = vld [vmem:[%s11967_s0 + $0x384] ss:$16 sps:$4 sm:$0xff]   ;;  %v9651_v1 = vld [vmem:[%s11967_s0 + $0x38c] ss:$16 sps:$4 sm:$0xff]   ;;  %v9646_v2 = vld [vmem:[%s11967_s0 + $0x380] ss:$16 sps:$4 sm:$0xff]  }
 0x703   : > { %v4142_v9 = vpack.c.bf16 %v4009_v7, %v4009_v7  ;;  %v4144_v19 = vpack.c.bf16 %v4011_v8, %v4011_v8  ;;  %v9649_v3 = vld [vmem:[%s11967_s0 + $0x388] ss:$16 sps:$4 sm:$0xff]   ;;  %v9654_v4 = vld [vmem:[%s11967_s0 + $0x3a4] ss:$16 sps:$4 sm:$0xff]   ;;  %v9657_v5 = vld [vmem:[%s11967_s0 + $0x3ac] ss:$16 sps:$4 sm:$0xff]   ;;  %v3835_v8 = vrot.slane %v12139_v55, %v12042_v29 }
 0x704   : > { %v9652_v6 = vld [vmem:[%s11967_s0 + $0x3a0] ss:$16 sps:$4 sm:$0xff]   ;;  %v9655_v7 = vld [vmem:[%s11967_s0 + $0x3a8] ss:$16 sps:$4 sm:$0xff]   ;;  %v9669_v55 = vld [vmem:[%s11967_s0 + $0x3ec] ss:$16 sps:$4 sm:$0xff]  }
 0x705   : > { %4838 = vmatprep.mubr.bf16.mxu0 %v4142_v9  ;;  %4920 = vmatprep.mubr.bf16.mxu1 %v4142_v9  ;;  %v9660_v9 = vld [vmem:[%s11967_s0 + $0x3c4] ss:$16 sps:$4 sm:$0xff]  }
 0x706   : > { %4839 = vmatmul.mubr.bf16.vlgmr.msra.gmra.mrb[16].mxu0 %v4141_v16  ;;  %4921 = vmatmul.mubr.bf16.vlgmr.msra.gmra.mrb[16].mxu1 %v4141_v16  ;;  %v9661_v16 = vld [vmem:[%s11967_s0 + $0x3c8] ss:$16 sps:$4 sm:$0xff]  }
 0x707   : > { %4848 = vmatpush1.bf16.msra.mxu0 %v9574_v15  ;;  %4930 = vmatpush1.bf16.msra.mxu1 %v9577_v23  ;;  %v9663_v15 = vld [vmem:[%s11967_s0 + $0x3cc] ss:$16 sps:$4 sm:$0xff]   ;;  %v9658_v23 = vld [vmem:[%s11967_s0 + $0x3c0] ss:$16 sps:$4 sm:$0xff]  }
 0x708   : > { %4879 = vmatprep.mubr.bf16.mxu0 %v4144_v19  ;;  %4961 = vmatprep.mubr.bf16.mxu1 %v4144_v19  ;;  %v9664_v19 = vld [vmem:[%s11967_s0 + $0x3e0] ss:$16 sps:$4 sm:$0xff]  }
 0x709   : > { %4849 = vmatprep.subr.bf16.mxu0 %v9582_v17  ;;  %4931 = vmatprep.subr.bf16.mxu1 %v9585_v18  ;;  %v8472_v17 = vadd.f32 %v12147_v60, %v3835_v8  ;;  %v9666_v18 = vld [vmem:[%s11967_s0 + $0x3e4] ss:$16 sps:$4 sm:$0xff]   ;;  %v9670_v60 = vld [vmem:[%s11982_s26] ss:$16 sps:$4 sm:$0xff]   ;;  %v9744_v8 = vld [vmem:[%s11982_s26 + $0x184] ss:$16 sps:$4 sm:$0xff]  }
 0x70b   : > { %4850 = vmatpush1.bf16.msra.mxu0 %v9580_v52  ;;  %4932 = vmatpush1.bf16.msra.mxu1 %v9583_v20  ;;  %v9667_v52 = vld [vmem:[%s11967_s0 + $0x3e8] ss:$16 sps:$4 sm:$0xff]   ;;  %v4010_v20 = vmax.f32 %v8472_v17, 0.0  ;;  %v9753_v17 = vld [vmem:[%s11982_s26 + $0x1ac] ss:$16 sps:$4 sm:$0xff]   ;;  %s12934_s0 = sld [smem:[#allocation103_spill]] }
 0x70c   : > { %4851 = vmatprep.subr.bf16.mxu0 %v9588_v22  ;;  %4933 = vmatprep.subr.bf16.mxu1 %v9591_v24  ;;  %v9672_v22 = vld [vmem:[%s11982_s26 + $0x4] ss:$16 sps:$4 sm:$0xff]   ;;  %v9675_v24 = vld [vmem:[%s11982_s26 + $0xc] ss:$16 sps:$4 sm:$0xff]  }
 0x70f   : > { %4852 = vmatpush1.bf16.msra.mxu0 %v9586_v25  ;;  %4934 = vmatpush1.bf16.msra.mxu1 %v9589_v26  ;;  %v9673_v25 = vld [vmem:[%s11982_s26 + $0x8] ss:$16 sps:$4 sm:$0xff]   ;;  %v4143_v26 = vpack.c.bf16 %v4010_v20, %v4010_v20  ;;  %v9754_v20 = vld [vmem:[%s11982_s26 + $0x1c0] ss:$16 sps:$4 sm:$0xff]  }
 0x710   : > { %4853 = vmatprep.subr.bf16.mxu0 %v9594_v28  ;;  %4935 = vmatprep.subr.bf16.mxu1 %v9597_v30  ;;  %v9678_v28 = vld [vmem:[%s11982_s26 + $0x24] ss:$16 sps:$4 sm:$0xff]   ;;  %v9681_v30 = vld [vmem:[%s11982_s26 + $0x2c] ss:$16 sps:$4 sm:$0xff]  }
 0x711   : > { %s12427_s6 = scalar_lea.vmem %s12934_s0, %s8417_s12 }
 0x713   : > { %4854 = vmatpush1.bf16.msra.mxu0 %v9592_v31  ;;  %4936 = vmatpush1.bf16.msra.mxu1 %v9595_v32  ;;  %v9676_v31 = vld [vmem:[%s11982_s26 + $0x20] ss:$16 sps:$4 sm:$0xff]   ;;  %v9679_v32 = vld [vmem:[%s11982_s26 + $0x28] ss:$16 sps:$4 sm:$0xff]  }
 0x714   : > { %4855 = vmatprep.subr.bf16.mxu0 %v9600_v33  ;;  %4937 = vmatprep.subr.bf16.mxu1 %v9603_v34  ;;  %v9684_v33 = vld [vmem:[%s11982_s26 + $0x44] ss:$16 sps:$4 sm:$0xff]   ;;  %v9687_v34 = vld [vmem:[%s11982_s26 + $0x4c] ss:$16 sps:$4 sm:$0xff]  }
 0x717   : > { %4856 = vmatpush1.bf16.msra.mxu0 %v9598_v35  ;;  %4938 = vmatpush1.bf16.msra.mxu1 %v9601_v36  ;;  %v9682_v35 = vld [vmem:[%s11982_s26 + $0x40] ss:$16 sps:$4 sm:$0xff]   ;;  %v9685_v36 = vld [vmem:[%s11982_s26 + $0x48] ss:$16 sps:$4 sm:$0xff]  }
 0x718   : > { %4857 = vmatprep.subr.bf16.mxu0 %v9606_v37  ;;  %4939 = vmatprep.subr.bf16.mxu1 %v9609_v38  ;;  %v9690_v37 = vld [vmem:[%s11982_s26 + $0x64] ss:$16 sps:$4 sm:$0xff]   ;;  %v9693_v38 = vld [vmem:[%s11982_s26 + $0x6c] ss:$16 sps:$4 sm:$0xff]  }
 0x71b   : > { %4858 = vmatpush1.bf16.msra.mxu0 %v9604_v10  ;;  %4940 = vmatpush1.bf16.msra.mxu1 %v9607_v39  ;;  %v9688_v10 = vld [vmem:[%s11982_s26 + $0x60] ss:$16 sps:$4 sm:$0xff]   ;;  %v9691_v39 = vld [vmem:[%s11982_s26 + $0x68] ss:$16 sps:$4 sm:$0xff]  }
 0x71c   : > { %4859 = vmatprep.subr.bf16.mxu0 %v9612_v40  ;;  %4941 = vmatprep.subr.bf16.mxu1 %v9615_v41  ;;  %v9696_v40 = vld [vmem:[%s11982_s26 + $0x84] ss:$16 sps:$4 sm:$0xff]   ;;  %v9699_v41 = vld [vmem:[%s11982_s26 + $0x8c] ss:$16 sps:$4 sm:$0xff]  }
 0x71f   : > { %4860 = vmatpush1.bf16.msra.mxu0 %v9610_v42  ;;  %4942 = vmatpush1.bf16.msra.mxu1 %v9613_v43  ;;  %v9694_v42 = vld [vmem:[%s11982_s26 + $0x80] ss:$16 sps:$4 sm:$0xff]   ;;  %v9697_v43 = vld [vmem:[%s11982_s26 + $0x88] ss:$16 sps:$4 sm:$0xff]  }
 0x720   : > { %4861 = vmatprep.subr.bf16.mxu0 %v9618_v12  ;;  %4943 = vmatprep.subr.bf16.mxu1 %v9621_v44  ;;  %v9702_v12 = vld [vmem:[%s11982_s26 + $0xa4] ss:$16 sps:$4 sm:$0xff]   ;;  %v9705_v44 = vld [vmem:[%s11982_s26 + $0xac] ss:$16 sps:$4 sm:$0xff]  }
 0x723   : > { %4862 = vmatpush1.bf16.msra.mxu0 %v9616_v45  ;;  %4944 = vmatpush1.bf16.msra.mxu1 %v9619_v21  ;;  %v9700_v45 = vld [vmem:[%s11982_s26 + $0xa0] ss:$16 sps:$4 sm:$0xff]   ;;  %v9703_v21 = vld [vmem:[%s11982_s26 + $0xa8] ss:$16 sps:$4 sm:$0xff]  }
 0x724   : > { %4863 = vmatprep.subr.bf16.mxu0 %v9624_v46  ;;  %4945 = vmatprep.subr.bf16.mxu1 %v9627_v47  ;;  %v9708_v46 = vld [vmem:[%s11982_s26 + $0xc4] ss:$16 sps:$4 sm:$0xff]   ;;  %v9711_v47 = vld [vmem:[%s11982_s26 + $0xcc] ss:$16 sps:$4 sm:$0xff]  }
 0x727   : > { %4864 = vmatpush1.bf16.msra.mxu0 %v9622_v48  ;;  %4946 = vmatpush1.bf16.msra.mxu1 %v9625_v49  ;;  %v9706_v48 = vld [vmem:[%s11982_s26 + $0xc0] ss:$16 sps:$4 sm:$0xff]   ;;  %v9709_v49 = vld [vmem:[%s11982_s26 + $0xc8] ss:$16 sps:$4 sm:$0xff]  }
 0x728   : > { %4865 = vmatprep.subr.bf16.mxu0 %v9630_v27  ;;  %4947 = vmatprep.subr.bf16.mxu1 %v9633_v50  ;;  %v9714_v27 = vld [vmem:[%s11982_s26 + $0xe4] ss:$16 sps:$4 sm:$0xff]   ;;  %v9717_v50 = vld [vmem:[%s11982_s26 + $0xec] ss:$16 sps:$4 sm:$0xff]  }
 0x72b   : > { %4866 = vmatpush1.bf16.msra.mxu0 %v9628_v51  ;;  %4948 = vmatpush1.bf16.msra.mxu1 %v9631_v53  ;;  %v9712_v51 = vld [vmem:[%s11982_s26 + $0xe0] ss:$16 sps:$4 sm:$0xff]   ;;  %v9715_v53 = vld [vmem:[%s11982_s26 + $0xe8] ss:$16 sps:$4 sm:$0xff]  }
 0x72c   : > { %4867 = vmatprep.subr.bf16.mxu0 %v9636_v54  ;;  %4949 = vmatprep.subr.bf16.mxu1 %v9639_v56  ;;  %v9720_v54 = vld [vmem:[%s11982_s26 + $0x104] ss:$16 sps:$4 sm:$0xff]   ;;  %v9723_v56 = vld [vmem:[%s11982_s26 + $0x10c] ss:$16 sps:$4 sm:$0xff]  }
 0x72f   : > { %4868 = vmatpush1.bf16.msra.mxu0 %v9634_v57  ;;  %4950 = vmatpush1.bf16.msra.mxu1 %v9637_v58  ;;  %v9718_v57 = vld [vmem:[%s11982_s26 + $0x100] ss:$16 sps:$4 sm:$0xff]   ;;  %v9721_v58 = vld [vmem:[%s11982_s26 + $0x108] ss:$16 sps:$4 sm:$0xff]  }
 0x730   : > { %4869 = vmatprep.subr.bf16.mxu0 %v9642_v59  ;;  %4951 = vmatprep.subr.bf16.mxu1 %v9645_v61  ;;  %v9726_v59 = vld [vmem:[%s11982_s26 + $0x124] ss:$16 sps:$4 sm:$0xff]   ;;  %v9729_v61 = vld [vmem:[%s11982_s26 + $0x12c] ss:$16 sps:$4 sm:$0xff]  }
 0x733   : > { %4870 = vmatpush1.bf16.msra.mxu0 %v9640_v62  ;;  %4952 = vmatpush1.bf16.msra.mxu1 %v9643_v63  ;;  %v9724_v62 = vld [vmem:[%s11982_s26 + $0x120] ss:$16 sps:$4 sm:$0xff]   ;;  %v9727_v63 = vld [vmem:[%s11982_s26 + $0x128] ss:$16 sps:$4 sm:$0xff]  }
 0x734   : > { %4871 = vmatprep.subr.bf16.mxu0 %v9648_v0  ;;  %4953 = vmatprep.subr.bf16.mxu1 %v9651_v1  ;;  %v9732_v0 = vld [vmem:[%s11982_s26 + $0x144] ss:$16 sps:$4 sm:$0xff]   ;;  %v9735_v1 = vld [vmem:[%s11982_s26 + $0x14c] ss:$16 sps:$4 sm:$0xff]  }
 0x737   : > { %4872 = vmatpush1.bf16.msra.mxu0 %v9646_v2  ;;  %4954 = vmatpush1.bf16.msra.mxu1 %v9649_v3  ;;  %v9730_v2 = vld [vmem:[%s11982_s26 + $0x140] ss:$16 sps:$4 sm:$0xff]   ;;  %v9733_v3 = vld [vmem:[%s11982_s26 + $0x148] ss:$16 sps:$4 sm:$0xff]  }
 0x738   : > { %4873 = vmatprep.subr.bf16.mxu0 %v9654_v4  ;;  %4955 = vmatprep.subr.bf16.mxu1 %v9657_v5  ;;  %v9738_v4 = vld [vmem:[%s11982_s26 + $0x164] ss:$16 sps:$4 sm:$0xff]   ;;  %v9741_v5 = vld [vmem:[%s11982_s26 + $0x16c] ss:$16 sps:$4 sm:$0xff]  }
 0x73b   : > { %4874 = vmatpush1.bf16.msra.mxu0 %v9652_v6  ;;  %4956 = vmatpush1.bf16.msra.mxu1 %v9655_v7  ;;  %v9736_v6 = vld [vmem:[%s11982_s26 + $0x160] ss:$16 sps:$4 sm:$0xff]   ;;  %v9739_v7 = vld [vmem:[%s11982_s26 + $0x168] ss:$16 sps:$4 sm:$0xff]  }
 0x73c   : > { %4875 = vmatprep.subr.bf16.mxu0 %v9660_v9  ;;  %4957 = vmatprep.subr.bf16.mxu1 %v9663_v15  ;;  %v9747_v9 = vld [vmem:[%s11982_s26 + $0x18c] ss:$16 sps:$4 sm:$0xff]   ;;  %v9742_v15 = vld [vmem:[%s11982_s26 + $0x180] ss:$16 sps:$4 sm:$0xff]  }
 0x73f   : > { %4876 = vmatpush1.bf16.msra.mxu0 %v9658_v23  ;;  %4958 = vmatpush1.bf16.msra.mxu1 %v9661_v16  ;;  %v9745_v23 = vld [vmem:[%s11982_s26 + $0x188] ss:$16 sps:$4 sm:$0xff]   ;;  %v9750_v16 = vld [vmem:[%s11982_s26 + $0x1a4] ss:$16 sps:$4 sm:$0xff]  }
 0x740   : > { %4877 = vmatprep.subr.bf16.mxu0 %v9666_v18  ;;  %4959 = vmatprep.subr.bf16.mxu1 %v9669_v55  ;;  %v9748_v18 = vld [vmem:[%s11982_s26 + $0x1a0] ss:$16 sps:$4 sm:$0xff]   ;;  %v9751_v55 = vld [vmem:[%s11982_s26 + $0x1a8] ss:$16 sps:$4 sm:$0xff]  }
 0x743   : > { %4878 = vmatpush1.bf16.msra.mxu0 %v9664_v19  ;;  %4960 = vmatpush1.bf16.msra.mxu1 %v9667_v52  ;;  %v9756_v19 = vld [vmem:[%s11982_s26 + $0x1c4] ss:$16 sps:$4 sm:$0xff]   ;;  %v9759_v52 = vld [vmem:[%s11982_s26 + $0x1cc] ss:$16 sps:$4 sm:$0xff]  }
 0x744   : > { %5768 = vmatprep.subr.bf16.mxu0 %v9672_v22  ;;  %5850 = vmatprep.subr.bf16.mxu1 %v9675_v24  ;;  %v9757_v22 = vld [vmem:[%s11982_s26 + $0x1c8] ss:$16 sps:$4 sm:$0xff]   ;;  %v9762_v24 = vld [vmem:[%s11982_s26 + $0x1e4] ss:$16 sps:$4 sm:$0xff]  }
 0x746   : > { %4880 = vmatmul.mubr.bf16.vlgmr.msra.gmra.mrb[16].mxu0 %v4143_v26  ;;  %4962 = vmatmul.mubr.bf16.vlgmr.msra.gmra.mrb[16].mxu1 %v4143_v26  ;;  %v9763_v26 = vld [vmem:[%s11982_s26 + $0x1e8] ss:$16 sps:$4 sm:$0xff]  }
 0x747   : > { %5769 = vmatpush1.bf16.msra.mxu0 %v9670_v60  ;;  %5851 = vmatpush1.bf16.msra.mxu1 %v9673_v25  ;;  %v9765_v60 = vld [vmem:[%s11982_s26 + $0x1ec] ss:$16 sps:$4 sm:$0xff]   ;;  %v9760_v25 = vld [vmem:[%s11982_s26 + $0x1e0] ss:$16 sps:$4 sm:$0xff]  }
 0x748   : > { %5770 = vmatprep.subr.bf16.mxu0 %v9678_v28  ;;  %5852 = vmatprep.subr.bf16.mxu1 %v9681_v30  ;;  %v9768_v28 = vld [vmem:[%s11982_s26 + $0x204] ss:$16 sps:$4 sm:$0xff]   ;;  %v9771_v30 = vld [vmem:[%s11982_s26 + $0x20c] ss:$16 sps:$4 sm:$0xff]  }
 0x74b   : > { %5771 = vmatpush1.bf16.msra.mxu0 %v9676_v31  ;;  %5853 = vmatpush1.bf16.msra.mxu1 %v9679_v32  ;;  %v12282_v31 = vld [vmem:[%s840_s16] sm:$0xf]  ;;  %s8408_s16 = sshll.u32 %s11096_s2, 4  ;;  %s10862_s2 = smov [#allocation30]  }
 0x74c   : > { %5772 = vmatprep.subr.bf16.mxu0 %v9684_v33  ;;  %5854 = vmatprep.subr.bf16.mxu1 %v9687_v34  ;;  %v4789_v32 = vrot.slane %v12282_v31, %v12023_v11  ;;  %v4793_v33 = vrot.slane %v12282_v31, %v12028_v13  ;;  %v4801_v34 = vrot.slane %v12282_v31, %v12031_v14  ;;  %s10564_s27 = sshll.u32 %s10862_s2, 4  ;;  %s10565_s27 = int_to_ptr.vmem [resolvable:$false] %s10564_s27 }
 0x74d   : > { %s10566_s19 = scalar_lea.vmem %s10565_s27, 32 }
 0x74f   : > { %5773 = vmatpush1.bf16.msra.mxu0 %v9682_v35  ;;  %5855 = vmatpush1.bf16.msra.mxu1 %v9685_v36 }
 0x750   : > { %5774 = vmatprep.subr.bf16.mxu0 %v9690_v37  ;;  %5856 = vmatprep.subr.bf16.mxu1 %v9693_v38 }
 0x753   : > { %5775 = vmatpush1.bf16.msra.mxu0 %v9688_v10  ;;  %5857 = vmatpush1.bf16.msra.mxu1 %v9691_v39 }
 0x754   : > { %5776 = vmatprep.subr.bf16.mxu0 %v9696_v40  ;;  %5858 = vmatprep.subr.bf16.mxu1 %v9699_v41 }
 0x757   : > { %5777 = vmatpush1.bf16.msra.mxu0 %v9694_v42  ;;  %5859 = vmatpush1.bf16.msra.mxu1 %v9697_v43 }
 0x758   : > { %5778 = vmatprep.subr.bf16.mxu0 %v9702_v12  ;;  %5860 = vmatprep.subr.bf16.mxu1 %v9705_v44 }
 0x75b   : > { %5779 = vmatpush1.bf16.msra.mxu0 %v9700_v45  ;;  %5861 = vmatpush1.bf16.msra.mxu1 %v9703_v21 }
 0x75c   : > { %5780 = vmatprep.subr.bf16.mxu0 %v9708_v46  ;;  %5862 = vmatprep.subr.bf16.mxu1 %v9711_v47  ;;  %v9766_v47 = vld [vmem:[%s11982_s26 + $0x200] ss:$16 sps:$4 sm:$0xff]  }
 0x75f   : > { %5781 = vmatpush1.bf16.msra.mxu0 %v9706_v48  ;;  %5863 = vmatpush1.bf16.msra.mxu1 %v9709_v49  ;;  %v9769_v48 = vld [vmem:[%s11982_s26 + $0x208] ss:$16 sps:$4 sm:$0xff]  }
 0x760   : > { %5782 = vmatprep.subr.bf16.mxu0 %v9714_v27  ;;  %5864 = vmatprep.subr.bf16.mxu1 %v9717_v50  ;;  %v9774_v27 = vld [vmem:[%s11982_s26 + $0x224] ss:$16 sps:$4 sm:$0xff]   ;;  %v9777_v50 = vld [vmem:[%s11982_s26 + $0x22c] ss:$16 sps:$4 sm:$0xff]  }
 0x763   : > { %5783 = vmatpush1.bf16.msra.mxu0 %v9712_v51  ;;  %5865 = vmatpush1.bf16.msra.mxu1 %v9715_v53  ;;  %v9772_v53 = vld [vmem:[%s11982_s26 + $0x220] ss:$16 sps:$4 sm:$0xff]  }
 0x764   : > { %5784 = vmatprep.subr.bf16.mxu0 %v9720_v54  ;;  %5866 = vmatprep.subr.bf16.mxu1 %v9723_v56  ;;  %v9775_v54 = vld [vmem:[%s11982_s26 + $0x228] ss:$16 sps:$4 sm:$0xff]   ;;  %v9780_v56 = vld [vmem:[%s11982_s26 + $0x244] ss:$16 sps:$4 sm:$0xff]  }
 0x767   : > { %5785 = vmatpush1.bf16.msra.mxu0 %v9718_v57  ;;  %5867 = vmatpush1.bf16.msra.mxu1 %v9721_v58  ;;  %v9783_v57 = vld [vmem:[%s11982_s26 + $0x24c] ss:$16 sps:$4 sm:$0xff]   ;;  %v9778_v58 = vld [vmem:[%s11982_s26 + $0x240] ss:$16 sps:$4 sm:$0xff]  }
 0x768   : > { %5786 = vmatprep.subr.bf16.mxu0 %v9726_v59  ;;  %5868 = vmatprep.subr.bf16.mxu1 %v9729_v61  ;;  %v9781_v59 = vld [vmem:[%s11982_s26 + $0x248] ss:$16 sps:$4 sm:$0xff]   ;;  %v9786_v61 = vld [vmem:[%s11982_s26 + $0x264] ss:$16 sps:$4 sm:$0xff]  }
 0x76b   : > { %5787 = vmatpush1.bf16.msra.mxu0 %v9724_v62  ;;  %5869 = vmatpush1.bf16.msra.mxu1 %v9727_v63  ;;  %v9789_v62 = vld [vmem:[%s11982_s26 + $0x26c] ss:$16 sps:$4 sm:$0xff]   ;;  %v9784_v63 = vld [vmem:[%s11982_s26 + $0x260] ss:$16 sps:$4 sm:$0xff]  }
 0x76c   : > { %5788 = vmatprep.subr.bf16.mxu0 %v9732_v0  ;;  %5870 = vmatprep.subr.bf16.mxu1 %v9735_v1  ;;  %v9787_v0 = vld [vmem:[%s11982_s26 + $0x268] ss:$16 sps:$4 sm:$0xff]   ;;  %v9792_v1 = vld [vmem:[%s11982_s26 + $0x284] ss:$16 sps:$4 sm:$0xff]  }
 0x76f   : > { %5789 = vmatpush1.bf16.msra.mxu0 %v9730_v2  ;;  %5871 = vmatpush1.bf16.msra.mxu1 %v9733_v3  ;;  %v9795_v2 = vld [vmem:[%s11982_s26 + $0x28c] ss:$16 sps:$4 sm:$0xff]   ;;  %v9790_v3 = vld [vmem:[%s11982_s26 + $0x280] ss:$16 sps:$4 sm:$0xff]  }
 0x770   : > { %5790 = vmatprep.subr.bf16.mxu0 %v9738_v4  ;;  %5872 = vmatprep.subr.bf16.mxu1 %v9741_v5  ;;  %v9793_v4 = vld [vmem:[%s11982_s26 + $0x288] ss:$16 sps:$4 sm:$0xff]   ;;  %v9798_v5 = vld [vmem:[%s11982_s26 + $0x2a4] ss:$16 sps:$4 sm:$0xff]  }
 0x773   : > { %5791 = vmatpush1.bf16.msra.mxu0 %v9736_v6  ;;  %5873 = vmatpush1.bf16.msra.mxu1 %v9739_v7  ;;  %v9801_v6 = vld [vmem:[%s11982_s26 + $0x2ac] ss:$16 sps:$4 sm:$0xff]   ;;  %v9796_v7 = vld [vmem:[%s11982_s26 + $0x2a0] ss:$16 sps:$4 sm:$0xff]  }
 0x774   : > { %5792 = vmatprep.subr.bf16.mxu0 %v9744_v8  ;;  %5874 = vmatprep.subr.bf16.mxu1 %v9747_v9  ;;  %v9799_v8 = vld [vmem:[%s11982_s26 + $0x2a8] ss:$16 sps:$4 sm:$0xff]   ;;  %v9804_v9 = vld [vmem:[%s11982_s26 + $0x2c4] ss:$16 sps:$4 sm:$0xff]  }
 0x777   : > { %5793 = vmatpush1.bf16.msra.mxu0 %v9742_v15  ;;  %5875 = vmatpush1.bf16.msra.mxu1 %v9745_v23  ;;  %v9807_v15 = vld [vmem:[%s11982_s26 + $0x2cc] ss:$16 sps:$4 sm:$0xff]   ;;  %v9802_v23 = vld [vmem:[%s11982_s26 + $0x2c0] ss:$16 sps:$4 sm:$0xff]  }
 0x778   : > { %5794 = vmatprep.subr.bf16.mxu0 %v9750_v16  ;;  %5876 = vmatprep.subr.bf16.mxu1 %v9753_v17  ;;  %v9805_v16 = vld [vmem:[%s11982_s26 + $0x2c8] ss:$16 sps:$4 sm:$0xff]   ;;  %v9810_v17 = vld [vmem:[%s11982_s26 + $0x2e4] ss:$16 sps:$4 sm:$0xff]  }
 0x77b   : > { %5795 = vmatpush1.bf16.msra.mxu0 %v9748_v18  ;;  %5877 = vmatpush1.bf16.msra.mxu1 %v9751_v55  ;;  %v9813_v18 = vld [vmem:[%s11982_s26 + $0x2ec] ss:$16 sps:$4 sm:$0xff]   ;;  %v9808_v55 = vld [vmem:[%s11982_s26 + $0x2e0] ss:$16 sps:$4 sm:$0xff]  }
 0x77c   : > { %5796 = vmatprep.subr.bf16.mxu0 %v9756_v19  ;;  %5878 = vmatprep.subr.bf16.mxu1 %v9759_v52  ;;  %v9811_v19 = vld [vmem:[%s11982_s26 + $0x2e8] ss:$16 sps:$4 sm:$0xff]   ;;  %v9816_v52 = vld [vmem:[%s11982_s26 + $0x304] ss:$16 sps:$4 sm:$0xff]  }
 0x77f   : > { %5797 = vmatpush1.bf16.msra.mxu0 %v9754_v20  ;;  %5879 = vmatpush1.bf16.msra.mxu1 %v9757_v22  ;;  %v9819_v20 = vld [vmem:[%s11982_s26 + $0x30c] ss:$16 sps:$4 sm:$0xff]   ;;  %v9814_v22 = vld [vmem:[%s11982_s26 + $0x300] ss:$16 sps:$4 sm:$0xff]  }
 0x780   : > { %5798 = vmatprep.subr.bf16.mxu0 %v9762_v24  ;;  %5880 = vmatprep.subr.bf16.mxu1 %v9765_v60  ;;  %v9817_v24 = vld [vmem:[%s11982_s26 + $0x308] ss:$16 sps:$4 sm:$0xff]   ;;  %v9822_v60 = vld [vmem:[%s11982_s26 + $0x324] ss:$16 sps:$4 sm:$0xff]  }
 0x783   : > { %5799 = vmatpush1.bf16.msra.mxu0 %v9760_v25  ;;  %5881 = vmatpush1.bf16.msra.mxu1 %v9763_v26  ;;  %v9825_v25 = vld [vmem:[%s11982_s26 + $0x32c] ss:$16 sps:$4 sm:$0xff]   ;;  %v9820_v26 = vld [vmem:[%s11982_s26 + $0x320] ss:$16 sps:$4 sm:$0xff]  }
 0x784   : > { %5809 = vmatprep.subr.bf16.mxu0 %v9768_v28  ;;  %5891 = vmatprep.subr.bf16.mxu1 %v9771_v30  ;;  %v9823_v28 = vld [vmem:[%s11982_s26 + $0x328] ss:$16 sps:$4 sm:$0xff]   ;;  %v9828_v30 = vld [vmem:[%s11982_s26 + $0x344] ss:$16 sps:$4 sm:$0xff]  }
 0x819   : > { %v4881_v35 = vpop.f32.mrb[16].mxu0  ;;  %v12290_v36 = vpop.f32.mrb[16].mxu1 }
 0x81a   : > { %v8474_v37 = vadd.f32 %v4881_v35, %v4789_v32  ;;  %v4883_v38 = vpop.f32.mrb[17].mxu0  ;;  %v4965_v10 = vpop.f32.mrb[17].mxu1  ;;  %v9831_v32 = vld [vmem:[%s11982_s26 + $0x34c] ss:$16 sps:$4 sm:$0xff]   ;;  %v9834_v35 = vld [vmem:[%s11982_s26 + $0x364] ss:$16 sps:$4 sm:$0xff]  }
 0x81b   : > { %v8475_v39 = vadd.f32 %v4883_v38, %v4793_v33  ;;  %v8477_v40 = vadd.f32 %v4965_v10, %v4801_v34  ;;  %v4885_v41 = vpop.f32.mrb[18].mxu0  ;;  %v4967_v42 = vpop.f32.mrb[18].mxu1  ;;  %v9826_v33 = vld [vmem:[%s11982_s26 + $0x340] ss:$16 sps:$4 sm:$0xff]   ;;  %v9829_v34 = vld [vmem:[%s11982_s26 + $0x348] ss:$16 sps:$4 sm:$0xff]  }
 0x81c   : > { %v4970_v43 = vmax.f32 %v8474_v37, 0.0  ;;  %v4886_v12 = vpop.f32.mrb[19].mxu0  ;;  %v4968_v44 = vpop.f32.mrb[19].mxu1  ;;  %v9837_v37 = vld [vmem:[%s11982_s26 + $0x36c] ss:$16 sps:$4 sm:$0xff]  }
 0x81d   : > { %v4971_v45 = vmax.f32 %v8475_v39, 0.0  ;;  %v4973_v21 = vmax.f32 %v8477_v40, 0.0  ;;  %v9832_v38 = vld [vmem:[%s11982_s26 + $0x360] ss:$16 sps:$4 sm:$0xff]   ;;  %v9835_v10 = vld [vmem:[%s11982_s26 + $0x368] ss:$16 sps:$4 sm:$0xff]  }
 0x81e   : > { %v5103_v49 = vpack.c.bf16 %v4970_v43, %v4970_v43  ;;  %v9840_v39 = vld [vmem:[%s11982_s26 + $0x384] ss:$16 sps:$4 sm:$0xff]   ;;  %v9843_v40 = vld [vmem:[%s11982_s26 + $0x38c] ss:$16 sps:$4 sm:$0xff]   ;;  %v9838_v41 = vld [vmem:[%s11982_s26 + $0x380] ss:$16 sps:$4 sm:$0xff]  }
 0x81f   : > { %v5104_v46 = vpack.c.bf16 %v4971_v45, %v4971_v45  ;;  %v5106_v51 = vpack.c.bf16 %v4973_v21, %v4973_v21  ;;  %v9841_v42 = vld [vmem:[%s11982_s26 + $0x388] ss:$16 sps:$4 sm:$0xff]   ;;  %v9846_v43 = vld [vmem:[%s11982_s26 + $0x3a4] ss:$16 sps:$4 sm:$0xff]   ;;  %v9849_v12 = vld [vmem:[%s11982_s26 + $0x3ac] ss:$16 sps:$4 sm:$0xff]   ;;  %v4797_v21 = vrot.slane %v12282_v31, %v12042_v29 }
 0x820   : > { %v9844_v44 = vld [vmem:[%s11982_s26 + $0x3a0] ss:$16 sps:$4 sm:$0xff]   ;;  %v9847_v45 = vld [vmem:[%s11982_s26 + $0x3a8] ss:$16 sps:$4 sm:$0xff]   ;;  %v9861_v31 = vld [vmem:[%s11982_s26 + $0x3ec] ss:$16 sps:$4 sm:$0xff]  }
 0x821   : > { %5800 = vmatprep.mubr.bf16.mxu0 %v5104_v46  ;;  %5882 = vmatprep.mubr.bf16.mxu1 %v5104_v46  ;;  %v9852_v46 = vld [vmem:[%s11982_s26 + $0x3c4] ss:$16 sps:$4 sm:$0xff]  }
 0x822   : > { %5801 = vmatmul.mubr.bf16.vlgmr.msra.gmra.mrb[20].mxu0 %v5103_v49  ;;  %5883 = vmatmul.mubr.bf16.vlgmr.msra.gmra.mrb[20].mxu1 %v5103_v49  ;;  %v9853_v49 = vld [vmem:[%s11982_s26 + $0x3c8] ss:$16 sps:$4 sm:$0xff]  }
 0x823   : > { %5810 = vmatpush1.bf16.msra.mxu0 %v9766_v47  ;;  %5892 = vmatpush1.bf16.msra.mxu1 %v9769_v48  ;;  %v9855_v47 = vld [vmem:[%s11982_s26 + $0x3cc] ss:$16 sps:$4 sm:$0xff]   ;;  %v9850_v48 = vld [vmem:[%s11982_s26 + $0x3c0] ss:$16 sps:$4 sm:$0xff]  }
 0x824   : > { %5841 = vmatprep.mubr.bf16.mxu0 %v5106_v51  ;;  %5923 = vmatprep.mubr.bf16.mxu1 %v5106_v51  ;;  %v9856_v51 = vld [vmem:[%s11982_s26 + $0x3e0] ss:$16 sps:$4 sm:$0xff]  }
 0x825   : > { %5811 = vmatprep.subr.bf16.mxu0 %v9774_v27  ;;  %5893 = vmatprep.subr.bf16.mxu1 %v9777_v50  ;;  %v8476_v27 = vadd.f32 %v12290_v36, %v4797_v21  ;;  %v9858_v50 = vld [vmem:[%s11982_s26 + $0x3e4] ss:$16 sps:$4 sm:$0xff]   ;;  %v9862_v36 = vld [vmem:[%s11997_s13] ss:$16 sps:$4 sm:$0xff]   ;;  %v9936_v21 = vld [vmem:[%s11997_s13 + $0x184] ss:$16 sps:$4 sm:$0xff]  }
 0x827   : > { %5812 = vmatpush1.bf16.msra.mxu0 %v9772_v53  ;;  %5894 = vmatpush1.bf16.msra.mxu1 %v9775_v54  ;;  %v9859_v53 = vld [vmem:[%s11982_s26 + $0x3e8] ss:$16 sps:$4 sm:$0xff]   ;;  %v4972_v54 = vmax.f32 %v8476_v27, 0.0  ;;  %v9945_v27 = vld [vmem:[%s11997_s13 + $0x1ac] ss:$16 sps:$4 sm:$0xff]   ;;  %s972_s26 = scalar_lea.vmem [#allocation30], %s11941_s24 }
 0x828   : > { %5813 = vmatprep.subr.bf16.mxu0 %v9780_v56  ;;  %5895 = vmatprep.subr.bf16.mxu1 %v9783_v57  ;;  %v9864_v56 = vld [vmem:[%s11997_s13 + $0x4] ss:$16 sps:$4 sm:$0xff]   ;;  %v9867_v57 = vld [vmem:[%s11997_s13 + $0xc] ss:$16 sps:$4 sm:$0xff]   ;;  %s7254_s10 = sshll.u32 %s972_s26, 4  ;;  %s12552_s10 = int_to_ptr.vmem [resolvable:$true] %s7254_s10 }
 0x829   : > { %s10560_s25 = scalar_lea.vmem %s12552_s10, 16  ;;  %p10567_p10 = scmp.lt.s32.totalorder %s12552_s10, %s10565_s27 }
 0x82a   : > { %p10561_p13 = scmp.ne.s32.totalorder %s12552_s10, %s10560_s25  ;;  %p10568_p12 = scmp.lt.s32.totalorder %s10566_s19, %s10560_s25 }
 0x82b   : > { %5814 = vmatpush1.bf16.msra.mxu0 %v9778_v58  ;;  %5896 = vmatpush1.bf16.msra.mxu1 %v9781_v59  ;;  %v9865_v58 = vld [vmem:[%s11997_s13 + $0x8] ss:$16 sps:$4 sm:$0xff]   ;;  %v5105_v59 = vpack.c.bf16 %v4972_v54, %v4972_v54  ;;  %v9946_v54 = vld [vmem:[%s11997_s13 + $0x1c0] ss:$16 sps:$4 sm:$0xff]  }
 0x82c   : > { %5815 = vmatprep.subr.bf16.mxu0 %v9786_v61  ;;  %5897 = vmatprep.subr.bf16.mxu1 %v9789_v62  ;;  %v9870_v61 = vld [vmem:[%s11997_s13 + $0x24] ss:$16 sps:$4 sm:$0xff]   ;;  %v9873_v62 = vld [vmem:[%s11997_s13 + $0x2c] ss:$16 sps:$4 sm:$0xff]   ;;  %p10562_p7 = pnand %p10561_p13, %p12937_p5  ;;  %p10569_p11 = por %p10568_p12, %p10567_p10 }
 0x82e   : > { %p10563_p9 = pneg %p10562_p7 }
 0x82f   : > { %5816 = vmatpush1.bf16.msra.mxu0 %v9784_v63  ;;  %5898 = vmatpush1.bf16.msra.mxu1 %v9787_v0  ;;  %v9868_v63 = vld [vmem:[%s11997_s13 + $0x20] ss:$16 sps:$4 sm:$0xff]   ;;  %v9871_v0 = vld [vmem:[%s11997_s13 + $0x28] ss:$16 sps:$4 sm:$0xff]  }
 0x830   : > { %5817 = vmatprep.subr.bf16.mxu0 %v9792_v1  ;;  %5899 = vmatprep.subr.bf16.mxu1 %v9795_v2  ;;  %v9876_v1 = vld [vmem:[%s11997_s13 + $0x44] ss:$16 sps:$4 sm:$0xff]   ;;  %v9879_v2 = vld [vmem:[%s11997_s13 + $0x4c] ss:$16 sps:$4 sm:$0xff]   ;;  %p10570_p3 = pnand %p10569_p11, %p10563_p9 }
 0x833   : > { %5818 = vmatpush1.bf16.msra.mxu0 %v9790_v3  ;;  %5900 = vmatpush1.bf16.msra.mxu1 %v9793_v4  ;;  %v9874_v3 = vld [vmem:[%s11997_s13 + $0x40] ss:$16 sps:$4 sm:$0xff]   ;;  %v9877_v4 = vld [vmem:[%s11997_s13 + $0x48] ss:$16 sps:$4 sm:$0xff]  }
 0x834   : > { %5819 = vmatprep.subr.bf16.mxu0 %v9798_v5  ;;  %5901 = vmatprep.subr.bf16.mxu1 %v9801_v6  ;;  %v9882_v5 = vld [vmem:[%s11997_s13 + $0x64] ss:$16 sps:$4 sm:$0xff]   ;;  %v9885_v6 = vld [vmem:[%s11997_s13 + $0x6c] ss:$16 sps:$4 sm:$0xff]  }
 0x837   : > { %5820 = vmatpush1.bf16.msra.mxu0 %v9796_v7  ;;  %5902 = vmatpush1.bf16.msra.mxu1 %v9799_v8  ;;  %v9880_v7 = vld [vmem:[%s11997_s13 + $0x60] ss:$16 sps:$4 sm:$0xff]   ;;  %v9883_v8 = vld [vmem:[%s11997_s13 + $0x68] ss:$16 sps:$4 sm:$0xff]  }
 0x838   : > { %5821 = vmatprep.subr.bf16.mxu0 %v9804_v9  ;;  %5903 = vmatprep.subr.bf16.mxu1 %v9807_v15  ;;  %v9888_v9 = vld [vmem:[%s11997_s13 + $0x84] ss:$16 sps:$4 sm:$0xff]   ;;  %v9891_v15 = vld [vmem:[%s11997_s13 + $0x8c] ss:$16 sps:$4 sm:$0xff]  }
 0x83b   : > { %5822 = vmatpush1.bf16.msra.mxu0 %v9802_v23  ;;  %5904 = vmatpush1.bf16.msra.mxu1 %v9805_v16  ;;  %v9886_v23 = vld [vmem:[%s11997_s13 + $0x80] ss:$16 sps:$4 sm:$0xff]   ;;  %v9889_v16 = vld [vmem:[%s11997_s13 + $0x88] ss:$16 sps:$4 sm:$0xff]  }
 0x83c   : > { %5823 = vmatprep.subr.bf16.mxu0 %v9810_v17  ;;  %5905 = vmatprep.subr.bf16.mxu1 %v9813_v18  ;;  %v9894_v17 = vld [vmem:[%s11997_s13 + $0xa4] ss:$16 sps:$4 sm:$0xff]   ;;  %v9897_v18 = vld [vmem:[%s11997_s13 + $0xac] ss:$16 sps:$4 sm:$0xff]  }
 0x83f   : > { %5824 = vmatpush1.bf16.msra.mxu0 %v9808_v55  ;;  %5906 = vmatpush1.bf16.msra.mxu1 %v9811_v19  ;;  %v9892_v55 = vld [vmem:[%s11997_s13 + $0xa0] ss:$16 sps:$4 sm:$0xff]   ;;  %v9895_v19 = vld [vmem:[%s11997_s13 + $0xa8] ss:$16 sps:$4 sm:$0xff]  }
 0x840   : > { %5825 = vmatprep.subr.bf16.mxu0 %v9816_v52  ;;  %5907 = vmatprep.subr.bf16.mxu1 %v9819_v20  ;;  %v9900_v52 = vld [vmem:[%s11997_s13 + $0xc4] ss:$16 sps:$4 sm:$0xff]   ;;  %v9903_v20 = vld [vmem:[%s11997_s13 + $0xcc] ss:$16 sps:$4 sm:$0xff]  }
 0x843   : > { %5826 = vmatpush1.bf16.msra.mxu0 %v9814_v22  ;;  %5908 = vmatpush1.bf16.msra.mxu1 %v9817_v24  ;;  %v9898_v22 = vld [vmem:[%s11997_s13 + $0xc0] ss:$16 sps:$4 sm:$0xff]   ;;  %v9901_v24 = vld [vmem:[%s11997_s13 + $0xc8] ss:$16 sps:$4 sm:$0xff]  }
 0x844   : > { %5827 = vmatprep.subr.bf16.mxu0 %v9822_v60  ;;  %5909 = vmatprep.subr.bf16.mxu1 %v9825_v25  ;;  %v9906_v60 = vld [vmem:[%s11997_s13 + $0xe4] ss:$16 sps:$4 sm:$0xff]   ;;  %v9909_v25 = vld [vmem:[%s11997_s13 + $0xec] ss:$16 sps:$4 sm:$0xff]  }
 0x847   : > { %5828 = vmatpush1.bf16.msra.mxu0 %v9820_v26  ;;  %5910 = vmatpush1.bf16.msra.mxu1 %v9823_v28  ;;  %v9904_v26 = vld [vmem:[%s11997_s13 + $0xe0] ss:$16 sps:$4 sm:$0xff]   ;;  %v9907_v28 = vld [vmem:[%s11997_s13 + $0xe8] ss:$16 sps:$4 sm:$0xff]  }
 0x848   : > { %5829 = vmatprep.subr.bf16.mxu0 %v9828_v30  ;;  %5911 = vmatprep.subr.bf16.mxu1 %v9831_v32  ;;  %v9912_v30 = vld [vmem:[%s11997_s13 + $0x104] ss:$16 sps:$4 sm:$0xff]   ;;  %v9915_v32 = vld [vmem:[%s11997_s13 + $0x10c] ss:$16 sps:$4 sm:$0xff]  }
 0x84b   : > { %5830 = vmatpush1.bf16.msra.mxu0 %v9826_v33  ;;  %5912 = vmatpush1.bf16.msra.mxu1 %v9829_v34  ;;  %v9910_v33 = vld [vmem:[%s11997_s13 + $0x100] ss:$16 sps:$4 sm:$0xff]   ;;  %v9913_v34 = vld [vmem:[%s11997_s13 + $0x108] ss:$16 sps:$4 sm:$0xff]  }
 0x84c   : > { %5831 = vmatprep.subr.bf16.mxu0 %v9834_v35  ;;  %5913 = vmatprep.subr.bf16.mxu1 %v9837_v37  ;;  %v9918_v35 = vld [vmem:[%s11997_s13 + $0x124] ss:$16 sps:$4 sm:$0xff]   ;;  %v9921_v37 = vld [vmem:[%s11997_s13 + $0x12c] ss:$16 sps:$4 sm:$0xff]  }
 0x84f   : > { %5832 = vmatpush1.bf16.msra.mxu0 %v9832_v38  ;;  %5914 = vmatpush1.bf16.msra.mxu1 %v9835_v10  ;;  %v9916_v38 = vld [vmem:[%s11997_s13 + $0x120] ss:$16 sps:$4 sm:$0xff]   ;;  %v9919_v10 = vld [vmem:[%s11997_s13 + $0x128] ss:$16 sps:$4 sm:$0xff]  }
 0x850   : > { %5833 = vmatprep.subr.bf16.mxu0 %v9840_v39  ;;  %5915 = vmatprep.subr.bf16.mxu1 %v9843_v40  ;;  %v9924_v39 = vld [vmem:[%s11997_s13 + $0x144] ss:$16 sps:$4 sm:$0xff]   ;;  %v9927_v40 = vld [vmem:[%s11997_s13 + $0x14c] ss:$16 sps:$4 sm:$0xff]  }
 0x853   : > { %5834 = vmatpush1.bf16.msra.mxu0 %v9838_v41  ;;  %5916 = vmatpush1.bf16.msra.mxu1 %v9841_v42  ;;  %v9922_v41 = vld [vmem:[%s11997_s13 + $0x140] ss:$16 sps:$4 sm:$0xff]   ;;  %v9925_v42 = vld [vmem:[%s11997_s13 + $0x148] ss:$16 sps:$4 sm:$0xff]  }
 0x854   : > { %5835 = vmatprep.subr.bf16.mxu0 %v9846_v43  ;;  %5917 = vmatprep.subr.bf16.mxu1 %v9849_v12  ;;  %v9930_v43 = vld [vmem:[%s11997_s13 + $0x164] ss:$16 sps:$4 sm:$0xff]   ;;  %v9933_v12 = vld [vmem:[%s11997_s13 + $0x16c] ss:$16 sps:$4 sm:$0xff]  }
 0x857   : > { %5836 = vmatpush1.bf16.msra.mxu0 %v9844_v44  ;;  %5918 = vmatpush1.bf16.msra.mxu1 %v9847_v45  ;;  %v9928_v44 = vld [vmem:[%s11997_s13 + $0x160] ss:$16 sps:$4 sm:$0xff]   ;;  %v9931_v45 = vld [vmem:[%s11997_s13 + $0x168] ss:$16 sps:$4 sm:$0xff]  }
 0x858   : > { %5837 = vmatprep.subr.bf16.mxu0 %v9852_v46  ;;  %5919 = vmatprep.subr.bf16.mxu1 %v9855_v47  ;;  %v9939_v46 = vld [vmem:[%s11997_s13 + $0x18c] ss:$16 sps:$4 sm:$0xff]   ;;  %v9934_v47 = vld [vmem:[%s11997_s13 + $0x180] ss:$16 sps:$4 sm:$0xff]  }
 0x85b   : > { %5838 = vmatpush1.bf16.msra.mxu0 %v9850_v48  ;;  %5920 = vmatpush1.bf16.msra.mxu1 %v9853_v49  ;;  %v9937_v48 = vld [vmem:[%s11997_s13 + $0x188] ss:$16 sps:$4 sm:$0xff]   ;;  %v9942_v49 = vld [vmem:[%s11997_s13 + $0x1a4] ss:$16 sps:$4 sm:$0xff]  }
 0x85c   : > { %5839 = vmatprep.subr.bf16.mxu0 %v9858_v50  ;;  %5921 = vmatprep.subr.bf16.mxu1 %v9861_v31  ;;  %v9940_v50 = vld [vmem:[%s11997_s13 + $0x1a0] ss:$16 sps:$4 sm:$0xff]   ;;  %v9943_v31 = vld [vmem:[%s11997_s13 + $0x1a8] ss:$16 sps:$4 sm:$0xff]  }
 0x85f   : > { %5840 = vmatpush1.bf16.msra.mxu0 %v9856_v51  ;;  %5922 = vmatpush1.bf16.msra.mxu1 %v9859_v53  ;;  %v9948_v51 = vld [vmem:[%s11997_s13 + $0x1c4] ss:$16 sps:$4 sm:$0xff]   ;;  %v9951_v53 = vld [vmem:[%s11997_s13 + $0x1cc] ss:$16 sps:$4 sm:$0xff]  }
 0x860   : > { %6730 = vmatprep.subr.bf16.mxu0 %v9864_v56  ;;  %6812 = vmatprep.subr.bf16.mxu1 %v9867_v57  ;;  %v9949_v56 = vld [vmem:[%s11997_s13 + $0x1c8] ss:$16 sps:$4 sm:$0xff]   ;;  %v9954_v57 = vld [vmem:[%s11997_s13 + $0x1e4] ss:$16 sps:$4 sm:$0xff]  }
 0x862   : > { %5842 = vmatmul.mubr.bf16.vlgmr.msra.gmra.mrb[20].mxu0 %v5105_v59  ;;  %5924 = vmatmul.mubr.bf16.vlgmr.msra.gmra.mrb[20].mxu1 %v5105_v59  ;;  %v9955_v59 = vld [vmem:[%s11997_s13 + $0x1e8] ss:$16 sps:$4 sm:$0xff]  }
 0x863   : > { %6731 = vmatpush1.bf16.msra.mxu0 %v9862_v36  ;;  %6813 = vmatpush1.bf16.msra.mxu1 %v9865_v58  ;;  %v9957_v36 = vld [vmem:[%s11997_s13 + $0x1ec] ss:$16 sps:$4 sm:$0xff]   ;;  %v9952_v58 = vld [vmem:[%s11997_s13 + $0x1e0] ss:$16 sps:$4 sm:$0xff]  }
 0x864   : > { %6732 = vmatprep.subr.bf16.mxu0 %v9870_v61  ;;  %6814 = vmatprep.subr.bf16.mxu1 %v9873_v62  ;;  %v9960_v61 = vld [vmem:[%s11997_s13 + $0x204] ss:$16 sps:$4 sm:$0xff]   ;;  %v9963_v62 = vld [vmem:[%s11997_s13 + $0x20c] ss:$16 sps:$4 sm:$0xff]  }
 0x867   : > { %6733 = vmatpush1.bf16.msra.mxu0 %v9868_v63  ;;  %6815 = vmatpush1.bf16.msra.mxu1 %v9871_v0  ;;  %v12431_v63 = vld [vmem:[%s858_s23] sm:$0xf] }
 0x868   : > { %6734 = vmatprep.subr.bf16.mxu0 %v9876_v1  ;;  %6816 = vmatprep.subr.bf16.mxu1 %v9879_v2  ;;  %v5751_v0 = vrot.slane %v12431_v63, %v12023_v11  ;;  %v5755_v1 = vrot.slane %v12431_v63, %v12028_v13  ;;  %v5763_v2 = vrot.slane %v12431_v63, %v12031_v14 }
 0x86b   : > { %6735 = vmatpush1.bf16.msra.mxu0 %v9874_v3  ;;  %6817 = vmatpush1.bf16.msra.mxu1 %v9877_v4 }
 0x86c   : > { %6736 = vmatprep.subr.bf16.mxu0 %v9882_v5  ;;  %6818 = vmatprep.subr.bf16.mxu1 %v9885_v6 }
 0x86f   : > { %6737 = vmatpush1.bf16.msra.mxu0 %v9880_v7  ;;  %6819 = vmatpush1.bf16.msra.mxu1 %v9883_v8 }
 0x870   : > { %6738 = vmatprep.subr.bf16.mxu0 %v9888_v9  ;;  %6820 = vmatprep.subr.bf16.mxu1 %v9891_v15 }
 0x873   : > { %6739 = vmatpush1.bf16.msra.mxu0 %v9886_v23  ;;  %6821 = vmatpush1.bf16.msra.mxu1 %v9889_v16 }
 0x874   : > { %6740 = vmatprep.subr.bf16.mxu0 %v9894_v17  ;;  %6822 = vmatprep.subr.bf16.mxu1 %v9897_v18 }
 0x877   : > { %6741 = vmatpush1.bf16.msra.mxu0 %v9892_v55  ;;  %6823 = vmatpush1.bf16.msra.mxu1 %v9895_v19 }
 0x878   : > { %6742 = vmatprep.subr.bf16.mxu0 %v9900_v52  ;;  %6824 = vmatprep.subr.bf16.mxu1 %v9903_v20  ;;  %v9958_v20 = vld [vmem:[%s11997_s13 + $0x200] ss:$16 sps:$4 sm:$0xff]  }
 0x87b   : > { %6743 = vmatpush1.bf16.msra.mxu0 %v9898_v22  ;;  %6825 = vmatpush1.bf16.msra.mxu1 %v9901_v24  ;;  %v9961_v22 = vld [vmem:[%s11997_s13 + $0x208] ss:$16 sps:$4 sm:$0xff]  }
 0x87c   : > { %6744 = vmatprep.subr.bf16.mxu0 %v9906_v60  ;;  %6826 = vmatprep.subr.bf16.mxu1 %v9909_v25  ;;  %v9966_v60 = vld [vmem:[%s11997_s13 + $0x224] ss:$16 sps:$4 sm:$0xff]   ;;  %v9969_v25 = vld [vmem:[%s11997_s13 + $0x22c] ss:$16 sps:$4 sm:$0xff]  }
 0x87f   : > { %6745 = vmatpush1.bf16.msra.mxu0 %v9904_v26  ;;  %6827 = vmatpush1.bf16.msra.mxu1 %v9907_v28  ;;  %v9964_v28 = vld [vmem:[%s11997_s13 + $0x220] ss:$16 sps:$4 sm:$0xff]  }
 0x880   : > { %6746 = vmatprep.subr.bf16.mxu0 %v9912_v30  ;;  %6828 = vmatprep.subr.bf16.mxu1 %v9915_v32  ;;  %v9967_v30 = vld [vmem:[%s11997_s13 + $0x228] ss:$16 sps:$4 sm:$0xff]   ;;  %v9972_v32 = vld [vmem:[%s11997_s13 + $0x244] ss:$16 sps:$4 sm:$0xff]  }
 0x883   : > { %6747 = vmatpush1.bf16.msra.mxu0 %v9910_v33  ;;  %6829 = vmatpush1.bf16.msra.mxu1 %v9913_v34  ;;  %v9975_v33 = vld [vmem:[%s11997_s13 + $0x24c] ss:$16 sps:$4 sm:$0xff]   ;;  %v9970_v34 = vld [vmem:[%s11997_s13 + $0x240] ss:$16 sps:$4 sm:$0xff]  }
 0x884   : > { %6748 = vmatprep.subr.bf16.mxu0 %v9918_v35  ;;  %6830 = vmatprep.subr.bf16.mxu1 %v9921_v37  ;;  %v9973_v35 = vld [vmem:[%s11997_s13 + $0x248] ss:$16 sps:$4 sm:$0xff]   ;;  %v9978_v37 = vld [vmem:[%s11997_s13 + $0x264] ss:$16 sps:$4 sm:$0xff]  }
 0x887   : > { %6749 = vmatpush1.bf16.msra.mxu0 %v9916_v38  ;;  %6831 = vmatpush1.bf16.msra.mxu1 %v9919_v10  ;;  %v9981_v38 = vld [vmem:[%s11997_s13 + $0x26c] ss:$16 sps:$4 sm:$0xff]   ;;  %v9976_v10 = vld [vmem:[%s11997_s13 + $0x260] ss:$16 sps:$4 sm:$0xff]  }
 0x888   : > { %6750 = vmatprep.subr.bf16.mxu0 %v9924_v39  ;;  %6832 = vmatprep.subr.bf16.mxu1 %v9927_v40  ;;  %v9979_v39 = vld [vmem:[%s11997_s13 + $0x268] ss:$16 sps:$4 sm:$0xff]   ;;  %v9984_v40 = vld [vmem:[%s11997_s13 + $0x284] ss:$16 sps:$4 sm:$0xff]  }
 0x88b   : > { %6751 = vmatpush1.bf16.msra.mxu0 %v9922_v41  ;;  %6833 = vmatpush1.bf16.msra.mxu1 %v9925_v42  ;;  %v9987_v41 = vld [vmem:[%s11997_s13 + $0x28c] ss:$16 sps:$4 sm:$0xff]   ;;  %v9982_v42 = vld [vmem:[%s11997_s13 + $0x280] ss:$16 sps:$4 sm:$0xff]  }
 0x88c   : > { %6752 = vmatprep.subr.bf16.mxu0 %v9930_v43  ;;  %6834 = vmatprep.subr.bf16.mxu1 %v9933_v12  ;;  %v9985_v43 = vld [vmem:[%s11997_s13 + $0x288] ss:$16 sps:$4 sm:$0xff]   ;;  %v9990_v12 = vld [vmem:[%s11997_s13 + $0x2a4] ss:$16 sps:$4 sm:$0xff]  }
 0x88f   : > { %6753 = vmatpush1.bf16.msra.mxu0 %v9928_v44  ;;  %6835 = vmatpush1.bf16.msra.mxu1 %v9931_v45  ;;  %v9993_v44 = vld [vmem:[%s11997_s13 + $0x2ac] ss:$16 sps:$4 sm:$0xff]   ;;  %v9988_v45 = vld [vmem:[%s11997_s13 + $0x2a0] ss:$16 sps:$4 sm:$0xff]  }
 0x890   : > { %6754 = vmatprep.subr.bf16.mxu0 %v9936_v21  ;;  %6836 = vmatprep.subr.bf16.mxu1 %v9939_v46  ;;  %v9991_v21 = vld [vmem:[%s11997_s13 + $0x2a8] ss:$16 sps:$4 sm:$0xff]   ;;  %v9996_v46 = vld [vmem:[%s11997_s13 + $0x2c4] ss:$16 sps:$4 sm:$0xff]  }
 0x893   : > { %6755 = vmatpush1.bf16.msra.mxu0 %v9934_v47  ;;  %6837 = vmatpush1.bf16.msra.mxu1 %v9937_v48  ;;  %v9999_v47 = vld [vmem:[%s11997_s13 + $0x2cc] ss:$16 sps:$4 sm:$0xff]   ;;  %v9994_v48 = vld [vmem:[%s11997_s13 + $0x2c0] ss:$16 sps:$4 sm:$0xff]  }
 0x894   : > { %6756 = vmatprep.subr.bf16.mxu0 %v9942_v49  ;;  %6838 = vmatprep.subr.bf16.mxu1 %v9945_v27  ;;  %v9997_v49 = vld [vmem:[%s11997_s13 + $0x2c8] ss:$16 sps:$4 sm:$0xff]   ;;  %v10002_v27 = vld [vmem:[%s11997_s13 + $0x2e4] ss:$16 sps:$4 sm:$0xff]  }
 0x897   : > { %6757 = vmatpush1.bf16.msra.mxu0 %v9940_v50  ;;  %6839 = vmatpush1.bf16.msra.mxu1 %v9943_v31  ;;  %v10005_v50 = vld [vmem:[%s11997_s13 + $0x2ec] ss:$16 sps:$4 sm:$0xff]   ;;  %v10000_v31 = vld [vmem:[%s11997_s13 + $0x2e0] ss:$16 sps:$4 sm:$0xff]  }
 0x898   : > { %6758 = vmatprep.subr.bf16.mxu0 %v9948_v51  ;;  %6840 = vmatprep.subr.bf16.mxu1 %v9951_v53  ;;  %v10003_v51 = vld [vmem:[%s11997_s13 + $0x2e8] ss:$16 sps:$4 sm:$0xff]   ;;  %v10008_v53 = vld [vmem:[%s11997_s13 + $0x304] ss:$16 sps:$4 sm:$0xff]  }
 0x89b   : > { %6759 = vmatpush1.bf16.msra.mxu0 %v9946_v54  ;;  %6841 = vmatpush1.bf16.msra.mxu1 %v9949_v56  ;;  %v10011_v54 = vld [vmem:[%s11997_s13 + $0x30c] ss:$16 sps:$4 sm:$0xff]   ;;  %v10006_v56 = vld [vmem:[%s11997_s13 + $0x300] ss:$16 sps:$4 sm:$0xff]  }
 0x89c   : > { %6760 = vmatprep.subr.bf16.mxu0 %v9954_v57  ;;  %6842 = vmatprep.subr.bf16.mxu1 %v9957_v36  ;;  %v10009_v57 = vld [vmem:[%s11997_s13 + $0x308] ss:$16 sps:$4 sm:$0xff]   ;;  %v10014_v36 = vld [vmem:[%s11997_s13 + $0x324] ss:$16 sps:$4 sm:$0xff]  }
 0x89f   : > { %6761 = vmatpush1.bf16.msra.mxu0 %v9952_v58  ;;  %6843 = vmatpush1.bf16.msra.mxu1 %v9955_v59  ;;  %v10017_v58 = vld [vmem:[%s11997_s13 + $0x32c] ss:$16 sps:$4 sm:$0xff]   ;;  %v10012_v59 = vld [vmem:[%s11997_s13 + $0x320] ss:$16 sps:$4 sm:$0xff]  }
 0x8a0   : > { %6771 = vmatprep.subr.bf16.mxu0 %v9960_v61  ;;  %6853 = vmatprep.subr.bf16.mxu1 %v9963_v62  ;;  %v10015_v61 = vld [vmem:[%s11997_s13 + $0x328] ss:$16 sps:$4 sm:$0xff]   ;;  %v10020_v62 = vld [vmem:[%s11997_s13 + $0x344] ss:$16 sps:$4 sm:$0xff]  }
 0x935   : > { %v5843_v3 = vpop.f32.mrb[20].mxu0  ;;  %v12439_v4 = vpop.f32.mrb[20].mxu1 }
 0x936   : > { %v8478_v5 = vadd.f32 %v5843_v3, %v5751_v0  ;;  %v5845_v6 = vpop.f32.mrb[21].mxu0  ;;  %v5927_v7 = vpop.f32.mrb[21].mxu1  ;;  %v10023_v0 = vld [vmem:[%s11997_s13 + $0x34c] ss:$16 sps:$4 sm:$0xff]   ;;  %v10026_v3 = vld [vmem:[%s11997_s13 + $0x364] ss:$16 sps:$4 sm:$0xff]  }
 0x937   : > { %v8479_v8 = vadd.f32 %v5845_v6, %v5755_v1  ;;  %v8481_v9 = vadd.f32 %v5927_v7, %v5763_v2  ;;  %v5847_v15 = vpop.f32.mrb[22].mxu0  ;;  %v5929_v23 = vpop.f32.mrb[22].mxu1  ;;  %v10018_v1 = vld [vmem:[%s11997_s13 + $0x340] ss:$16 sps:$4 sm:$0xff]   ;;  %v10021_v2 = vld [vmem:[%s11997_s13 + $0x348] ss:$16 sps:$4 sm:$0xff]  }
 0x938   : > { %v5932_v16 = vmax.f32 %v8478_v5, 0.0  ;;  %v5848_v17 = vpop.f32.mrb[23].mxu0  ;;  %v5930_v18 = vpop.f32.mrb[23].mxu1  ;;  %v10029_v5 = vld [vmem:[%s11997_s13 + $0x36c] ss:$16 sps:$4 sm:$0xff]  }
 0x939   : > { %v5933_v55 = vmax.f32 %v8479_v8, 0.0  ;;  %v5935_v19 = vmax.f32 %v8481_v9, 0.0  ;;  %v10024_v6 = vld [vmem:[%s11997_s13 + $0x360] ss:$16 sps:$4 sm:$0xff]   ;;  %v10027_v7 = vld [vmem:[%s11997_s13 + $0x368] ss:$16 sps:$4 sm:$0xff]  }
 0x93a   : > { %v6065_v24 = vpack.c.bf16 %v5932_v16, %v5932_v16  ;;  %v10032_v8 = vld [vmem:[%s11997_s13 + $0x384] ss:$16 sps:$4 sm:$0xff]   ;;  %v10035_v9 = vld [vmem:[%s11997_s13 + $0x38c] ss:$16 sps:$4 sm:$0xff]   ;;  %v10030_v15 = vld [vmem:[%s11997_s13 + $0x380] ss:$16 sps:$4 sm:$0xff]  }
 0x93b   : > { %v6066_v52 = vpack.c.bf16 %v5933_v55, %v5933_v55  ;;  %v6068_v26 = vpack.c.bf16 %v5935_v19, %v5935_v19  ;;  %v10033_v23 = vld [vmem:[%s11997_s13 + $0x388] ss:$16 sps:$4 sm:$0xff]   ;;  %v10038_v16 = vld [vmem:[%s11997_s13 + $0x3a4] ss:$16 sps:$4 sm:$0xff]   ;;  %v10041_v17 = vld [vmem:[%s11997_s13 + $0x3ac] ss:$16 sps:$4 sm:$0xff]   ;;  %v5759_v19 = vrot.slane %v12431_v63, %v12042_v29 }
 0x93c   : > { %v10036_v18 = vld [vmem:[%s11997_s13 + $0x3a0] ss:$16 sps:$4 sm:$0xff]   ;;  %v10039_v55 = vld [vmem:[%s11997_s13 + $0x3a8] ss:$16 sps:$4 sm:$0xff]   ;;  %v10053_v63 = vld [vmem:[%s11997_s13 + $0x3ec] ss:$16 sps:$4 sm:$0xff]  }
 0x93d   : > { %6762 = vmatprep.mubr.bf16.mxu0 %v6066_v52  ;;  %6844 = vmatprep.mubr.bf16.mxu1 %v6066_v52  ;;  %v10044_v52 = vld [vmem:[%s11997_s13 + $0x3c4] ss:$16 sps:$4 sm:$0xff]  }
 0x93e   : > { %6763 = vmatmul.mubr.bf16.vlgmr.msra.gmra.mrb[24].mxu0 %v6065_v24  ;;  %6845 = vmatmul.mubr.bf16.vlgmr.msra.gmra.mrb[24].mxu1 %v6065_v24  ;;  %v10045_v24 = vld [vmem:[%s11997_s13 + $0x3c8] ss:$16 sps:$4 sm:$0xff]  }
 0x93f   : > { %6772 = vmatpush1.bf16.msra.mxu0 %v9958_v20  ;;  %6854 = vmatpush1.bf16.msra.mxu1 %v9961_v22  ;;  %v10047_v20 = vld [vmem:[%s11997_s13 + $0x3cc] ss:$16 sps:$4 sm:$0xff]   ;;  %v10042_v22 = vld [vmem:[%s11997_s13 + $0x3c0] ss:$16 sps:$4 sm:$0xff]  }
 0x940   : > { %6803 = vmatprep.mubr.bf16.mxu0 %v6068_v26  ;;  %6885 = vmatprep.mubr.bf16.mxu1 %v6068_v26  ;;  %v10048_v26 = vld [vmem:[%s11997_s13 + $0x3e0] ss:$16 sps:$4 sm:$0xff]  }
 0x941   : > { %6773 = vmatprep.subr.bf16.mxu0 %v9966_v60  ;;  %6855 = vmatprep.subr.bf16.mxu1 %v9969_v25  ;;  %v8480_v60 = vadd.f32 %v12439_v4, %v5759_v19  ;;  %v10050_v25 = vld [vmem:[%s11997_s13 + $0x3e4] ss:$16 sps:$4 sm:$0xff]  }
 0x942   : > { %v10056_v4 = vld [vmem:[%s12427_s6] sm:$0xff]  }
 0x943   : > { %6774 = vmatpush1.bf16.msra.mxu0 %v9964_v28  ;;  %6856 = vmatpush1.bf16.msra.mxu1 %v9967_v30  ;;  %v10051_v28 = vld [vmem:[%s11997_s13 + $0x3e8] ss:$16 sps:$4 sm:$0xff]   ;;  %v5934_v30 = vmax.f32 %v8480_v60, 0.0  ;;  %s12550_s13 = scalar_lea.hbm %s12935_s30, %s8408_s16 }
 0x944   : > { %6775 = vmatprep.subr.bf16.mxu0 %v9972_v32  ;;  %6857 = vmatprep.subr.bf16.mxu1 %v9975_v33  ;;  %v10054_v32 = vld [vmem:[%s12427_s6 + $0x40] sm:$0xff]  }
 0x945   : > { %v10055_v33 = vld [vmem:[%s12427_s6 + $0xc0] sm:$0xff]  }
 0x947   : > { %6776 = vmatpush1.bf16.msra.mxu0 %v9970_v34  ;;  %6858 = vmatpush1.bf16.msra.mxu1 %v9973_v35  ;;  %v10057_v34 = vld [vmem:[%s12427_s6 + $0x80] sm:$0xff]   ;;  %v6067_v35 = vpack.c.bf16 %v5934_v30, %v5934_v30 }
 0x948   : > { %6777 = vmatprep.subr.bf16.mxu0 %v9978_v37  ;;  %6859 = vmatprep.subr.bf16.mxu1 %v9981_v38  ;;  %v10058_v37 = vld [vmem:[%s12427_s6 + $0x48] sm:$0xff]  }
 0x949   : > { %v10059_v38 = vld [vmem:[%s12427_s6 + $0xc8] sm:$0xff]  }
 0x94b   : > { %6778 = vmatpush1.bf16.msra.mxu0 %v9976_v10  ;;  %6860 = vmatpush1.bf16.msra.mxu1 %v9979_v39  ;;  %v10060_v10 = vld [vmem:[%s12427_s6 + $0x8] sm:$0xff]  }
 0x94c   : > { %6779 = vmatprep.subr.bf16.mxu0 %v9984_v40  ;;  %6861 = vmatprep.subr.bf16.mxu1 %v9987_v41  ;;  %v10061_v39 = vld [vmem:[%s12427_s6 + $0x88] sm:$0xff]   ;;  %v10062_v40 = vld [vmem:[%s12427_s6 + $0x50] sm:$0xff]  }
 0x94d   : > { %v10063_v41 = vld [vmem:[%s12427_s6 + $0xd0] sm:$0xff]  }
 0x94f   : > { %6780 = vmatpush1.bf16.msra.mxu0 %v9982_v42  ;;  %6862 = vmatpush1.bf16.msra.mxu1 %v9985_v43  ;;  %v10064_v42 = vld [vmem:[%s12427_s6 + $0x10] sm:$0xff]  }
 0x950   : > { %6781 = vmatprep.subr.bf16.mxu0 %v9990_v12  ;;  %6863 = vmatprep.subr.bf16.mxu1 %v9993_v44  ;;  %v10065_v43 = vld [vmem:[%s12427_s6 + $0x90] sm:$0xff]   ;;  %v10066_v12 = vld [vmem:[%s12427_s6 + $0x58] sm:$0xff]  }
 0x951   : > { %v10067_v44 = vld [vmem:[%s12427_s6 + $0xd8] sm:$0xff]  }
 0x953   : > { %6782 = vmatpush1.bf16.msra.mxu0 %v9988_v45  ;;  %6864 = vmatpush1.bf16.msra.mxu1 %v9991_v21  ;;  %v10068_v45 = vld [vmem:[%s12427_s6 + $0x18] sm:$0xff]  }
 0x954   : > { %6783 = vmatprep.subr.bf16.mxu0 %v9996_v46  ;;  %6865 = vmatprep.subr.bf16.mxu1 %v9999_v47  ;;  %v10069_v21 = vld [vmem:[%s12427_s6 + $0x98] sm:$0xff]   ;;  %v10070_v46 = vld [vmem:[%s12427_s6 + $0x60] sm:$0xff]  }
 0x955   : > { %v10071_v47 = vld [vmem:[%s12427_s6 + $0xe0] sm:$0xff]  }
 0x957   : > { %6784 = vmatpush1.bf16.msra.mxu0 %v9994_v48  ;;  %6866 = vmatpush1.bf16.msra.mxu1 %v9997_v49  ;;  %v10072_v48 = vld [vmem:[%s12427_s6 + $0x20] sm:$0xff]  }
 0x958   : > { %6785 = vmatprep.subr.bf16.mxu0 %v10002_v27  ;;  %6867 = vmatprep.subr.bf16.mxu1 %v10005_v50  ;;  %v10073_v49 = vld [vmem:[%s12427_s6 + $0xa0] sm:$0xff]   ;;  %v10074_v27 = vld [vmem:[%s12427_s6 + $0x68] sm:$0xff]  }
 0x959   : > { %v10075_v50 = vld [vmem:[%s12427_s6 + $0xe8] sm:$0xff]  }
 0x95b   : > { %6786 = vmatpush1.bf16.msra.mxu0 %v10000_v31  ;;  %6868 = vmatpush1.bf16.msra.mxu1 %v10003_v51  ;;  %v10076_v31 = vld [vmem:[%s12427_s6 + $0x28] sm:$0xff]  }
 0x95c   : > { %6787 = vmatprep.subr.bf16.mxu0 %v10008_v53  ;;  %6869 = vmatprep.subr.bf16.mxu1 %v10011_v54  ;;  %v10077_v51 = vld [vmem:[%s12427_s6 + $0xa8] sm:$0xff]   ;;  %v10078_v53 = vld [vmem:[%s12427_s6 + $0x70] sm:$0xff]  }
 0x95d   : > { %v10079_v54 = vld [vmem:[%s12427_s6 + $0xf0] sm:$0xff]  }
 0x95f   : > { %6788 = vmatpush1.bf16.msra.mxu0 %v10006_v56  ;;  %6870 = vmatpush1.bf16.msra.mxu1 %v10009_v57  ;;  %v10080_v56 = vld [vmem:[%s12427_s6 + $0x30] sm:$0xff]  }
 0x960   : > { %6789 = vmatprep.subr.bf16.mxu0 %v10014_v36  ;;  %6871 = vmatprep.subr.bf16.mxu1 %v10017_v58  ;;  %v10081_v57 = vld [vmem:[%s12427_s6 + $0xb0] sm:$0xff]   ;;  %v10082_v36 = vld [vmem:[%s12427_s6 + $0x78] sm:$0xff]  }
 0x961   : > { %v10083_v58 = vld [vmem:[%s12427_s6 + $0xf8] sm:$0xff]  }
 0x963   : > { %6790 = vmatpush1.bf16.msra.mxu0 %v10012_v59  ;;  %6872 = vmatpush1.bf16.msra.mxu1 %v10015_v61  ;;  %v10084_v59 = vld [vmem:[%s12427_s6 + $0x38] sm:$0xff]  }
 0x964   : > { %6791 = vmatprep.subr.bf16.mxu0 %v10020_v62  ;;  %6873 = vmatprep.subr.bf16.mxu1 %v10023_v0  ;;  %v10085_v61 = vld [vmem:[%s12427_s6 + $0xb8] sm:$0xff]   ;;  %v6064_v62 = vld [vmem:[%s876_s9] sm:$0xf]  ;;  %s12936_s9 = smov %s12935_s30 }
 0x965   : > { %v6713_v0 = vrot.slane %v6064_v62, %v12023_v11 }
 0x967   : > { %6792 = vmatpush1.bf16.msra.mxu0 %v10018_v1  ;;  %6874 = vmatpush1.bf16.msra.mxu1 %v10021_v2  ;;  %v6721_v1 = vrot.slane %v6064_v62, %v12042_v29  ;;  %v6717_v2 = vrot.slane %v6064_v62, %v12028_v13 }
 0x968   : > { %6793 = vmatprep.subr.bf16.mxu0 %v10026_v3  ;;  %6875 = vmatprep.subr.bf16.mxu1 %v10029_v5  ;;  %v6725_v3 = vrot.slane %v6064_v62, %v12031_v14 }
 0x96b   : > { %6794 = vmatpush1.bf16.msra.mxu0 %v10024_v6  ;;  %6876 = vmatpush1.bf16.msra.mxu1 %v10027_v7 }
 0x96c   : > { %6795 = vmatprep.subr.bf16.mxu0 %v10032_v8  ;;  %6877 = vmatprep.subr.bf16.mxu1 %v10035_v9 }
 0x96f   : > { %6796 = vmatpush1.bf16.msra.mxu0 %v10030_v15  ;;  %6878 = vmatpush1.bf16.msra.mxu1 %v10033_v23 }
 0x970   : > { %6797 = vmatprep.subr.bf16.mxu0 %v10038_v16  ;;  %6879 = vmatprep.subr.bf16.mxu1 %v10041_v17 }
 0x973   : > { %6798 = vmatpush1.bf16.msra.mxu0 %v10036_v18  ;;  %6880 = vmatpush1.bf16.msra.mxu1 %v10039_v55 }
 0x974   : > { %6799 = vmatprep.subr.bf16.mxu0 %v10044_v52  ;;  %6881 = vmatprep.subr.bf16.mxu1 %v10047_v20 }
 0x977   : > { %6800 = vmatpush1.bf16.msra.mxu0 %v10042_v22  ;;  %6882 = vmatpush1.bf16.msra.mxu1 %v10045_v24 }
 0x978   : > { %6801 = vmatprep.subr.bf16.mxu0 %v10050_v25  ;;  %6883 = vmatprep.subr.bf16.mxu1 %v10053_v63  ;;  %v6962_v63 = vld [vmem:[%s12012_s1] sm:$0x1] }
 0x97b   : > { %6802 = vmatpush1.bf16.msra.mxu0 %v10048_v26  ;;  %6884 = vmatpush1.bf16.msra.mxu1 %v10051_v28 }
 0x97c   : > { %8418 = vmatprep.subr.bf16.mxu0 %v10054_v32  ;;  %8440 = vmatprep.subr.bf16.mxu1 %v10055_v33 }
 0x97e   : > { %6804 = vmatmul.mubr.bf16.vlgmr.msra.gmra.mrb[24].mxu0 %v6067_v35  ;;  %6886 = vmatmul.mubr.bf16.vlgmr.msra.gmra.mrb[24].mxu1 %v6067_v35 }
 0x97f   : > { %8419 = vmatpush3.bf16.msra.mxu0 %v10056_v4  ;;  %8441 = vmatpush3.bf16.msra.mxu1 %v10057_v34 }
 0x980   : > { %8420 = vmatprep.subr.bf16.mxu0 %v10058_v37  ;;  %8442 = vmatprep.subr.bf16.mxu1 %v10059_v38 }
 0x983   : > { %8421 = vmatpush3.bf16.msra.mxu0 %v10060_v10  ;;  %8443 = vmatpush3.bf16.msra.mxu1 %v10061_v39 }
 0x984   : > { %8422 = vmatprep.subr.bf16.mxu0 %v10062_v40  ;;  %8444 = vmatprep.subr.bf16.mxu1 %v10063_v41 }
 0x987   : > { %8423 = vmatpush3.bf16.msra.mxu0 %v10064_v42  ;;  %8445 = vmatpush3.bf16.msra.mxu1 %v10065_v43 }
 0x988   : > { %8424 = vmatprep.subr.bf16.mxu0 %v10066_v12  ;;  %8446 = vmatprep.subr.bf16.mxu1 %v10067_v44 }
 0x98b   : > { %8425 = vmatpush3.bf16.msra.mxu0 %v10068_v45  ;;  %8447 = vmatpush3.bf16.msra.mxu1 %v10069_v21 }
 0x98c   : > { %8426 = vmatprep.subr.bf16.mxu0 %v10070_v46  ;;  %8448 = vmatprep.subr.bf16.mxu1 %v10071_v47 }
 0x98f   : > { %8427 = vmatpush3.bf16.msra.mxu0 %v10072_v48  ;;  %8449 = vmatpush3.bf16.msra.mxu1 %v10073_v49 }
 0x990   : > { %8428 = vmatprep.subr.bf16.mxu0 %v10074_v27  ;;  %8450 = vmatprep.subr.bf16.mxu1 %v10075_v50 }
 0x993   : > { %8429 = vmatpush3.bf16.msra.mxu0 %v10076_v31  ;;  %8451 = vmatpush3.bf16.msra.mxu1 %v10077_v51 }
 0x994   : > { %8430 = vmatprep.subr.bf16.mxu0 %v10078_v53  ;;  %8452 = vmatprep.subr.bf16.mxu1 %v10079_v54 }
 0x997   : > { %8431 = vmatpush3.bf16.msra.mxu0 %v10080_v56  ;;  %8453 = vmatpush3.bf16.msra.mxu1 %v10081_v57 }
 0x998   : > { %8432 = vmatprep.subr.bf16.mxu0 %v10082_v36  ;;  %8454 = vmatprep.subr.bf16.mxu1 %v10083_v58 }
 0x99b   : > { %8433 = vmatpush3.bf16.msra.mxu0 %v10084_v59  ;;  %8455 = vmatpush3.bf16.msra.mxu1 %v10085_v61 }
 0xa51   : > { %v6805_v5 = vpop.f32.mrb[24].mxu0  ;;  %v6887_v6 = vpop.f32.mrb[24].mxu1 }
 0xa52   : > { %v8482_v7 = vadd.f32 %v6805_v5, %v6713_v0  ;;  %v8484_v8 = vadd.f32 %v6887_v6, %v6721_v1  ;;  %v6807_v9 = vpop.f32.mrb[25].mxu0  ;;  %v6889_v15 = vpop.f32.mrb[25].mxu1 }
 0xa53   : > { %v8483_v23 = vadd.f32 %v6807_v9, %v6717_v2  ;;  %v8485_v16 = vadd.f32 %v6889_v15, %v6725_v3  ;;  %v6809_v17 = vpop.f32.mrb[26].mxu0  ;;  %v6891_v18 = vpop.f32.mrb[26].mxu1 }
 0xa54   : > { %v6894_v55 = vmax.f32 %v8482_v7, 0.0  ;;  %v6896_v19 = vmax.f32 %v8484_v8, 0.0  ;;  %v6810_v11 = vpop.f32.mrb[27].mxu0  ;;  %v6892_v52 = vpop.f32.mrb[27].mxu1 }
 0xa55   : > { %v6895_v29 = vmax.f32 %v8483_v23, 0.0  ;;  %v6897_v20 = vmax.f32 %v8485_v16, 0.0 }
 0xa56   : > { %v6963_v14 = vpack.c.bf16 %v6894_v55, %v6894_v55  ;;  %v6965_v24 = vpack.c.bf16 %v6896_v19, %v6896_v19 }
 0xa57   : > { %v6964_v13 = vpack.c.bf16 %v6895_v29, %v6895_v29  ;;  %v6966_v22 = vpack.c.bf16 %v6897_v20, %v6897_v20 }
 0xa59   : > { %7191 = vmatprep.mubr.bf16.mxu0 %v6964_v13  ;;  %7231 = vmatprep.mubr.bf16.mxu1 %v6966_v22 }
 0xa5a   : > { %7192 = vmatmul.mubr.bf16.vlgmr.msra.gmra.mrb[28].mxu0 %v6963_v14  ;;  %7232 = vmatmul.mubr.bf16.vlgmr.msra.gmra.mrb[28].mxu1 %v6965_v24 }
 0xb2d   : > { %v8434_v60 = vpop.f32.mrb[28].mxu0  ;;  %v8456_v25 = vpop.f32.mrb[28].mxu1 }
 0xb2e   : > { %v8435_v26 = vpop.f32.mrb[29].mxu0  ;;  %v8457_v28 = vpop.f32.mrb[29].mxu1 }
 0xb2f   : > { %v8436_v30 = vadd.f32 %v8435_v26, %v8434_v60  ;;  %v8458_v32 = vadd.f32 %v8457_v28, %v8456_v25  ;;  %v8437_v33 = vpop.f32.mrb[30].mxu0  ;;  %v8459_v4 = vpop.f32.mrb[30].mxu1 }
 0xb30   : > { %v8438_v34 = vpop.f32.mrb[31].mxu0  ;;  %v8460_v35 = vpop.f32.mrb[31].mxu1 }
 0xb31   : > { %v7194_v37 = vadd.f32 %v8436_v30, %v6962_v63 }
 0xb33   : > { %v7234_v38 = vadd.f32 %v8458_v32, %v7194_v37 }
 0xb35   : > { %7240 = vst.msk [vmem:[%s972_s26] sm:$0x1] %vm7239_vm1, %v7234_v38 }
 0xb36   : > { %10573 = shalt.err (!%p10570_p3)
}
 0xb37   : > { %s10574_s24 = scalar_lea.hbm %s12550_s13, 16  ;;  %s10578_s1 = scalar_lea.hbm %s12936_s9, 32 }
 0xb38   : > { %p10575_p1 = scmp.ne.s32.totalorder %s12550_s13, %s10574_s24  ;;  %p10579_p6 = scmp.lt.u32.totalorder %s12550_s13, %s12936_s9 }
 0xb39   : > { %p10580_p2 = scmp.lt.u32.totalorder %s10578_s1, %s10574_s24  ;;  %p10582_p13 = scmp.lt.u32.totalorder %s10574_s24, %s12550_s13 }
 0xb3a   : > { %p10576_p8 = pnand %p10575_p1, %p12937_p5 }
 0xb3b   : > { %p10581_p0 = por %p10580_p2, %p10579_p6 }
 0xb3c   : > { %p10577_p4 = pneg %p10576_p8 }
 0xb3d   : > { %p10583_p7 = por %p10582_p13, %p10581_p0 }
 0xb3f   : > { %p10584_p9 = pnand %p10583_p7, %p10577_p4 }
 0xb41   : > { %10587 = shalt.err (!%p10584_p9)
}
 0xb42   : > { %8596 = dma.vmem_to_hbm [thread:$0]  (%p12937_p5), %s12552_s10, 16, %s12550_s13, %s7242_s21  }
 0xb43 PF: > { %s12938_s22 = sld [smem:[#allocation75_spill]]  ;;  %s12939_s29 = sld [smem:[#allocation83_spill]] }
 0xb44   : > { %p12941_p12 = scmp.ge.s32.totalorder %s10840_s5, 2 }
 0xb49   : > { %s7266_s0 = sand.u32 1, %s12938_s22   ;;  %p12940_p10 = scmp.ne.s32.totalorder %s12939_s29, 0 }
 0xb4a   : > { %s7267_s6 = scalar_lea.sflag [#allocation6], %s7266_s0 }
 0xb4b   : > { %p8663_p11 = pnand %p12941_p12, %p12940_p10 }
 0xb4d   : > { %10739 = dma.done.wait (!%p8663_p11), %s7267_s6, 16  }
 0xb4e   : > { %10741 = vsyncadd (!%p8663_p11), %s7267_s6, 4294967280  ;;  %s12942_s11 = sld [smem:[#allocation61_spill]]  ;;  %s12943_s2 = sld [smem:[#allocation62_spill]] }
 0xb4f   : > { %s12944_s24 = sld [smem:[#allocation64_spill]]  ;;  %s12945_s25 = sld [smem:[#allocation65_spill]] }
 0xb50   : > { %s12946_s26 = sld [smem:[#allocation86_spill]]  ;;  %s12947_s18 = sld [smem:[#allocation66_spill]] }
 0xb51   : > { %s12948_s29 = sld [smem:[#allocation81_spill]]  ;;  %s12949_s30 = sld [smem:[#allocation68_spill]] }
 0xb52   : > { %s12950_s0 = sld [smem:[#allocation69_spill]]  ;;  %s12951_s19 = sld [smem:[#allocation85_spill]] }
 0xb53   : > { %s12952_s16 = sld [smem:[#allocation70_spill]]  ;;  %p51_p5 = scmp.ge.s32.totalorder %s11226_s14, 4  }
 0xb54   : > { %s12953_s21 = sld [smem:[#allocation59_spill]]  ;;  %s12954_s22 = sld [smem:[#allocation72_spill]] }
 0xb55   : > { %s12955_s5 = sld [smem:[#allocation73_spill]]  ;;  %s12956_s10 = sld [smem:[#allocation84_spill]] }
 0xb56   : > { %s12957_s23 = smov %s13008_s17  ;;  %s12958_s7 = sld [smem:[#allocation74_spill]] }
 0xb57   : > { %s12959_s13 = sld [smem:[#allocation79_spill]]  ;;  %s12960_s4 = sld [smem:[#allocation76_spill]] }
 0xb58   : > { %s12961_s27 = smov %s10772_s28  ;;  %s12962_s3 = sld [smem:[#allocation77_spill]] }
 0xb59   : > { %s12963_s28 = smov %s12947_s18  ;;  %s12964_s12 = sld [smem:[#allocation82_spill]] }
 0xb5a   : > { %s12965_s6 = smov %s11226_s14  ;;  %s12967_s1 = smov %s10796_s20 }
 0xb5b   : > { %s12968_s20 = smov %s12952_s16  ;;  %s12969_s18 = smov %s12955_s5 }
 0xb5c   : > { %s12970_s16 = smov %s12956_s10  ;;  %s12971_s17 = smov %s10820_s15 }
 0xb5d   : > { %s12972_s15 = smov %s12958_s7  ;;  %12973 = sst [smem:[#allocation59_spill]] %s12960_s4 }
 0xb5e   : > { %s12974_s7 = smov %s12962_s3  ;;  %s12976_s5 = smov %s12965_s6 }
 0xb5f   : > { %s12975_s14 = smov %s12964_s12  ;;  %53 = sbr.rel (!%p51_p5) target bundleno = 54 (0x36), region = 253 }
 0xb66   :  { %7271 = vsyncpa [#allocation5], 1 }
 0xb67   :  { %7273 = vsyncpa [#allocation5 + $0x1], 1 }
 0xb68   :  { %7274 = vsyncpa [#allocation8], 1 }
 0xb69   :  { %7275 = vsyncpa [#allocation11], 1 }
 0xb6a   :  { %7276 = vsyncpa [#allocation14], 1 }
 0xb6b   :  { %7277 = vsyncpa [#allocation17], 1 }
 0xb6c   :  { %7278 = vsyncpa [#allocation20], 1 }
 0xb6d   :  { %7280 = vsyncpa [#allocation20 + $0x1], 1 }
 0xb6e   :  { %7281 = vsyncpa [#allocation23], 1 }
 0xb6f   :  { %7283 = vsyncpa [#allocation23 + $0x1], 1 }
 0xb70   :  { %7284 = vsyncpa [#allocation26], 1 }
 0xb71   :  { %7286 = vsyncpa [#allocation26 + $0x1], 1 }
 0xb72   :  { %7287 = vsyncpa [#allocation29], 1 }
 0xb73   :  { %7289 = vsyncpa [#allocation29 + $0x1], 1 }
 0xb74   :  { %7290 = vsyncpa [#allocation6], 1 }
 0xb75   :  { %7292 = vsyncpa [#allocation6 + $0x1], 1 }

</bundles_post_ra>
